<compile_context>
chip_gen: v6e
topology: v6e:2x2x1
jax: 0.10.0
libtpu: 0.0.40
codegen_flags: <defaults>
</compile_context>

<pallas_src>
import math

import jax
import jax.numpy as jnp
from jax import lax
from jax.experimental import pallas as pl
from jax.experimental.pallas import tpu as pltpu


CONV_K = 3                       # assumed ConvLayer kernel size (padding=1, "same")
_VMEM_LIMIT = 32 * 1024 * 1024   # scoped VMEM budget (safe on v5e / v6e / v7x)


# ------------------------------------------------------------- fused kernel --

def fused_kernel(x_ref, convw_ref, convb_ref, faw_ref, fab_ref,
                 wih_ref, bih_ref, whh_ref, attw_ref, attb_ref,
                 w1_ref, b1_ref, lw_ref, lb_ref, wl_ref, bl_ref, o_ref):
    """One batch block: conv+ReLU -> FeatureAttention -> LSTM -> TimeStepAttention
    -> (1 + L + 1) Linear/tanh head with eval-mode BatchNorm folded in.

    x_ref:      (BB, T, F)     input sub-batch (batch-major)
    convw_ref:  (F, 3H)        [tap x[t-1] | tap x[t] | tap x[t+1]] concatenated
    convb_ref:  (1, H)
    faw/fab:    (H, H) bf16 / (1, H)
    wih/bih:    (H, 4H) bf16 / (1, 4H)   (b = b_ih + b_hh; gate order i,f,g,o)
    whh:        (H, 4H) bf16
    attw/attb:  (H, 1) / (1, 1)
    w1/b1:      (H, H) bf16 / (1, H)
    lw/lb:      (L, H, H) bf16 / (L, 1, H)   (eval BatchNorm folded)
    wl/bl:      (H, Opad) bf16 / (1, Opad)   (eval BatchNorm folded, lane-padded)
    o_ref:      (BB, 1, Opad)
    """
    BB, T, F = x_ref.shape
    H = faw_ref.shape[0]
    N = BB * T
    L = lw_ref.shape[0]
    Opad = o_ref.shape[-1]

    # Batch-major flatten: row i = (b, t) with i = b*T + t.
    x = x_ref[...].reshape(N, F)                                         # (N, F)

    # --- ConvLayer (assumed): Conv1d(F->H, k=3, padding=1) + ReLU ------------
    # One (N,F)@(F,3H) matmul; "same" padding via per-sequence shifted sums.
    a = jnp.dot(x, convw_ref[...], preferred_element_type=jnp.float32)   # (N, 3H)
    a0, a1, a2 = a[:, 0:H], a[:, H:2 * H], a[:, 2 * H:3 * H]
    t_idx = lax.broadcasted_iota(jnp.int32, (N, H), 0) % T
    a0s = jnp.where(t_idx == 0, 0.0, pltpu.roll(a0, shift=1, axis=0))        # x[t-1]
    a2s = jnp.where(t_idx == T - 1, 0.0, pltpu.roll(a2, shift=N - 1, axis=0))  # x[t+1]
    y = jnp.maximum(a0s + a1 + a2s + convb_ref[...], 0.0)                # (N, H)

    # --- FeatureAttention (assumed): y * softmax(Linear(H->H)(y), axis=-1) ---
    s = jnp.dot(y.astype(jnp.bfloat16), faw_ref[...],
                preferred_element_type=jnp.float32) + fab_ref[...]
    z = y * jax.nn.softmax(s, axis=-1)                                   # (N, H)

    # --- LSTM input projection for every timestep at once (hoisted) ----------
    gates = jnp.dot(z.astype(jnp.bfloat16), wih_ref[...],
                    preferred_element_type=jnp.float32) + bih_ref[...]   # (N, 4H)
    gates = gates.reshape(BB, T, 4 * H)

    # --- serial LSTM recurrence (whole sub-batch per step, all in registers) -
    whh = whh_ref[...]                                                   # (H, 4H) bf16
    h = jnp.zeros((BB, H), jnp.float32)
    c = jnp.zeros((BB, H), jnp.float32)
    hs = []
    # TODO(synk): for long sequences switch to lax.fori_loop with a bounded
    # unroll + VMEM hidden-state scratch; full Python unroll assumes small T.
    for t in range(T):
        g = gates[:, t, :] + jnp.dot(h.astype(jnp.bfloat16), whh,
                                     preferred_element_type=jnp.float32)  # (BB, 4H)
        i_g = jax.nn.sigmoid(g[:, 0 * H:1 * H])
        f_g = jax.nn.sigmoid(g[:, 1 * H:2 * H])
        g_g = jnp.tanh(g[:, 2 * H:3 * H])
        o_g = jax.nn.sigmoid(g[:, 3 * H:4 * H])
        c = f_g * c + i_g * g_g
        h = o_g * jnp.tanh(c)
        hs.append(h)                                                     # (BB, H)

    # --- TimeStepAttention (assumed): a_t = softmax_t(Linear(H->1)(h_t)),
    #     context = sum_t a_t * h_t.  Score via one MXU matmul, no VMEM trip. -
    hs_cat = jnp.concatenate(hs, axis=0)                                 # (T*BB, H)
    sc = jnp.dot(hs_cat, attw_ref[...],
                 preferred_element_type=jnp.float32)                     # (T*BB, 1)
    sc = sc.reshape(T, BB).T + attb_ref[...]                             # (BB, T)
    att = jax.nn.softmax(sc, axis=-1)                                    # softmax over time
    ctx = jnp.zeros((BB, H), jnp.float32)
    for t in range(T):
        ctx = ctx + att[:, t:t + 1] * hs[t]                              # (BB, H)

    # --- first_layer -> tanh --------------------------------------------------
    hh = jnp.tanh(jnp.dot(ctx.astype(jnp.bfloat16), w1_ref[...],
                          preferred_element_type=jnp.float32) + b1_ref[...])

    # --- L x [Linear -> BatchNorm(eval, folded) -> tanh -> dropout(identity)] -
    for l in range(L):
        hh = jnp.tanh(jnp.dot(hh.astype(jnp.bfloat16), lw_ref[l],
                              preferred_element_type=jnp.float32) + lb_ref[l])
        # TODO(synk): training-mode dropout (stochastic masking) not reproduced.

    # --- last_layer -> BatchNorm(eval, folded) -> sigmoid (lane-padded cols) -
    yo = jnp.dot(hh.astype(jnp.bfloat16), wl_ref[...],
                 preferred_element_type=jnp.float32) + bl_ref[...]       # (BB, Opad)
    o_ref[...] = jax.nn.sigmoid(yo).reshape(BB, 1, Opad)


# ------------------------------------------------------------------ wrapper ---

def vanilla_layered_extractors_forward(x, params, *, batch_block=None):
    B, T, F = x.shape
    H = params["fa_w"].shape[0]
    G = 4 * H
    L = params["layers_w"].shape[0]
    O = params["last_w"].shape[1]
    O_pad = ((O + 127) // 128) * 128   # lane-dense head output slab

    if batch_block is None:
        # Keep >= 2 "parallel" grid steps when possible so both v7x TensorCores
        # get work; within a block the sub-batch shares sublanes / MXU rows.
        batch_block = B // 2 if (B >= 2 and B % 2 == 0) else B
    assert B % batch_block == 0, (B, batch_block)
    n_blocks = B // batch_block

    # lane-pad the (tiny) output head so the final store is a full 128-lane vst
    last_w = jnp.pad(params["last_w"], ((0, 0), (0, O_pad - O)))
    last_b = jnp.pad(params["last_b"], ((0, 0), (0, O_pad - O)))

    out = pl.pallas_call(
        fused_kernel,
        out_shape=jax.ShapeDtypeStruct((B, 1, O_pad), jnp.float32),
        grid_spec=pltpu.PrefetchScalarGridSpec(
            num_scalar_prefetch=0,
            grid=(n_blocks,),
            in_specs=[
                pl.BlockSpec((batch_block, T, F), lambda i: (i, 0, 0)),  # x block
                pl.BlockSpec((F, 3 * H), lambda i: (0, 0)),              # conv taps (concat)
                pl.BlockSpec((1, H), lambda i: (0, 0)),                  # conv bias
                pl.BlockSpec((H, H), lambda i: (0, 0)),                  # fa_w (bf16)
                pl.BlockSpec((1, H), lambda i: (0, 0)),                  # fa_b
                pl.BlockSpec((H, G), lambda i: (0, 0)),                  # lstm W_ih (bf16)
                pl.BlockSpec((1, G), lambda i: (0, 0)),                  # lstm bias
                pl.BlockSpec((H, G), lambda i: (0, 0)),                  # lstm W_hh (bf16)
                pl.BlockSpec((H, 1), lambda i: (0, 0)),                  # att_w
                pl.BlockSpec((1, 1), lambda i: (0, 0)),                  # att_b
                pl.BlockSpec((H, H), lambda i: (0, 0)),                  # first_w (bf16)
                pl.BlockSpec((1, H), lambda i: (0, 0)),                  # first_b
                pl.BlockSpec((L, H, H), lambda i: (0, 0, 0)),            # layers_w (bf16, BN folded)
                pl.BlockSpec((L, 1, H), lambda i: (0, 0, 0)),            # layers_b (BN folded)
                pl.BlockSpec((H, O_pad), lambda i: (0, 0)),              # last_w (bf16, BN folded)
                pl.BlockSpec((1, O_pad), lambda i: (0, 0)),              # last_b (BN folded)
            ],
            out_specs=pl.BlockSpec((batch_block, 1, O_pad), lambda i: (i, 0, 0)),
        ),
        compiler_params=pltpu.CompilerParams(
            dimension_semantics=("parallel",),
            vmem_limit_bytes=_VMEM_LIMIT,
        ),
    )(x, params["conv_w"], params["conv_b"], params["fa_w"], params["fa_b"],
      params["lstm_wih"], params["lstm_b"], params["lstm_whh"],
      params["att_w"], params["att_b"], params["first_w"], params["first_b"],
      params["layers_w"], params["layers_b"], last_w, last_b)

    return out[:, 0, :O]


# --------------------------------------------------------------- param init ---

def init_params(key, F, H, L, O, K=CONV_K):
    """PyTorch-equivalent initialization + inference-time parameter folding."""
    ks = jax.random.split(key, 16)

    def uni(k, shape, bound):
        return jax.random.uniform(k, shape, jnp.float32, -bound, bound)

    def xavier(k, fan_in, fan_out):
        bound = math.sqrt(6.0 / (fan_in + fan_out))
        return jax.random.uniform(k, (fan_in, fan_out), jnp.float32, -bound, bound)

    eps = 1e-5
    p = {}

    # Conv1d(F -> H, kernel=3): PyTorch weight layout (H, F, K), default init.
    # Stored as one concatenated (F, 3H) matrix: [tap x[t-1] | tap x[t] | tap x[t+1]].
    cbound = 1.0 / math.sqrt(F * K)
    conv_w = uni(ks[0], (H, F, K), cbound)
    p["conv_w"] = jnp.concatenate([conv_w[:, :, k].T for k in range(K)], axis=1)
    p["conv_b"] = uni(ks[1], (1, H), cbound)

    hb = 1.0 / math.sqrt(H)
    # FeatureAttention: Linear(H, H).  bf16 weight -> MXU-native, f32 accumulate.
    p["fa_w"] = uni(ks[2], (H, H), hb).astype(jnp.bfloat16)
    p["fa_b"] = uni(ks[3], (1, H), hb)

    # LSTM(H, H): uniform(-1/sqrt(H), 1/sqrt(H)); combined bias = b_ih + b_hh.
    # Gate order along the 4H axis: i, f, g, o (PyTorch convention).
    p["lstm_wih"] = uni(ks[4], (H, 4 * H), hb).astype(jnp.bfloat16)
    p["lstm_whh"] = uni(ks[5], (H, 4 * H), hb).astype(jnp.bfloat16)
    p["lstm_b"] = uni(ks[6], (1, 4 * H), hb) + uni(ks[7], (1, 4 * H), hb)

    # TimeStepAttention: Linear(H, 1), stored (H, 1) so the score is an MXU matmul.
    p["att_w"] = uni(ks[8], (H, 1), hb)
    p["att_b"] = uni(ks[9], (1, 1), hb)

    # first_layer: Linear(H, H), xavier_uniform_ weight.
    p["first_w"] = xavier(ks[10], H, H).astype(jnp.bfloat16)
    p["first_b"] = uni(ks[11], (1, H), hb)

    # L x [Linear(H, H) (xavier) + BatchNorm1d(H)].  Eval-mode BN (default
    # running stats) folded into the Linear:  W' = W * s,  b' = b * s + t,
    # with s = gamma / sqrt(var + eps), t = beta - mean * s.
    lw = jnp.stack([xavier(k, H, H) for k in jax.random.split(ks[12], L)])  # (L,H,H)
    lb = uni(ks[13], (L, 1, H), hb)
    gamma = jnp.ones((L, 1, H), jnp.float32)
    beta = jnp.zeros((L, 1, H), jnp.float32)
    run_mean = jnp.zeros((L, 1, H), jnp.float32)
    run_var = jnp.ones((L, 1, H), jnp.float32)
    bn_s = gamma / jnp.sqrt(run_var + eps)
    bn_t = beta - run_mean * bn_s
    p["layers_w"] = (lw * bn_s).astype(jnp.bfloat16)
    p["layers_b"] = lb * bn_s + bn_t

    # last_layer: Linear(H, O) (xavier) + BatchNorm1d(O), folded the same way.
    wl = xavier(ks[14], H, O)
    bl = uni(ks[15], (1, O), hb)
    gl = jnp.ones((1, O), jnp.float32)
    btl = jnp.zeros((1, O), jnp.float32)
    ml = jnp.zeros((1, O), jnp.float32)
    vl = jnp.ones((1, O), jnp.float32)
    ln_s = gl / jnp.sqrt(vl + eps)
    ln_t = btl - ml * ln_s
    p["last_w"] = (wl * ln_s).astype(jnp.bfloat16)
    p["last_b"] = bl * ln_s + ln_t
    return p


# ------------------------------------------------------------------------------

if __name__ == "__main__":
    # hidden_size=128 (the module default) keeps every matmul / gate slice /
    # hidden-state value lane-aligned on the TPU.
    B, T, F, H, L, O = 2, 8, 4, 128, 10, 1
    key = jax.random.PRNGKey(0)
    kx, kp = jax.random.split(key)

    x = jax.random.normal(kx, (B, T, F), jnp.float32)   # (batch, seq_len, input_size)
    params = init_params(kp, F, H, L, O)

    fwd = jax.jit(vanilla_layered_extractors_forward)
    out = jax.block_until_ready(fwd(x, params))

    assert out.shape == (B, O), out.shape
    assert bool(jnp.all(jnp.isfinite(out)))
    assert bool(jnp.all((out >= 0.0) & (out <= 1.0)))   # sigmoid range
    print("KERNEL_OK")
</pallas_src>

<mosaic_0001>
module attributes {stable_mosaic.version = 11 : i64} {
  func.func @fused_kernel(%arg0: i32, %arg1: memref<1x8x4xf32, #tpu.memory_space<vmem>>, %arg2: memref<4x384xf32, #tpu.memory_space<vmem>>, %arg3: memref<1x128xf32, #tpu.memory_space<vmem>>, %arg4: memref<128x128xbf16, #tpu.memory_space<vmem>>, %arg5: memref<1x128xf32, #tpu.memory_space<vmem>>, %arg6: memref<128x512xbf16, #tpu.memory_space<vmem>>, %arg7: memref<1x512xf32, #tpu.memory_space<vmem>>, %arg8: memref<128x512xbf16, #tpu.memory_space<vmem>>, %arg9: memref<128x1xf32, #tpu.memory_space<vmem>>, %arg10: memref<1x1xf32, #tpu.memory_space<vmem>>, %arg11: memref<128x128xbf16, #tpu.memory_space<vmem>>, %arg12: memref<1x128xf32, #tpu.memory_space<vmem>>, %arg13: memref<10x128x128xbf16, #tpu.memory_space<vmem>>, %arg14: memref<10x1x128xf32, #tpu.memory_space<vmem>>, %arg15: memref<128x128xbf16, #tpu.memory_space<vmem>>, %arg16: memref<1x128xf32, #tpu.memory_space<vmem>>, %arg17: memref<1x1x128xf32, #tpu.memory_space<vmem>>) attributes {dimension_semantics = [#tpu.dimension_semantics<parallel>], iteration_bounds = array<i64: 2>, scalar_prefetch = 0 : i64, scratch_operands = 0 : i64, tpu.core_type = #tpu.core_type<tc>, window_params = [{transform_indices = @transform_0, window_bounds = array<i64: 1, 8, 4>}, {pipeline_mode = #tpu.pipeline_mode<synchronous>, transform_indices = @transform_1, window_bounds = array<i64: 4, 384>}, {pipeline_mode = #tpu.pipeline_mode<synchronous>, transform_indices = @transform_2, window_bounds = array<i64: 1, 128>}, {pipeline_mode = #tpu.pipeline_mode<synchronous>, transform_indices = @transform_3, window_bounds = array<i64: 128, 128>}, {pipeline_mode = #tpu.pipeline_mode<synchronous>, transform_indices = @transform_4, window_bounds = array<i64: 1, 128>}, {pipeline_mode = #tpu.pipeline_mode<synchronous>, transform_indices = @transform_5, window_bounds = array<i64: 128, 512>}, {pipeline_mode = #tpu.pipeline_mode<synchronous>, transform_indices = @transform_6, window_bounds = array<i64: 1, 512>}, {pipeline_mode = #tpu.pipeline_mode<synchronous>, transform_indices = @transform_7, window_bounds = array<i64: 128, 512>}, {pipeline_mode = #tpu.pipeline_mode<synchronous>, transform_indices = @transform_8, window_bounds = array<i64: 128, 1>}, {pipeline_mode = #tpu.pipeline_mode<synchronous>, transform_indices = @transform_9, window_bounds = array<i64: 1, 1>}, {pipeline_mode = #tpu.pipeline_mode<synchronous>, transform_indices = @transform_10, window_bounds = array<i64: 128, 128>}, {pipeline_mode = #tpu.pipeline_mode<synchronous>, transform_indices = @transform_11, window_bounds = array<i64: 1, 128>}, {pipeline_mode = #tpu.pipeline_mode<synchronous>, transform_indices = @transform_12, window_bounds = array<i64: 10, 128, 128>}, {pipeline_mode = #tpu.pipeline_mode<synchronous>, transform_indices = @transform_13, window_bounds = array<i64: 10, 1, 128>}, {pipeline_mode = #tpu.pipeline_mode<synchronous>, transform_indices = @transform_14, window_bounds = array<i64: 128, 128>}, {pipeline_mode = #tpu.pipeline_mode<synchronous>, transform_indices = @transform_15, window_bounds = array<i64: 1, 128>}, {transform_indices = @transform_16, window_bounds = array<i64: 1, 1, 128>}]} {
    %c0 = arith.constant 0 : index
    %c0_0 = arith.constant 0 : index
    %c0_1 = arith.constant 0 : index
    %0 = vector.load %arg1[%c0, %c0_0, %c0_1] : memref<1x8x4xf32, #tpu.memory_space<vmem>>, vector<1x8x4xf32>
    %1 = vector.shape_cast %0 : vector<1x8x4xf32> to vector<8x4xf32>
    %c0_2 = arith.constant 0 : index
    %c0_3 = arith.constant 0 : index
    %2 = vector.load %arg2[%c0_2, %c0_3] : memref<4x384xf32, #tpu.memory_space<vmem>>, vector<4x384xf32>
    %cst = arith.constant dense<0.000000e+00> : vector<8x384xf32>
    %3 = tpu.matmul %1, %2, %cst {dimension_numbers = #tpu.dot_dimension_numbers<[1], [0], [0], [1], [0, 0, 1, 1], [], []>} : vector<8x4xf32>, vector<4x384xf32>, vector<8x384xf32> -> vector<8x384xf32>
    %4 = vector.extract_strided_slice %3 {offsets = [0, 0], sizes = [8, 128], strides = [1, 1]} : vector<8x384xf32> to vector<8x128xf32>
    %5 = vector.extract_strided_slice %3 {offsets = [0, 128], sizes = [8, 128], strides = [1, 1]} : vector<8x384xf32> to vector<8x128xf32>
    %6 = vector.extract_strided_slice %3 {offsets = [0, 256], sizes = [8, 128], strides = [1, 1]} : vector<8x384xf32> to vector<8x128xf32>
    %7 = tpu.iota {dimensions = array<i32: 0>} : vector<8x128xi32>
    %c8_i32 = arith.constant 8 : i32
    %c0_i32 = arith.constant 0 : i32
    %8 = arith.cmpi eq, %c8_i32, %c0_i32 : i32
    %c1_i32 = arith.constant 1 : i32
    %9 = arith.select %8, %c1_i32, %c8_i32 : i32
    %10 = vector.broadcast %9 : i32 to vector<8x128xi32>
    %11 = arith.remsi %7, %10 : vector<8x128xi32>
    %c0_i32_4 = arith.constant 0 : i32
    %12 = vector.broadcast %c0_i32_4 : i32 to vector<8x128xi32>
    %13 = arith.cmpi ne, %11, %12 : vector<8x128xi32>
    %c0_i32_5 = arith.constant 0 : i32
    %14 = vector.broadcast %c0_i32_5 : i32 to vector<8x128xi32>
    %15 = arith.cmpi slt, %11, %14 : vector<8x128xi32>
    %c0_i32_6 = arith.constant 0 : i32
    %16 = arith.cmpi slt, %9, %c0_i32_6 : i32
    %17 = vector.broadcast %16 : i1 to vector<8x128xi1>
    %18 = vector.broadcast %17 : vector<8x128xi1> to vector<8x128xi1>
    %19 = arith.xori %15, %18 : vector<8x128xi1>
    %20 = arith.andi %19, %13 : vector<8x128xi1>
    %21 = vector.broadcast %9 : i32 to vector<8x128xi32>
    %22 = arith.addi %11, %21 : vector<8x128xi32>
    %23 = arith.select %20, %22, %11 : vector<8x128xi1>, vector<8x128xi32>
    %c0_i32_7 = arith.constant 0 : i32
    %24 = vector.broadcast %c0_i32_7 : i32 to vector<8x128xi32>
    %25 = arith.cmpi eq, %23, %24 : vector<8x128xi32>
    %c1_i32_8 = arith.constant 1 : i32
    %26 = tpu.dynamic_rotate %4 by %c1_i32_8 dim 0 : vector<8x128xf32>, i32 -> vector<8x128xf32>
    %cst_9 = arith.constant 0.000000e+00 : f32
    %27 = vector.broadcast %cst_9 : f32 to vector<8x128xf32>
    %28 = arith.select %25, %27, %26 : vector<8x128xi1>, vector<8x128xf32>
    %c7_i32 = arith.constant 7 : i32
    %29 = vector.broadcast %c7_i32 : i32 to vector<8x128xi32>
    %30 = arith.cmpi eq, %23, %29 : vector<8x128xi32>
    %c7_i32_10 = arith.constant 7 : i32
    %31 = tpu.dynamic_rotate %6 by %c7_i32_10 dim 0 : vector<8x128xf32>, i32 -> vector<8x128xf32>
    %cst_11 = arith.constant 0.000000e+00 : f32
    %32 = vector.broadcast %cst_11 : f32 to vector<8x128xf32>
    %33 = arith.select %30, %32, %31 : vector<8x128xi1>, vector<8x128xf32>
    %34 = arith.addf %28, %5 : vector<8x128xf32>
    %35 = arith.addf %34, %33 : vector<8x128xf32>
    %c0_12 = arith.constant 0 : index
    %c0_13 = arith.constant 0 : index
    %36 = vector.load %arg3[%c0_12, %c0_13] : memref<1x128xf32, #tpu.memory_space<vmem>>, vector<1x128xf32>
    %37 = vector.broadcast %36 : vector<1x128xf32> to vector<8x128xf32>
    %38 = arith.addf %35, %37 : vector<8x128xf32>
    %cst_14 = arith.constant 0.000000e+00 : f32
    %39 = vector.broadcast %cst_14 : f32 to vector<8x128xf32>
    %40 = arith.maximumf %38, %39 : vector<8x128xf32>
    %41 = arith.truncf %40 : vector<8x128xf32> to vector<8x128xbf16>
    %c0_15 = arith.constant 0 : index
    %c0_16 = arith.constant 0 : index
    %42 = vector.load %arg4[%c0_15, %c0_16] : memref<128x128xbf16, #tpu.memory_space<vmem>>, vector<128x128xbf16>
    %cst_17 = arith.constant dense<0.000000e+00> : vector<8x128xf32>
    %43 = tpu.matmul %41, %42, %cst_17 {dimension_numbers = #tpu.dot_dimension_numbers<[1], [0], [0], [1], [0, 0, 1, 1], [], []>} : vector<8x128xbf16>, vector<128x128xbf16>, vector<8x128xf32> -> vector<8x128xf32>
    %c0_18 = arith.constant 0 : index
    %c0_19 = arith.constant 0 : index
    %44 = vector.load %arg5[%c0_18, %c0_19] : memref<1x128xf32, #tpu.memory_space<vmem>>, vector<1x128xf32>
    %45 = vector.broadcast %44 : vector<1x128xf32> to vector<8x128xf32>
    %46 = arith.addf %43, %45 : vector<8x128xf32>
    %cst_20 = arith.constant dense<0xFF800000> : vector<8xf32>
    %47 = vector.multi_reduction <maximumf>, %46, %cst_20 [1] : vector<8x128xf32> to vector<8xf32>
    %cst_21 = arith.constant 0xFF800000 : f32
    %48 = vector.broadcast %cst_21 : f32 to vector<8xf32>
    %49 = arith.maximumf %48, %47 : vector<8xf32>
    %50 = vector.shape_cast %49 : vector<8xf32> to vector<8x1xf32>
    %51 = vector.broadcast %50 : vector<8x1xf32> to vector<8x128xf32>
    %52 = arith.subf %46, %51 : vector<8x128xf32>
    %53 = math.exp %52 : vector<8x128xf32>
    %cst_22 = arith.constant dense<0.000000e+00> : vector<8xf32>
    %54 = vector.multi_reduction <add>, %53, %cst_22 [1] : vector<8x128xf32> to vector<8xf32>
    %55 = vector.shape_cast %54 : vector<8xf32> to vector<8x1xf32>
    %56 = vector.broadcast %55 : vector<8x1xf32> to vector<8x128xf32>
    %57 = arith.divf %53, %56 : vector<8x128xf32>
    %58 = arith.mulf %40, %57 : vector<8x128xf32>
    %59 = arith.truncf %58 : vector<8x128xf32> to vector<8x128xbf16>
    %c0_23 = arith.constant 0 : index
    %c0_24 = arith.constant 0 : index
    %60 = vector.load %arg6[%c0_23, %c0_24] : memref<128x512xbf16, #tpu.memory_space<vmem>>, vector<128x512xbf16>
    %cst_25 = arith.constant dense<0.000000e+00> : vector<8x512xf32>
    %61 = tpu.matmul %59, %60, %cst_25 {dimension_numbers = #tpu.dot_dimension_numbers<[1], [0], [0], [1], [0, 0, 1, 1], [], []>} : vector<8x128xbf16>, vector<128x512xbf16>, vector<8x512xf32> -> vector<8x512xf32>
    %c0_26 = arith.constant 0 : index
    %c0_27 = arith.constant 0 : index
    %62 = vector.load %arg7[%c0_26, %c0_27] : memref<1x512xf32, #tpu.memory_space<vmem>>, vector<1x512xf32>
    %63 = vector.broadcast %62 : vector<1x512xf32> to vector<8x512xf32>
    %64 = arith.addf %61, %63 : vector<8x512xf32>
    %65 = vector.shape_cast %64 : vector<8x512xf32> to vector<1x8x512xf32>
    %c0_28 = arith.constant 0 : index
    %c0_29 = arith.constant 0 : index
    %66 = vector.load %arg8[%c0_28, %c0_29] : memref<128x512xbf16, #tpu.memory_space<vmem>>, vector<128x512xbf16>
    %cst_30 = arith.constant 0.000000e+00 : f32
    %67 = vector.broadcast %cst_30 : f32 to vector<1x128xf32>
    %cst_31 = arith.constant 0.000000e+00 : f32
    %68 = vector.broadcast %cst_31 : f32 to vector<1x128xf32>
    %69 = vector.extract_strided_slice %65 {offsets = [0, 0, 0], sizes = [1, 1, 512], strides = [1, 1, 1]} : vector<1x8x512xf32> to vector<1x1x512xf32>
    %70 = vector.shape_cast %69 : vector<1x1x512xf32> to vector<1x512xf32>
    %71 = arith.truncf %67 : vector<1x128xf32> to vector<1x128xbf16>
    %cst_32 = arith.constant dense<0.000000e+00> : vector<1x512xf32>
    %72 = tpu.matmul %71, %66, %cst_32 {dimension_numbers = #tpu.dot_dimension_numbers<[1], [0], [0], [1], [0, 0, 1, 1], [], []>} : vector<1x128xbf16>, vector<128x512xbf16>, vector<1x512xf32> -> vector<1x512xf32>
    %73 = arith.addf %70, %72 : vector<1x512xf32>
    %74 = vector.extract_strided_slice %73 {offsets = [0, 0], sizes = [1, 128], strides = [1, 1]} : vector<1x512xf32> to vector<1x128xf32>
    %75 = arith.negf %74 : vector<1x128xf32>
    %76 = math.exp %75 : vector<1x128xf32>
    %cst_33 = arith.constant 1.000000e+00 : f32
    %77 = vector.broadcast %cst_33 : f32 to vector<1x128xf32>
    %78 = arith.addf %77, %76 : vector<1x128xf32>
    %79 = arith.divf %77, %78 : vector<1x128xf32>
    %80 = vector.extract_strided_slice %73 {offsets = [0, 128], sizes = [1, 128], strides = [1, 1]} : vector<1x512xf32> to vector<1x128xf32>
    %81 = arith.negf %80 : vector<1x128xf32>
    %82 = math.exp %81 : vector<1x128xf32>
    %cst_34 = arith.constant 1.000000e+00 : f32
    %83 = vector.broadcast %cst_34 : f32 to vector<1x128xf32>
    %84 = arith.addf %83, %82 : vector<1x128xf32>
    %85 = arith.divf %83, %84 : vector<1x128xf32>
    %86 = vector.extract_strided_slice %73 {offsets = [0, 256], sizes = [1, 128], strides = [1, 1]} : vector<1x512xf32> to vector<1x128xf32>
    %87 = math.tanh %86 : vector<1x128xf32>
    %88 = vector.extract_strided_slice %73 {offsets = [0, 384], sizes = [1, 128], strides = [1, 1]} : vector<1x512xf32> to vector<1x128xf32>
    %89 = arith.negf %88 : vector<1x128xf32>
    %90 = math.exp %89 : vector<1x128xf32>
    %cst_35 = arith.constant 1.000000e+00 : f32
    %91 = vector.broadcast %cst_35 : f32 to vector<1x128xf32>
    %92 = arith.addf %91, %90 : vector<1x128xf32>
    %93 = arith.divf %91, %92 : vector<1x128xf32>
    %94 = arith.mulf %85, %68 : vector<1x128xf32>
    %95 = arith.mulf %79, %87 : vector<1x128xf32>
    %96 = arith.addf %94, %95 : vector<1x128xf32>
    %97 = math.tanh %96 : vector<1x128xf32>
    %98 = arith.mulf %93, %97 : vector<1x128xf32>
    %99 = vector.extract_strided_slice %65 {offsets = [0, 1, 0], sizes = [1, 1, 512], strides = [1, 1, 1]} : vector<1x8x512xf32> to vector<1x1x512xf32>
    %100 = vector.shape_cast %99 : vector<1x1x512xf32> to vector<1x512xf32>
    %101 = arith.truncf %98 : vector<1x128xf32> to vector<1x128xbf16>
    %cst_36 = arith.constant dense<0.000000e+00> : vector<1x512xf32>
    %102 = tpu.matmul %101, %66, %cst_36 {dimension_numbers = #tpu.dot_dimension_numbers<[1], [0], [0], [1], [0, 0, 1, 1], [], []>} : vector<1x128xbf16>, vector<128x512xbf16>, vector<1x512xf32> -> vector<1x512xf32>
    %103 = arith.addf %100, %102 : vector<1x512xf32>
    %104 = vector.extract_strided_slice %103 {offsets = [0, 0], sizes = [1, 128], strides = [1, 1]} : vector<1x512xf32> to vector<1x128xf32>
    %105 = arith.negf %104 : vector<1x128xf32>
    %106 = math.exp %105 : vector<1x128xf32>
    %cst_37 = arith.constant 1.000000e+00 : f32
    %107 = vector.broadcast %cst_37 : f32 to vector<1x128xf32>
    %108 = arith.addf %107, %106 : vector<1x128xf32>
    %109 = arith.divf %107, %108 : vector<1x128xf32>
    %110 = vector.extract_strided_slice %103 {offsets = [0, 128], sizes = [1, 128], strides = [1, 1]} : vector<1x512xf32> to vector<1x128xf32>
    %111 = arith.negf %110 : vector<1x128xf32>
    %112 = math.exp %111 : vector<1x128xf32>
    %cst_38 = arith.constant 1.000000e+00 : f32
    %113 = vector.broadcast %cst_38 : f32 to vector<1x128xf32>
    %114 = arith.addf %113, %112 : vector<1x128xf32>
    %115 = arith.divf %113, %114 : vector<1x128xf32>
    %116 = vector.extract_strided_slice %103 {offsets = [0, 256], sizes = [1, 128], strides = [1, 1]} : vector<1x512xf32> to vector<1x128xf32>
    %117 = math.tanh %116 : vector<1x128xf32>
    %118 = vector.extract_strided_slice %103 {offsets = [0, 384], sizes = [1, 128], strides = [1, 1]} : vector<1x512xf32> to vector<1x128xf32>
    %119 = arith.negf %118 : vector<1x128xf32>
    %120 = math.exp %119 : vector<1x128xf32>
    %cst_39 = arith.constant 1.000000e+00 : f32
    %121 = vector.broadcast %cst_39 : f32 to vector<1x128xf32>
    %122 = arith.addf %121, %120 : vector<1x128xf32>
    %123 = arith.divf %121, %122 : vector<1x128xf32>
    %124 = arith.mulf %115, %96 : vector<1x128xf32>
    %125 = arith.mulf %109, %117 : vector<1x128xf32>
    %126 = arith.addf %124, %125 : vector<1x128xf32>
    %127 = math.tanh %126 : vector<1x128xf32>
    %128 = arith.mulf %123, %127 : vector<1x128xf32>
    %129 = vector.extract_strided_slice %65 {offsets = [0, 2, 0], sizes = [1, 1, 512], strides = [1, 1, 1]} : vector<1x8x512xf32> to vector<1x1x512xf32>
    %130 = vector.shape_cast %129 : vector<1x1x512xf32> to vector<1x512xf32>
    %131 = arith.truncf %128 : vector<1x128xf32> to vector<1x128xbf16>
    %cst_40 = arith.constant dense<0.000000e+00> : vector<1x512xf32>
    %132 = tpu.matmul %131, %66, %cst_40 {dimension_numbers = #tpu.dot_dimension_numbers<[1], [0], [0], [1], [0, 0, 1, 1], [], []>} : vector<1x128xbf16>, vector<128x512xbf16>, vector<1x512xf32> -> vector<1x512xf32>
    %133 = arith.addf %130, %132 : vector<1x512xf32>
    %134 = vector.extract_strided_slice %133 {offsets = [0, 0], sizes = [1, 128], strides = [1, 1]} : vector<1x512xf32> to vector<1x128xf32>
    %135 = arith.negf %134 : vector<1x128xf32>
    %136 = math.exp %135 : vector<1x128xf32>
    %cst_41 = arith.constant 1.000000e+00 : f32
    %137 = vector.broadcast %cst_41 : f32 to vector<1x128xf32>
    %138 = arith.addf %137, %136 : vector<1x128xf32>
    %139 = arith.divf %137, %138 : vector<1x128xf32>
    %140 = vector.extract_strided_slice %133 {offsets = [0, 128], sizes = [1, 128], strides = [1, 1]} : vector<1x512xf32> to vector<1x128xf32>
    %141 = arith.negf %140 : vector<1x128xf32>
    %142 = math.exp %141 : vector<1x128xf32>
    %cst_42 = arith.constant 1.000000e+00 : f32
    %143 = vector.broadcast %cst_42 : f32 to vector<1x128xf32>
    %144 = arith.addf %143, %142 : vector<1x128xf32>
    %145 = arith.divf %143, %144 : vector<1x128xf32>
    %146 = vector.extract_strided_slice %133 {offsets = [0, 256], sizes = [1, 128], strides = [1, 1]} : vector<1x512xf32> to vector<1x128xf32>
    %147 = math.tanh %146 : vector<1x128xf32>
    %148 = vector.extract_strided_slice %133 {offsets = [0, 384], sizes = [1, 128], strides = [1, 1]} : vector<1x512xf32> to vector<1x128xf32>
    %149 = arith.negf %148 : vector<1x128xf32>
    %150 = math.exp %149 : vector<1x128xf32>
    %cst_43 = arith.constant 1.000000e+00 : f32
    %151 = vector.broadcast %cst_43 : f32 to vector<1x128xf32>
    %152 = arith.addf %151, %150 : vector<1x128xf32>
    %153 = arith.divf %151, %152 : vector<1x128xf32>
    %154 = arith.mulf %145, %126 : vector<1x128xf32>
    %155 = arith.mulf %139, %147 : vector<1x128xf32>
    %156 = arith.addf %154, %155 : vector<1x128xf32>
    %157 = math.tanh %156 : vector<1x128xf32>
    %158 = arith.mulf %153, %157 : vector<1x128xf32>
    %159 = vector.extract_strided_slice %65 {offsets = [0, 3, 0], sizes = [1, 1, 512], strides = [1, 1, 1]} : vector<1x8x512xf32> to vector<1x1x512xf32>
    %160 = vector.shape_cast %159 : vector<1x1x512xf32> to vector<1x512xf32>
    %161 = arith.truncf %158 : vector<1x128xf32> to vector<1x128xbf16>
    %cst_44 = arith.constant dense<0.000000e+00> : vector<1x512xf32>
    %162 = tpu.matmul %161, %66, %cst_44 {dimension_numbers = #tpu.dot_dimension_numbers<[1], [0], [0], [1], [0, 0, 1, 1], [], []>} : vector<1x128xbf16>, vector<128x512xbf16>, vector<1x512xf32> -> vector<1x512xf32>
    %163 = arith.addf %160, %162 : vector<1x512xf32>
    %164 = vector.extract_strided_slice %163 {offsets = [0, 0], sizes = [1, 128], strides = [1, 1]} : vector<1x512xf32> to vector<1x128xf32>
    %165 = arith.negf %164 : vector<1x128xf32>
    %166 = math.exp %165 : vector<1x128xf32>
    %cst_45 = arith.constant 1.000000e+00 : f32
    %167 = vector.broadcast %cst_45 : f32 to vector<1x128xf32>
    %168 = arith.addf %167, %166 : vector<1x128xf32>
    %169 = arith.divf %167, %168 : vector<1x128xf32>
    %170 = vector.extract_strided_slice %163 {offsets = [0, 128], sizes = [1, 128], strides = [1, 1]} : vector<1x512xf32> to vector<1x128xf32>
    %171 = arith.negf %170 : vector<1x128xf32>
    %172 = math.exp %171 : vector<1x128xf32>
    %cst_46 = arith.constant 1.000000e+00 : f32
    %173 = vector.broadcast %cst_46 : f32 to vector<1x128xf32>
    %174 = arith.addf %173, %172 : vector<1x128xf32>
    %175 = arith.divf %173, %174 : vector<1x128xf32>
    %176 = vector.extract_strided_slice %163 {offsets = [0, 256], sizes = [1, 128], strides = [1, 1]} : vector<1x512xf32> to vector<1x128xf32>
    %177 = math.tanh %176 : vector<1x128xf32>
    %178 = vector.extract_strided_slice %163 {offsets = [0, 384], sizes = [1, 128], strides = [1, 1]} : vector<1x512xf32> to vector<1x128xf32>
    %179 = arith.negf %178 : vector<1x128xf32>
    %180 = math.exp %179 : vector<1x128xf32>
    %cst_47 = arith.constant 1.000000e+00 : f32
    %181 = vector.broadcast %cst_47 : f32 to vector<1x128xf32>
    %182 = arith.addf %181, %180 : vector<1x128xf32>
    %183 = arith.divf %181, %182 : vector<1x128xf32>
    %184 = arith.mulf %175, %156 : vector<1x128xf32>
    %185 = arith.mulf %169, %177 : vector<1x128xf32>
    %186 = arith.addf %184, %185 : vector<1x128xf32>
    %187 = math.tanh %186 : vector<1x128xf32>
    %188 = arith.mulf %183, %187 : vector<1x128xf32>
    %189 = vector.extract_strided_slice %65 {offsets = [0, 4, 0], sizes = [1, 1, 512], strides = [1, 1, 1]} : vector<1x8x512xf32> to vector<1x1x512xf32>
    %190 = vector.shape_cast %189 : vector<1x1x512xf32> to vector<1x512xf32>
    %191 = arith.truncf %188 : vector<1x128xf32> to vector<1x128xbf16>
    %cst_48 = arith.constant dense<0.000000e+00> : vector<1x512xf32>
    %192 = tpu.matmul %191, %66, %cst_48 {dimension_numbers = #tpu.dot_dimension_numbers<[1], [0], [0], [1], [0, 0, 1, 1], [], []>} : vector<1x128xbf16>, vector<128x512xbf16>, vector<1x512xf32> -> vector<1x512xf32>
    %193 = arith.addf %190, %192 : vector<1x512xf32>
    %194 = vector.extract_strided_slice %193 {offsets = [0, 0], sizes = [1, 128], strides = [1, 1]} : vector<1x512xf32> to vector<1x128xf32>
    %195 = arith.negf %194 : vector<1x128xf32>
    %196 = math.exp %195 : vector<1x128xf32>
    %cst_49 = arith.constant 1.000000e+00 : f32
    %197 = vector.broadcast %cst_49 : f32 to vector<1x128xf32>
    %198 = arith.addf %197, %196 : vector<1x128xf32>
    %199 = arith.divf %197, %198 : vector<1x128xf32>
    %200 = vector.extract_strided_slice %193 {offsets = [0, 128], sizes = [1, 128], strides = [1, 1]} : vector<1x512xf32> to vector<1x128xf32>
    %201 = arith.negf %200 : vector<1x128xf32>
    %202 = math.exp %201 : vector<1x128xf32>
    %cst_50 = arith.constant 1.000000e+00 : f32
    %203 = vector.broadcast %cst_50 : f32 to vector<1x128xf32>
    %204 = arith.addf %203, %202 : vector<1x128xf32>
    %205 = arith.divf %203, %204 : vector<1x128xf32>
    %206 = vector.extract_strided_slice %193 {offsets = [0, 256], sizes = [1, 128], strides = [1, 1]} : vector<1x512xf32> to vector<1x128xf32>
    %207 = math.tanh %206 : vector<1x128xf32>
    %208 = vector.extract_strided_slice %193 {offsets = [0, 384], sizes = [1, 128], strides = [1, 1]} : vector<1x512xf32> to vector<1x128xf32>
    %209 = arith.negf %208 : vector<1x128xf32>
    %210 = math.exp %209 : vector<1x128xf32>
    %cst_51 = arith.constant 1.000000e+00 : f32
    %211 = vector.broadcast %cst_51 : f32 to vector<1x128xf32>
    %212 = arith.addf %211, %210 : vector<1x128xf32>
    %213 = arith.divf %211, %212 : vector<1x128xf32>
    %214 = arith.mulf %205, %186 : vector<1x128xf32>
    %215 = arith.mulf %199, %207 : vector<1x128xf32>
    %216 = arith.addf %214, %215 : vector<1x128xf32>
    %217 = math.tanh %216 : vector<1x128xf32>
    %218 = arith.mulf %213, %217 : vector<1x128xf32>
    %219 = vector.extract_strided_slice %65 {offsets = [0, 5, 0], sizes = [1, 1, 512], strides = [1, 1, 1]} : vector<1x8x512xf32> to vector<1x1x512xf32>
    %220 = vector.shape_cast %219 : vector<1x1x512xf32> to vector<1x512xf32>
    %221 = arith.truncf %218 : vector<1x128xf32> to vector<1x128xbf16>
    %cst_52 = arith.constant dense<0.000000e+00> : vector<1x512xf32>
    %222 = tpu.matmul %221, %66, %cst_52 {dimension_numbers = #tpu.dot_dimension_numbers<[1], [0], [0], [1], [0, 0, 1, 1], [], []>} : vector<1x128xbf16>, vector<128x512xbf16>, vector<1x512xf32> -> vector<1x512xf32>
    %223 = arith.addf %220, %222 : vector<1x512xf32>
    %224 = vector.extract_strided_slice %223 {offsets = [0, 0], sizes = [1, 128], strides = [1, 1]} : vector<1x512xf32> to vector<1x128xf32>
    %225 = arith.negf %224 : vector<1x128xf32>
    %226 = math.exp %225 : vector<1x128xf32>
    %cst_53 = arith.constant 1.000000e+00 : f32
    %227 = vector.broadcast %cst_53 : f32 to vector<1x128xf32>
    %228 = arith.addf %227, %226 : vector<1x128xf32>
    %229 = arith.divf %227, %228 : vector<1x128xf32>
    %230 = vector.extract_strided_slice %223 {offsets = [0, 128], sizes = [1, 128], strides = [1, 1]} : vector<1x512xf32> to vector<1x128xf32>
    %231 = arith.negf %230 : vector<1x128xf32>
    %232 = math.exp %231 : vector<1x128xf32>
    %cst_54 = arith.constant 1.000000e+00 : f32
    %233 = vector.broadcast %cst_54 : f32 to vector<1x128xf32>
    %234 = arith.addf %233, %232 : vector<1x128xf32>
    %235 = arith.divf %233, %234 : vector<1x128xf32>
    %236 = vector.extract_strided_slice %223 {offsets = [0, 256], sizes = [1, 128], strides = [1, 1]} : vector<1x512xf32> to vector<1x128xf32>
    %237 = math.tanh %236 : vector<1x128xf32>
    %238 = vector.extract_strided_slice %223 {offsets = [0, 384], sizes = [1, 128], strides = [1, 1]} : vector<1x512xf32> to vector<1x128xf32>
    %239 = arith.negf %238 : vector<1x128xf32>
    %240 = math.exp %239 : vector<1x128xf32>
    %cst_55 = arith.constant 1.000000e+00 : f32
    %241 = vector.broadcast %cst_55 : f32 to vector<1x128xf32>
    %242 = arith.addf %241, %240 : vector<1x128xf32>
    %243 = arith.divf %241, %242 : vector<1x128xf32>
    %244 = arith.mulf %235, %216 : vector<1x128xf32>
    %245 = arith.mulf %229, %237 : vector<1x128xf32>
    %246 = arith.addf %244, %245 : vector<1x128xf32>
    %247 = math.tanh %246 : vector<1x128xf32>
    %248 = arith.mulf %243, %247 : vector<1x128xf32>
    %249 = vector.extract_strided_slice %65 {offsets = [0, 6, 0], sizes = [1, 1, 512], strides = [1, 1, 1]} : vector<1x8x512xf32> to vector<1x1x512xf32>
    %250 = vector.shape_cast %249 : vector<1x1x512xf32> to vector<1x512xf32>
    %251 = arith.truncf %248 : vector<1x128xf32> to vector<1x128xbf16>
    %cst_56 = arith.constant dense<0.000000e+00> : vector<1x512xf32>
    %252 = tpu.matmul %251, %66, %cst_56 {dimension_numbers = #tpu.dot_dimension_numbers<[1], [0], [0], [1], [0, 0, 1, 1], [], []>} : vector<1x128xbf16>, vector<128x512xbf16>, vector<1x512xf32> -> vector<1x512xf32>
    %253 = arith.addf %250, %252 : vector<1x512xf32>
    %254 = vector.extract_strided_slice %253 {offsets = [0, 0], sizes = [1, 128], strides = [1, 1]} : vector<1x512xf32> to vector<1x128xf32>
    %255 = arith.negf %254 : vector<1x128xf32>
    %256 = math.exp %255 : vector<1x128xf32>
    %cst_57 = arith.constant 1.000000e+00 : f32
    %257 = vector.broadcast %cst_57 : f32 to vector<1x128xf32>
    %258 = arith.addf %257, %256 : vector<1x128xf32>
    %259 = arith.divf %257, %258 : vector<1x128xf32>
    %260 = vector.extract_strided_slice %253 {offsets = [0, 128], sizes = [1, 128], strides = [1, 1]} : vector<1x512xf32> to vector<1x128xf32>
    %261 = arith.negf %260 : vector<1x128xf32>
    %262 = math.exp %261 : vector<1x128xf32>
    %cst_58 = arith.constant 1.000000e+00 : f32
    %263 = vector.broadcast %cst_58 : f32 to vector<1x128xf32>
    %264 = arith.addf %263, %262 : vector<1x128xf32>
    %265 = arith.divf %263, %264 : vector<1x128xf32>
    %266 = vector.extract_strided_slice %253 {offsets = [0, 256], sizes = [1, 128], strides = [1, 1]} : vector<1x512xf32> to vector<1x128xf32>
    %267 = math.tanh %266 : vector<1x128xf32>
    %268 = vector.extract_strided_slice %253 {offsets = [0, 384], sizes = [1, 128], strides = [1, 1]} : vector<1x512xf32> to vector<1x128xf32>
    %269 = arith.negf %268 : vector<1x128xf32>
    %270 = math.exp %269 : vector<1x128xf32>
    %cst_59 = arith.constant 1.000000e+00 : f32
    %271 = vector.broadcast %cst_59 : f32 to vector<1x128xf32>
    %272 = arith.addf %271, %270 : vector<1x128xf32>
    %273 = arith.divf %271, %272 : vector<1x128xf32>
    %274 = arith.mulf %265, %246 : vector<1x128xf32>
    %275 = arith.mulf %259, %267 : vector<1x128xf32>
    %276 = arith.addf %274, %275 : vector<1x128xf32>
    %277 = math.tanh %276 : vector<1x128xf32>
    %278 = arith.mulf %273, %277 : vector<1x128xf32>
    %279 = vector.extract_strided_slice %65 {offsets = [0, 7, 0], sizes = [1, 1, 512], strides = [1, 1, 1]} : vector<1x8x512xf32> to vector<1x1x512xf32>
    %280 = vector.shape_cast %279 : vector<1x1x512xf32> to vector<1x512xf32>
    %281 = arith.truncf %278 : vector<1x128xf32> to vector<1x128xbf16>
    %cst_60 = arith.constant dense<0.000000e+00> : vector<1x512xf32>
    %282 = tpu.matmul %281, %66, %cst_60 {dimension_numbers = #tpu.dot_dimension_numbers<[1], [0], [0], [1], [0, 0, 1, 1], [], []>} : vector<1x128xbf16>, vector<128x512xbf16>, vector<1x512xf32> -> vector<1x512xf32>
    %283 = arith.addf %280, %282 : vector<1x512xf32>
    %284 = vector.extract_strided_slice %283 {offsets = [0, 0], sizes = [1, 128], strides = [1, 1]} : vector<1x512xf32> to vector<1x128xf32>
    %285 = arith.negf %284 : vector<1x128xf32>
    %286 = math.exp %285 : vector<1x128xf32>
    %cst_61 = arith.constant 1.000000e+00 : f32
    %287 = vector.broadcast %cst_61 : f32 to vector<1x128xf32>
    %288 = arith.addf %287, %286 : vector<1x128xf32>
    %289 = arith.divf %287, %288 : vector<1x128xf32>
    %290 = vector.extract_strided_slice %283 {offsets = [0, 128], sizes = [1, 128], strides = [1, 1]} : vector<1x512xf32> to vector<1x128xf32>
    %291 = arith.negf %290 : vector<1x128xf32>
    %292 = math.exp %291 : vector<1x128xf32>
    %cst_62 = arith.constant 1.000000e+00 : f32
    %293 = vector.broadcast %cst_62 : f32 to vector<1x128xf32>
    %294 = arith.addf %293, %292 : vector<1x128xf32>
    %295 = arith.divf %293, %294 : vector<1x128xf32>
    %296 = vector.extract_strided_slice %283 {offsets = [0, 256], sizes = [1, 128], strides = [1, 1]} : vector<1x512xf32> to vector<1x128xf32>
    %297 = math.tanh %296 : vector<1x128xf32>
    %298 = vector.extract_strided_slice %283 {offsets = [0, 384], sizes = [1, 128], strides = [1, 1]} : vector<1x512xf32> to vector<1x128xf32>
    %299 = arith.negf %298 : vector<1x128xf32>
    %300 = math.exp %299 : vector<1x128xf32>
    %cst_63 = arith.constant 1.000000e+00 : f32
    %301 = vector.broadcast %cst_63 : f32 to vector<1x128xf32>
    %302 = arith.addf %301, %300 : vector<1x128xf32>
    %303 = arith.divf %301, %302 : vector<1x128xf32>
    %304 = arith.mulf %295, %276 : vector<1x128xf32>
    %305 = arith.mulf %289, %297 : vector<1x128xf32>
    %306 = arith.addf %304, %305 : vector<1x128xf32>
    %307 = math.tanh %306 : vector<1x128xf32>
    %308 = arith.mulf %303, %307 : vector<1x128xf32>
    %309 = tpu.concatenate %98, %128, %158, %188, %218, %248, %278, %308 in 0 : vector<1x128xf32>, vector<1x128xf32>, vector<1x128xf32>, vector<1x128xf32>, vector<1x128xf32>, vector<1x128xf32>, vector<1x128xf32>, vector<1x128xf32> -> vector<8x128xf32>
    %c0_64 = arith.constant 0 : index
    %c0_65 = arith.constant 0 : index
    %310 = vector.load %arg9[%c0_64, %c0_65] : memref<128x1xf32, #tpu.memory_space<vmem>>, vector<128x1xf32>
    %cst_66 = arith.constant dense<0.000000e+00> : vector<8x1xf32>
    %311 = tpu.matmul %309, %310, %cst_66 {dimension_numbers = #tpu.dot_dimension_numbers<[1], [0], [0], [1], [0, 0, 1, 1], [], []>} : vector<8x128xf32>, vector<128x1xf32>, vector<8x1xf32> -> vector<8x1xf32>
    %312 = tpu.transpose %311, [1, 0] : vector<8x1xf32> -> vector<1x8xf32>
    %c0_67 = arith.constant 0 : index
    %c0_68 = arith.constant 0 : index
    %313 = vector.load %arg10[%c0_67, %c0_68] : memref<1x1xf32, #tpu.memory_space<vmem>>, vector<1x1xf32>
    %314 = vector.broadcast %313 : vector<1x1xf32> to vector<1x8xf32>
    %315 = arith.addf %312, %314 : vector<1x8xf32>
    %cst_69 = arith.constant dense<0xFF800000> : vector<1xf32>
    %316 = vector.multi_reduction <maximumf>, %315, %cst_69 [1] : vector<1x8xf32> to vector<1xf32>
    %cst_70 = arith.constant 0xFF800000 : f32
    %317 = vector.broadcast %cst_70 : f32 to vector<1xf32>
    %318 = arith.maximumf %317, %316 : vector<1xf32>
    %319 = vector.shape_cast %318 : vector<1xf32> to vector<1x1xf32>
    %320 = vector.broadcast %319 : vector<1x1xf32> to vector<1x8xf32>
    %321 = arith.subf %315, %320 : vector<1x8xf32>
    %322 = math.exp %321 : vector<1x8xf32>
    %cst_71 = arith.constant dense<0.000000e+00> : vector<1xf32>
    %323 = vector.multi_reduction <add>, %322, %cst_71 [1] : vector<1x8xf32> to vector<1xf32>
    %324 = vector.shape_cast %323 : vector<1xf32> to vector<1x1xf32>
    %325 = vector.broadcast %324 : vector<1x1xf32> to vector<1x8xf32>
    %326 = arith.divf %322, %325 : vector<1x8xf32>
    %cst_72 = arith.constant 0.000000e+00 : f32
    %327 = vector.broadcast %cst_72 : f32 to vector<1x128xf32>
    %328 = vector.extract_strided_slice %326 {offsets = [0, 0], sizes = [1, 1], strides = [1, 1]} : vector<1x8xf32> to vector<1x1xf32>
    %329 = vector.broadcast %328 : vector<1x1xf32> to vector<1x128xf32>
    %330 = arith.mulf %329, %98 : vector<1x128xf32>
    %331 = arith.addf %327, %330 : vector<1x128xf32>
    %332 = vector.extract_strided_slice %326 {offsets = [0, 1], sizes = [1, 1], strides = [1, 1]} : vector<1x8xf32> to vector<1x1xf32>
    %333 = vector.broadcast %332 : vector<1x1xf32> to vector<1x128xf32>
    %334 = arith.mulf %333, %128 : vector<1x128xf32>
    %335 = arith.addf %331, %334 : vector<1x128xf32>
    %336 = vector.extract_strided_slice %326 {offsets = [0, 2], sizes = [1, 1], strides = [1, 1]} : vector<1x8xf32> to vector<1x1xf32>
    %337 = vector.broadcast %336 : vector<1x1xf32> to vector<1x128xf32>
    %338 = arith.mulf %337, %158 : vector<1x128xf32>
    %339 = arith.addf %335, %338 : vector<1x128xf32>
    %340 = vector.extract_strided_slice %326 {offsets = [0, 3], sizes = [1, 1], strides = [1, 1]} : vector<1x8xf32> to vector<1x1xf32>
    %341 = vector.broadcast %340 : vector<1x1xf32> to vector<1x128xf32>
    %342 = arith.mulf %341, %188 : vector<1x128xf32>
    %343 = arith.addf %339, %342 : vector<1x128xf32>
    %344 = vector.extract_strided_slice %326 {offsets = [0, 4], sizes = [1, 1], strides = [1, 1]} : vector<1x8xf32> to vector<1x1xf32>
    %345 = vector.broadcast %344 : vector<1x1xf32> to vector<1x128xf32>
    %346 = arith.mulf %345, %218 : vector<1x128xf32>
    %347 = arith.addf %343, %346 : vector<1x128xf32>
    %348 = vector.extract_strided_slice %326 {offsets = [0, 5], sizes = [1, 1], strides = [1, 1]} : vector<1x8xf32> to vector<1x1xf32>
    %349 = vector.broadcast %348 : vector<1x1xf32> to vector<1x128xf32>
    %350 = arith.mulf %349, %248 : vector<1x128xf32>
    %351 = arith.addf %347, %350 : vector<1x128xf32>
    %352 = vector.extract_strided_slice %326 {offsets = [0, 6], sizes = [1, 1], strides = [1, 1]} : vector<1x8xf32> to vector<1x1xf32>
    %353 = vector.broadcast %352 : vector<1x1xf32> to vector<1x128xf32>
    %354 = arith.mulf %353, %278 : vector<1x128xf32>
    %355 = arith.addf %351, %354 : vector<1x128xf32>
    %356 = vector.extract_strided_slice %326 {offsets = [0, 7], sizes = [1, 1], strides = [1, 1]} : vector<1x8xf32> to vector<1x1xf32>
    %357 = vector.broadcast %356 : vector<1x1xf32> to vector<1x128xf32>
    %358 = arith.mulf %357, %308 : vector<1x128xf32>
    %359 = arith.addf %355, %358 : vector<1x128xf32>
    %360 = arith.truncf %359 : vector<1x128xf32> to vector<1x128xbf16>
    %c0_73 = arith.constant 0 : index
    %c0_74 = arith.constant 0 : index
    %361 = vector.load %arg11[%c0_73, %c0_74] : memref<128x128xbf16, #tpu.memory_space<vmem>>, vector<128x128xbf16>
    %cst_75 = arith.constant dense<0.000000e+00> : vector<1x128xf32>
    %362 = tpu.matmul %360, %361, %cst_75 {dimension_numbers = #tpu.dot_dimension_numbers<[1], [0], [0], [1], [0, 0, 1, 1], [], []>} : vector<1x128xbf16>, vector<128x128xbf16>, vector<1x128xf32> -> vector<1x128xf32>
    %c0_76 = arith.constant 0 : index
    %c0_77 = arith.constant 0 : index
    %363 = vector.load %arg12[%c0_76, %c0_77] : memref<1x128xf32, #tpu.memory_space<vmem>>, vector<1x128xf32>
    %364 = arith.addf %362, %363 : vector<1x128xf32>
    %365 = math.tanh %364 : vector<1x128xf32>
    %366 = arith.truncf %365 : vector<1x128xf32> to vector<1x128xbf16>
    %c0_78 = arith.constant 0 : index
    %c0_79 = arith.constant 0 : index
    %c0_80 = arith.constant 0 : index
    %367 = vector.load %arg13[%c0_78, %c0_79, %c0_80] : memref<10x128x128xbf16, #tpu.memory_space<vmem>>, vector<1x128x128xbf16>
    %368 = vector.shape_cast %367 : vector<1x128x128xbf16> to vector<128x128xbf16>
    %cst_81 = arith.constant dense<0.000000e+00> : vector<1x128xf32>
    %369 = tpu.matmul %366, %368, %cst_81 {dimension_numbers = #tpu.dot_dimension_numbers<[1], [0], [0], [1], [0, 0, 1, 1], [], []>} : vector<1x128xbf16>, vector<128x128xbf16>, vector<1x128xf32> -> vector<1x128xf32>
    %c0_82 = arith.constant 0 : index
    %c0_83 = arith.constant 0 : index
    %c0_84 = arith.constant 0 : index
    %370 = vector.load %arg14[%c0_82, %c0_83, %c0_84] : memref<10x1x128xf32, #tpu.memory_space<vmem>>, vector<1x1x128xf32>
    %371 = vector.shape_cast %370 : vector<1x1x128xf32> to vector<1x128xf32>
    %372 = arith.addf %369, %371 : vector<1x128xf32>
    %373 = math.tanh %372 : vector<1x128xf32>
    %374 = arith.truncf %373 : vector<1x128xf32> to vector<1x128xbf16>
    %c1 = arith.constant 1 : index
    %c0_85 = arith.constant 0 : index
    %c0_86 = arith.constant 0 : index
    %375 = vector.load %arg13[%c1, %c0_85, %c0_86] : memref<10x128x128xbf16, #tpu.memory_space<vmem>>, vector<1x128x128xbf16>
    %376 = vector.shape_cast %375 : vector<1x128x128xbf16> to vector<128x128xbf16>
    %cst_87 = arith.constant dense<0.000000e+00> : vector<1x128xf32>
    %377 = tpu.matmul %374, %376, %cst_87 {dimension_numbers = #tpu.dot_dimension_numbers<[1], [0], [0], [1], [0, 0, 1, 1], [], []>} : vector<1x128xbf16>, vector<128x128xbf16>, vector<1x128xf32> -> vector<1x128xf32>
    %c1_88 = arith.constant 1 : index
    %c0_89 = arith.constant 0 : index
    %c0_90 = arith.constant 0 : index
    %378 = vector.load %arg14[%c1_88, %c0_89, %c0_90] : memref<10x1x128xf32, #tpu.memory_space<vmem>>, vector<1x1x128xf32>
    %379 = vector.shape_cast %378 : vector<1x1x128xf32> to vector<1x128xf32>
    %380 = arith.addf %377, %379 : vector<1x128xf32>
    %381 = math.tanh %380 : vector<1x128xf32>
    %382 = arith.truncf %381 : vector<1x128xf32> to vector<1x128xbf16>
    %c2 = arith.constant 2 : index
    %c0_91 = arith.constant 0 : index
    %c0_92 = arith.constant 0 : index
    %383 = vector.load %arg13[%c2, %c0_91, %c0_92] : memref<10x128x128xbf16, #tpu.memory_space<vmem>>, vector<1x128x128xbf16>
    %384 = vector.shape_cast %383 : vector<1x128x128xbf16> to vector<128x128xbf16>
    %cst_93 = arith.constant dense<0.000000e+00> : vector<1x128xf32>
    %385 = tpu.matmul %382, %384, %cst_93 {dimension_numbers = #tpu.dot_dimension_numbers<[1], [0], [0], [1], [0, 0, 1, 1], [], []>} : vector<1x128xbf16>, vector<128x128xbf16>, vector<1x128xf32> -> vector<1x128xf32>
    %c2_94 = arith.constant 2 : index
    %c0_95 = arith.constant 0 : index
    %c0_96 = arith.constant 0 : index
    %386 = vector.load %arg14[%c2_94, %c0_95, %c0_96] : memref<10x1x128xf32, #tpu.memory_space<vmem>>, vector<1x1x128xf32>
    %387 = vector.shape_cast %386 : vector<1x1x128xf32> to vector<1x128xf32>
    %388 = arith.addf %385, %387 : vector<1x128xf32>
    %389 = math.tanh %388 : vector<1x128xf32>
    %390 = arith.truncf %389 : vector<1x128xf32> to vector<1x128xbf16>
    %c3 = arith.constant 3 : index
    %c0_97 = arith.constant 0 : index
    %c0_98 = arith.constant 0 : index
    %391 = vector.load %arg13[%c3, %c0_97, %c0_98] : memref<10x128x128xbf16, #tpu.memory_space<vmem>>, vector<1x128x128xbf16>
    %392 = vector.shape_cast %391 : vector<1x128x128xbf16> to vector<128x128xbf16>
    %cst_99 = arith.constant dense<0.000000e+00> : vector<1x128xf32>
    %393 = tpu.matmul %390, %392, %cst_99 {dimension_numbers = #tpu.dot_dimension_numbers<[1], [0], [0], [1], [0, 0, 1, 1], [], []>} : vector<1x128xbf16>, vector<128x128xbf16>, vector<1x128xf32> -> vector<1x128xf32>
    %c3_100 = arith.constant 3 : index
    %c0_101 = arith.constant 0 : index
    %c0_102 = arith.constant 0 : index
    %394 = vector.load %arg14[%c3_100, %c0_101, %c0_102] : memref<10x1x128xf32, #tpu.memory_space<vmem>>, vector<1x1x128xf32>
    %395 = vector.shape_cast %394 : vector<1x1x128xf32> to vector<1x128xf32>
    %396 = arith.addf %393, %395 : vector<1x128xf32>
    %397 = math.tanh %396 : vector<1x128xf32>
    %398 = arith.truncf %397 : vector<1x128xf32> to vector<1x128xbf16>
    %c4 = arith.constant 4 : index
    %c0_103 = arith.constant 0 : index
    %c0_104 = arith.constant 0 : index
    %399 = vector.load %arg13[%c4, %c0_103, %c0_104] : memref<10x128x128xbf16, #tpu.memory_space<vmem>>, vector<1x128x128xbf16>
    %400 = vector.shape_cast %399 : vector<1x128x128xbf16> to vector<128x128xbf16>
    %cst_105 = arith.constant dense<0.000000e+00> : vector<1x128xf32>
    %401 = tpu.matmul %398, %400, %cst_105 {dimension_numbers = #tpu.dot_dimension_numbers<[1], [0], [0], [1], [0, 0, 1, 1], [], []>} : vector<1x128xbf16>, vector<128x128xbf16>, vector<1x128xf32> -> vector<1x128xf32>
    %c4_106 = arith.constant 4 : index
    %c0_107 = arith.constant 0 : index
    %c0_108 = arith.constant 0 : index
    %402 = vector.load %arg14[%c4_106, %c0_107, %c0_108] : memref<10x1x128xf32, #tpu.memory_space<vmem>>, vector<1x1x128xf32>
    %403 = vector.shape_cast %402 : vector<1x1x128xf32> to vector<1x128xf32>
    %404 = arith.addf %401, %403 : vector<1x128xf32>
    %405 = math.tanh %404 : vector<1x128xf32>
    %406 = arith.truncf %405 : vector<1x128xf32> to vector<1x128xbf16>
    %c5 = arith.constant 5 : index
    %c0_109 = arith.constant 0 : index
    %c0_110 = arith.constant 0 : index
    %407 = vector.load %arg13[%c5, %c0_109, %c0_110] : memref<10x128x128xbf16, #tpu.memory_space<vmem>>, vector<1x128x128xbf16>
    %408 = vector.shape_cast %407 : vector<1x128x128xbf16> to vector<128x128xbf16>
    %cst_111 = arith.constant dense<0.000000e+00> : vector<1x128xf32>
    %409 = tpu.matmul %406, %408, %cst_111 {dimension_numbers = #tpu.dot_dimension_numbers<[1], [0], [0], [1], [0, 0, 1, 1], [], []>} : vector<1x128xbf16>, vector<128x128xbf16>, vector<1x128xf32> -> vector<1x128xf32>
    %c5_112 = arith.constant 5 : index
    %c0_113 = arith.constant 0 : index
    %c0_114 = arith.constant 0 : index
    %410 = vector.load %arg14[%c5_112, %c0_113, %c0_114] : memref<10x1x128xf32, #tpu.memory_space<vmem>>, vector<1x1x128xf32>
    %411 = vector.shape_cast %410 : vector<1x1x128xf32> to vector<1x128xf32>
    %412 = arith.addf %409, %411 : vector<1x128xf32>
    %413 = math.tanh %412 : vector<1x128xf32>
    %414 = arith.truncf %413 : vector<1x128xf32> to vector<1x128xbf16>
    %c6 = arith.constant 6 : index
    %c0_115 = arith.constant 0 : index
    %c0_116 = arith.constant 0 : index
    %415 = vector.load %arg13[%c6, %c0_115, %c0_116] : memref<10x128x128xbf16, #tpu.memory_space<vmem>>, vector<1x128x128xbf16>
    %416 = vector.shape_cast %415 : vector<1x128x128xbf16> to vector<128x128xbf16>
    %cst_117 = arith.constant dense<0.000000e+00> : vector<1x128xf32>
    %417 = tpu.matmul %414, %416, %cst_117 {dimension_numbers = #tpu.dot_dimension_numbers<[1], [0], [0], [1], [0, 0, 1, 1], [], []>} : vector<1x128xbf16>, vector<128x128xbf16>, vector<1x128xf32> -> vector<1x128xf32>
    %c6_118 = arith.constant 6 : index
    %c0_119 = arith.constant 0 : index
    %c0_120 = arith.constant 0 : index
    %418 = vector.load %arg14[%c6_118, %c0_119, %c0_120] : memref<10x1x128xf32, #tpu.memory_space<vmem>>, vector<1x1x128xf32>
    %419 = vector.shape_cast %418 : vector<1x1x128xf32> to vector<1x128xf32>
    %420 = arith.addf %417, %419 : vector<1x128xf32>
    %421 = math.tanh %420 : vector<1x128xf32>
    %422 = arith.truncf %421 : vector<1x128xf32> to vector<1x128xbf16>
    %c7 = arith.constant 7 : index
    %c0_121 = arith.constant 0 : index
    %c0_122 = arith.constant 0 : index
    %423 = vector.load %arg13[%c7, %c0_121, %c0_122] : memref<10x128x128xbf16, #tpu.memory_space<vmem>>, vector<1x128x128xbf16>
    %424 = vector.shape_cast %423 : vector<1x128x128xbf16> to vector<128x128xbf16>
    %cst_123 = arith.constant dense<0.000000e+00> : vector<1x128xf32>
    %425 = tpu.matmul %422, %424, %cst_123 {dimension_numbers = #tpu.dot_dimension_numbers<[1], [0], [0], [1], [0, 0, 1, 1], [], []>} : vector<1x128xbf16>, vector<128x128xbf16>, vector<1x128xf32> -> vector<1x128xf32>
    %c7_124 = arith.constant 7 : index
    %c0_125 = arith.constant 0 : index
    %c0_126 = arith.constant 0 : index
    %426 = vector.load %arg14[%c7_124, %c0_125, %c0_126] : memref<10x1x128xf32, #tpu.memory_space<vmem>>, vector<1x1x128xf32>
    %427 = vector.shape_cast %426 : vector<1x1x128xf32> to vector<1x128xf32>
    %428 = arith.addf %425, %427 : vector<1x128xf32>
    %429 = math.tanh %428 : vector<1x128xf32>
    %430 = arith.truncf %429 : vector<1x128xf32> to vector<1x128xbf16>
    %c8 = arith.constant 8 : index
    %c0_127 = arith.constant 0 : index
    %c0_128 = arith.constant 0 : index
    %431 = vector.load %arg13[%c8, %c0_127, %c0_128] : memref<10x128x128xbf16, #tpu.memory_space<vmem>>, vector<1x128x128xbf16>
    %432 = vector.shape_cast %431 : vector<1x128x128xbf16> to vector<128x128xbf16>
    %cst_129 = arith.constant dense<0.000000e+00> : vector<1x128xf32>
    %433 = tpu.matmul %430, %432, %cst_129 {dimension_numbers = #tpu.dot_dimension_numbers<[1], [0], [0], [1], [0, 0, 1, 1], [], []>} : vector<1x128xbf16>, vector<128x128xbf16>, vector<1x128xf32> -> vector<1x128xf32>
    %c8_130 = arith.constant 8 : index
    %c0_131 = arith.constant 0 : index
    %c0_132 = arith.constant 0 : index
    %434 = vector.load %arg14[%c8_130, %c0_131, %c0_132] : memref<10x1x128xf32, #tpu.memory_space<vmem>>, vector<1x1x128xf32>
    %435 = vector.shape_cast %434 : vector<1x1x128xf32> to vector<1x128xf32>
    %436 = arith.addf %433, %435 : vector<1x128xf32>
    %437 = math.tanh %436 : vector<1x128xf32>
    %438 = arith.truncf %437 : vector<1x128xf32> to vector<1x128xbf16>
    %c9 = arith.constant 9 : index
    %c0_133 = arith.constant 0 : index
    %c0_134 = arith.constant 0 : index
    %439 = vector.load %arg13[%c9, %c0_133, %c0_134] : memref<10x128x128xbf16, #tpu.memory_space<vmem>>, vector<1x128x128xbf16>
    %440 = vector.shape_cast %439 : vector<1x128x128xbf16> to vector<128x128xbf16>
    %cst_135 = arith.constant dense<0.000000e+00> : vector<1x128xf32>
    %441 = tpu.matmul %438, %440, %cst_135 {dimension_numbers = #tpu.dot_dimension_numbers<[1], [0], [0], [1], [0, 0, 1, 1], [], []>} : vector<1x128xbf16>, vector<128x128xbf16>, vector<1x128xf32> -> vector<1x128xf32>
    %c9_136 = arith.constant 9 : index
    %c0_137 = arith.constant 0 : index
    %c0_138 = arith.constant 0 : index
    %442 = vector.load %arg14[%c9_136, %c0_137, %c0_138] : memref<10x1x128xf32, #tpu.memory_space<vmem>>, vector<1x1x128xf32>
    %443 = vector.shape_cast %442 : vector<1x1x128xf32> to vector<1x128xf32>
    %444 = arith.addf %441, %443 : vector<1x128xf32>
    %445 = math.tanh %444 : vector<1x128xf32>
    %446 = arith.truncf %445 : vector<1x128xf32> to vector<1x128xbf16>
    %c0_139 = arith.constant 0 : index
    %c0_140 = arith.constant 0 : index
    %447 = vector.load %arg15[%c0_139, %c0_140] : memref<128x128xbf16, #tpu.memory_space<vmem>>, vector<128x128xbf16>
    %cst_141 = arith.constant dense<0.000000e+00> : vector<1x128xf32>
    %448 = tpu.matmul %446, %447, %cst_141 {dimension_numbers = #tpu.dot_dimension_numbers<[1], [0], [0], [1], [0, 0, 1, 1], [], []>} : vector<1x128xbf16>, vector<128x128xbf16>, vector<1x128xf32> -> vector<1x128xf32>
    %c0_142 = arith.constant 0 : index
    %c0_143 = arith.constant 0 : index
    %449 = vector.load %arg16[%c0_142, %c0_143] : memref<1x128xf32, #tpu.memory_space<vmem>>, vector<1x128xf32>
    %450 = arith.addf %448, %449 : vector<1x128xf32>
    %451 = arith.negf %450 : vector<1x128xf32>
    %452 = math.exp %451 : vector<1x128xf32>
    %cst_144 = arith.constant 1.000000e+00 : f32
    %453 = vector.broadcast %cst_144 : f32 to vector<1x128xf32>
    %454 = arith.addf %453, %452 : vector<1x128xf32>
    %455 = arith.divf %453, %454 : vector<1x128xf32>
    %456 = vector.shape_cast %455 : vector<1x128xf32> to vector<1x1x128xf32>
    %c0_145 = arith.constant 0 : index
    %c0_146 = arith.constant 0 : index
    %c0_147 = arith.constant 0 : index
    %457 = vector.load %arg17[%c0_145, %c0_146, %c0_147] : memref<1x1x128xf32, #tpu.memory_space<vmem>>, vector<1x1x128xf32>
    tpu.vector_store %arg17[%c0_145, %c0_146, %c0_147], %456 {strides = array<i32>} : memref<1x1x128xf32, #tpu.memory_space<vmem>>, vector<1x1x128xf32>,
    return
  }
  func.func @transform_0(%arg0: i32) -> (i32, i32, i32) {
    %c0_i32 = arith.constant 0 : i32
    %c0_i32_0 = arith.constant 0 : i32
    %c0_i32_1 = arith.constant 0 : i32
    return %arg0, %c0_i32, %c0_i32_0 : i32, i32, i32
  }
  func.func @transform_1(%arg0: i32) -> (i32, i32) {
    %c0_i32 = arith.constant 0 : i32
    %c0_i32_0 = arith.constant 0 : i32
    %c0_i32_1 = arith.constant 0 : i32
    return %c0_i32, %c0_i32_0 : i32, i32
  }
  func.func @transform_2(%arg0: i32) -> (i32, i32) {
    %c0_i32 = arith.constant 0 : i32
    %c0_i32_0 = arith.constant 0 : i32
    %c0_i32_1 = arith.constant 0 : i32
    return %c0_i32, %c0_i32_0 : i32, i32
  }
  func.func @transform_3(%arg0: i32) -> (i32, i32) {
    %c0_i32 = arith.constant 0 : i32
    %c0_i32_0 = arith.constant 0 : i32
    %c0_i32_1 = arith.constant 0 : i32
    return %c0_i32, %c0_i32_0 : i32, i32
  }
  func.func @transform_4(%arg0: i32) -> (i32, i32) {
    %c0_i32 = arith.constant 0 : i32
    %c0_i32_0 = arith.constant 0 : i32
    %c0_i32_1 = arith.constant 0 : i32
    return %c0_i32, %c0_i32_0 : i32, i32
  }
  func.func @transform_5(%arg0: i32) -> (i32, i32) {
    %c0_i32 = arith.constant 0 : i32
    %c0_i32_0 = arith.constant 0 : i32
    %c0_i32_1 = arith.constant 0 : i32
    return %c0_i32, %c0_i32_0 : i32, i32
  }
  func.func @transform_6(%arg0: i32) -> (i32, i32) {
    %c0_i32 = arith.constant 0 : i32
    %c0_i32_0 = arith.constant 0 : i32
    %c0_i32_1 = arith.constant 0 : i32
    return %c0_i32, %c0_i32_0 : i32, i32
  }
  func.func @transform_7(%arg0: i32) -> (i32, i32) {
    %c0_i32 = arith.constant 0 : i32
    %c0_i32_0 = arith.constant 0 : i32
    %c0_i32_1 = arith.constant 0 : i32
    return %c0_i32, %c0_i32_0 : i32, i32
  }
  func.func @transform_8(%arg0: i32) -> (i32, i32) {
    %c0_i32 = arith.constant 0 : i32
    %c0_i32_0 = arith.constant 0 : i32
    %c0_i32_1 = arith.constant 0 : i32
    return %c0_i32, %c0_i32_0 : i32, i32
  }
  func.func @transform_9(%arg0: i32) -> (i32, i32) {
    %c0_i32 = arith.constant 0 : i32
    %c0_i32_0 = arith.constant 0 : i32
    %c0_i32_1 = arith.constant 0 : i32
    return %c0_i32, %c0_i32_0 : i32, i32
  }
  func.func @transform_10(%arg0: i32) -> (i32, i32) {
    %c0_i32 = arith.constant 0 : i32
    %c0_i32_0 = arith.constant 0 : i32
    %c0_i32_1 = arith.constant 0 : i32
    return %c0_i32, %c0_i32_0 : i32, i32
  }
  func.func @transform_11(%arg0: i32) -> (i32, i32) {
    %c0_i32 = arith.constant 0 : i32
    %c0_i32_0 = arith.constant 0 : i32
    %c0_i32_1 = arith.constant 0 : i32
    return %c0_i32, %c0_i32_0 : i32, i32
  }
  func.func @transform_12(%arg0: i32) -> (i32, i32, i32) {
    %c0_i32 = arith.constant 0 : i32
    %c0_i32_0 = arith.constant 0 : i32
    %c0_i32_1 = arith.constant 0 : i32
    %c0_i32_2 = arith.constant 0 : i32
    return %c0_i32, %c0_i32_0, %c0_i32_1 : i32, i32, i32
  }
  func.func @transform_13(%arg0: i32) -> (i32, i32, i32) {
    %c0_i32 = arith.constant 0 : i32
    %c0_i32_0 = arith.constant 0 : i32
    %c0_i32_1 = arith.constant 0 : i32
    %c0_i32_2 = arith.constant 0 : i32
    return %c0_i32, %c0_i32_0, %c0_i32_1 : i32, i32, i32
  }
  func.func @transform_14(%arg0: i32) -> (i32, i32) {
    %c0_i32 = arith.constant 0 : i32
    %c0_i32_0 = arith.constant 0 : i32
    %c0_i32_1 = arith.constant 0 : i32
    return %c0_i32, %c0_i32_0 : i32, i32
  }
  func.func @transform_15(%arg0: i32) -> (i32, i32) {
    %c0_i32 = arith.constant 0 : i32
    %c0_i32_0 = arith.constant 0 : i32
    %c0_i32_1 = arith.constant 0 : i32
    return %c0_i32, %c0_i32_0 : i32, i32
  }
  func.func @transform_16(%arg0: i32) -> (i32, i32, i32) {
    %c0_i32 = arith.constant 0 : i32
    %c0_i32_0 = arith.constant 0 : i32
    %c0_i32_1 = arith.constant 0 : i32
    return %arg0, %c0_i32, %c0_i32_0 : i32, i32, i32
  }
}

</mosaic_0001>

<bundles_post_ra>
// kernel: vanilla_layered_extractors_forward.1
= control target key start
LH: loop header
LB: loop body
LE: loop exit
PB: predicated region body
PF: predicated region fallthrough
CT: control target
= control target key end

     0   :  { %s6241_s0 = inlined_call_operand.vmem [shape: f32[2,8,4], index: 0, kind: input, shape index: {}]   ;;  %s6242_s1 = inlined_call_operand.vmem [shape: f32[4,384], index: 1, kind: input, shape index: {}]   ;;  %s6243_s2 = inlined_call_operand.vmem [shape: f32[1,128], index: 2, kind: input, shape index: {}]   ;;  %s6244_s3 = inlined_call_operand.vmem [shape: bf16[128,128], index: 3, kind: input, shape index: {}]   ;;  %s6245_s4 = inlined_call_operand.vmem [shape: f32[1,128], index: 4, kind: input, shape index: {}]   ;;  %s6246_s5 = inlined_call_operand.vmem [shape: bf16[128,512], index: 5, kind: input, shape index: {}]   ;;  %s6247_s6 = inlined_call_operand.vmem [shape: f32[1,512], index: 6, kind: input, shape index: {}]   ;;  %s6248_s7 = inlined_call_operand.hbm [shape: bf16[128,512], index: 7, kind: input, shape index: {}]   ;;  %s6249_s8 = inlined_call_operand.vmem [shape: f32[128,1], index: 8, kind: input, shape index: {}]   ;;  %s6250_s9 = inlined_call_operand.<no memory space> [shape: f32[1,1], index: 9, kind: input, shape index: {}]   ;;  %s6251_s10 = inlined_call_operand.hbm [shape: bf16[128,128], index: 10, kind: input, shape index: {}]   ;;  %s6252_s11 = inlined_call_operand.vmem [shape: f32[1,128], index: 11, kind: input, shape index: {}]   ;;  %s6253_s12 = inlined_call_operand.hbm [shape: bf16[10,128,128], index: 12, kind: input, shape index: {}]   ;;  %s6254_s13 = inlined_call_operand.vmem [shape: f32[10,1,128], index: 13, kind: input, shape index: {}]   ;;  %s6255_s14 = inlined_call_operand.vmem [shape: bf16[128,128], index: 14, kind: input, shape index: {}]   ;;  %s6256_s15 = inlined_call_operand.vmem [shape: f32[1,128], index: 15, kind: input, shape index: {}]   ;;  %s6257_s16 = inlined_call_operand.vmem [shape: f32[2,1,128], index: 16, kind: output, shape index: {}]  }
   0x1   :  { %6258 = sst [smem:[#allocation10_spill]] %s6241_s0  ;;  %v21_v0 = vstv %s6250_s9 }
   0x2   :  { %22 = vst [vmem:[#allocation2] sm:$0x1] %v21_v0 }
   0x3   :  { %23 = vsyncpa [#allocation4], 0 }
   0x4   :  { %24 = vsyncpa [#allocation6], 0  ;;  %s5303_s23 = smov 0  }
   0x5 LB: > { %s5198_s24 = smov [#allocation5]   ;;  %s5309_s26 = sadd.s32 4294967295, %s5196_s23   ;;  %s5196_s23 = sphi %s5303_s23, %s30_s23  }
   0x6   : > { %s451_s25 = sshll.u32 %s5198_s24, 4  ;;  %p3989_p0 = scmp.ge.s32.totalorder %s5196_s23, 1  ;;  %s452_s25 = int_to_ptr.vmem [resolvable:$true] %s451_s25 }
   0x7   : > { %p402_p1 = scmp.lt.s32.totalorder %s5196_s23, 3  ;;  %p4668_p2 = scmp.eq.s32.totalorder %s5309_s26, 0 }
   0x8   : > { %s5199_s27 = smov [#allocation3]   ;;  %s5200_s30 = smov [#allocation7]  }
   0x9   : > { %p5314_p3 = pnand %p3989_p0, %p402_p1  ;;  %s432_s28 = sshll.u32 %s5199_s27, 4  ;;  %s5320_s28 = int_to_ptr.vmem [resolvable:$true] %s432_s28 }
   0xa   : > { %s5328_s0 = sshll.u32 %s5200_s30, 4  ;;  %s5115_s17 = scalar_lea.vmem %s452_s25, 1024  ;;  %s468_s0 = int_to_ptr.vmem [resolvable:$true] %s5328_s0 }
   0xb   : > { %p4658_p4 = pneg %p5314_p3  ;;  %p5116_p7 = scmp.ne.s32.totalorder %s452_s25, %s5115_s17 }
   0xc   : > { %p5123_p10 = scmp.lt.s32.totalorder %s452_s25, %s452_s25  ;;  %p5124_p11 = scmp.lt.s32.totalorder %s5115_s17, %s5115_s17 }
   0xd   : > { %p5324_p5 = pnand %p4668_p2, %p4658_p4 }
   0xe   : > { %p5125_p12 = por %p5124_p11, %p5123_p10 }
   0xf   : > { %p5106_p6 = pneg %p5324_p5 }
  0x11   : > { %p5118_p8 = pnand %p5116_p7, %p5106_p6 }
  0x13   : > { %p5119_p9 = pneg %p5118_p8 }
  0x15   : > { %p5126_p13 = pnand %p5125_p12, %p5119_p9 }
  0x17   : > { %5129 = shalt.err (!%p5126_p13)
}
  0x18   : > { %s5201_s18 = smov 64   ;;  %s5202_s19 = smov 4  }
  0x19   : > { %4664 = dma.hbm_to_vmem [thread:$0]  (!%p5324_p5), %s6251_s10, 1024, %s452_s25, [#allocation6], %s5201_s18, %s5201_s18, %s5202_s19  }
  0x1a   : > { %s5141_s22 = scalar_lea.vmem %s5320_s28, 4096  ;;  %p5149_p7 = scmp.lt.s32.totalorder %s5320_s28, %s5320_s28 }
  0x1b   : > { %p5142_p0 = scmp.ne.s32.totalorder %s5320_s28, %s5141_s22  ;;  %p5150_p8 = scmp.lt.s32.totalorder %s5141_s22, %s5141_s22 }
  0x1d   : > { %p5144_p1 = pnand %p5142_p0, %p5106_p6  ;;  %p5151_p9 = por %p5150_p8, %p5149_p7 }
  0x1f   : > { %p5145_p4 = pneg %p5144_p1 }
  0x21   : > { %p5152_p10 = pnand %p5151_p9, %p5145_p4 }
  0x23   : > { %5155 = shalt.err (!%p5152_p10)
}
  0x24   : > { %s5203_s24 = smov 256   ;;  %s5204_s27 = smov 16  }
  0x25   : > { %4661 = dma.hbm_to_vmem [thread:$0]  (!%p5324_p5), %s6248_s7, 4096, %s5320_s28, [#allocation4], %s5203_s24, %s5203_s24, %s5204_s27  }
  0x26   : > { %s5167_s17 = scalar_lea.vmem %s468_s0, 10240  ;;  %p5175_p0 = scmp.lt.s32.totalorder %s468_s0, %s468_s0 }
  0x27   : > { %p5168_p11 = scmp.ne.s32.totalorder %s468_s0, %s5167_s17  ;;  %p5176_p1 = scmp.lt.s32.totalorder %s5167_s17, %s5167_s17 }
  0x29   : > { %p5170_p12 = pnand %p5168_p11, %p5106_p6  ;;  %p5177_p4 = por %p5176_p1, %p5175_p0 }
  0x2b   : > { %p5171_p13 = pneg %p5170_p12 }
  0x2d   : > { %p5178_p7 = pnand %p5177_p4, %p5171_p13 }
  0x2f   : > { %5181 = shalt.err (!%p5178_p7)
}
  0x30   : > { %4667 = dma.hbm_to_vmem [thread:$0]  (!%p5324_p5), %s6253_s12, 10240, %s468_s0, [#allocation6], %s5201_s18, %s5201_s18, %s5202_s19  }
  0x31   : > { %499 = sbr.rel (%p5314_p3) target bundleno = 6180 (0x1824), region = 84 }
  0x36   : > { %5187 = dma.done.wait (%p4668_p2), [#allocation4], 4096  }
  0x37   : > { %5189 = vsyncadd (%p4668_p2), [#allocation4], 4294963200 }
  0x38   : > { %5191 = dma.done.wait (%p4668_p2), [#allocation6], 11264  }
  0x39   : > { %5193 = vsyncadd (%p4668_p2), [#allocation6], 4294956032  ;;  %p554_p6 = scmp.lt.s32.totalorder %s5309_s26, 1  ;;  %v5205_v1 = vmov 0.0   ;;  %vm5206_vm0 = vmmov 0   ;;  %vm572_vm1 = vcmask 1043456   ;;  %v720_v14 = vlaneseq }
  0x3a   : > { %4346 = vmatprep.subr.mxu1 %v5205_v1  ;;  %643 = vmatprep.mubr.f32.mxu0 %v5205_v1  ;;  %s6261_s0 = sld [smem:[#allocation10_spill]]  ;;  %vm568_vm2 = vcmask 31744   ;;  %v563_v2 = vld [vmem:[%s6242_s1] sm:$0xff]  ;;  %v564_v3 = vld [vmem:[%s6242_s1 + $0x8] sm:$0xf]  ;;  %v4710_v6 = vld [vmem:[%s6244_s3 + $0x38] sm:$0xff]  }
  0x3b   : > { %4348 = vmatprep.mubr.msk.f32.mxu1 %vm5206_vm0, %v5205_v1  ;;  %s6263_s26 = smov (!%p554_p6, %s5309_s26), 1  ;;  %v567_v5 = vcombine.high %v563_v2, %v563_v2  ;;  %4347 = vmatpush3.msk.msra.mxu1 %vm572_vm1, %v564_v3  ;;  %v4711_v7 = vld [vmem:[%s6244_s3 + $0x30] sm:$0xff]   ;;  %v4712_v8 = vld [vmem:[%s6244_s3 + $0x28] sm:$0xff]   ;;  %v4713_v9 = vld [vmem:[%s6244_s3 + $0x20] sm:$0xff]   ;;  %v5427_v15 = vshrl.u32 %v720_v14, 7  ;;  %vm2377_vm5 = vcmask 1040384  }
  0x3c   : > { %s3998_s9 = sshll.u32 %s6263_s26, 3  ;;  %v4714_v10 = vld [vmem:[%s6244_s3 + $0x18] sm:$0xff]   ;;  %v4715_v11 = vld [vmem:[%s6244_s3 + $0x10] sm:$0xff]   ;;  %v4716_v12 = vld [vmem:[%s6244_s3 + $0x8] sm:$0xff]   ;;  %vm2379_vm6 = vcmask 1041408   ;;  %vm2381_vm7 = vcmask 1042432   ;;  %s560_s28 = scalar_lea.vmem %s6257_s16, %s6263_s26 }
  0x3d   : > { %3999 = vmatprep.subr.msk.mxu0 %vm572_vm1, %v567_v5  ;;  %v4717_v13 = vld [vmem:[%s6244_s3] sm:$0xff]   ;;  %v726_v16 = vand.u32 7, %v5427_v15  ;;  %v4721_v39 = vld [vmem:[%s6246_s5 + $0xe8] ss:$16 sps:$4 sm:$0xff]   ;;  %v4723_v40 = vld [vmem:[%s6246_s5 + $0xec] ss:$16 sps:$4 sm:$0xff]  }
  0x3e   : > { %4000 = vmatpush1.msk.msra.mxu0 %vm572_vm1, %v563_v2  ;;  %v4004_v26 = vld [vmem:[%s6243_s2] ss:$0 sm:$0xff]  ;;  %v4720_v38 = vld [vmem:[%s6246_s5 + $0xe4] ss:$16 sps:$4 sm:$0xff]   ;;  %v4729_v42 = vld [vmem:[%s6246_s5 + $0xcc] ss:$16 sps:$4 sm:$0xff]  }
  0x3f   : > { %4351 = vmatprep.subr.bf16.mxu0 %v5205_v1  ;;  %vm737_vm3 = vcmp.eq.s32.totalorder %v726_v16, 7  ;;  %vm734_vm4 = vcmp.eq.s32.totalorder %v726_v16, 0  ;;  %v4005_v31 = vld [vmem:[%s6245_s4] ss:$0 sm:$0xff]  ;;  %v4726_v41 = vld [vmem:[%s6246_s5 + $0xc4] ss:$16 sps:$4 sm:$0xff]   ;;  %1088 = vmatprep.subr.bf16.mxu1 %v4720_v38 }
  0x40   : > { %s557_s18 = scalar_lea.vmem %s6261_s0, %s3998_s9  ;;  %v4718_v37 = vld [vmem:[%s6246_s5 + $0xe0] ss:$16 sps:$4 sm:$0xff]   ;;  %v4727_v44 = vld [vmem:[%s6246_s5 + $0xc8] ss:$16 sps:$4 sm:$0xff]   ;;  %v4732_v45 = vld [vmem:[%s6246_s5 + $0xa4] ss:$16 sps:$4 sm:$0xff]  }
  0x41   : > { %v562_v4 = vld [vmem:[%s557_s18] sm:$0xff]  ;;  %v4735_v46 = vld [vmem:[%s6246_s5 + $0xac] ss:$16 sps:$4 sm:$0xff]   ;;  %v4733_v48 = vld [vmem:[%s6246_s5 + $0xa8] ss:$16 sps:$4 sm:$0xff]   ;;  %vm2384_vm8 = vcmask 1044480  }
  0x42   : > { %4349 = vmatmul.mubr.msk.f32.vlgmr.msra.gmra.mxu1 %vm568_vm2, %v562_v4  ;;  %4001 = vmatmul.mubr.msk.f32.vlgmr.msra.gmra.mxu0 %vm568_vm2, %v562_v4  ;;  %v4724_v43 = vld [vmem:[%s6246_s5 + $0xc0] ss:$16 sps:$4 sm:$0xff]   ;;  %v4738_v49 = vld [vmem:[%s6246_s5 + $0x84] ss:$16 sps:$4 sm:$0xff]   ;;  %v4741_v50 = vld [vmem:[%s6246_s5 + $0x8c] ss:$16 sps:$4 sm:$0xff]  }
  0x43   : > { %4352 = vmatpush3.bf16.msra.mxu0 %v4710_v6  ;;  %4367 = vmatprep.mubr.msk.bf16.mxu0 %vm5206_vm0, %v5205_v1  ;;  %v4730_v47 = vld [vmem:[%s6246_s5 + $0xa0] ss:$16 sps:$4 sm:$0xff]   ;;  %v4739_v52 = vld [vmem:[%s6246_s5 + $0x88] ss:$16 sps:$4 sm:$0xff]   ;;  %v4744_v58 = vld [vmem:[%s6246_s5 + $0x64] ss:$16 sps:$4 sm:$0xff]  }
  0x44   : > { %4353 = vmatprep.subr.bf16.mxu0 %v5205_v1  ;;  %1089 = vmatpush1.bf16.msra.mxu1 %v4718_v37  ;;  %v4736_v51 = vld [vmem:[%s6246_s5 + $0x80] ss:$16 sps:$4 sm:$0xff]   ;;  %v4745_v59 = vld [vmem:[%s6246_s5 + $0x68] ss:$16 sps:$4 sm:$0xff]   ;;  %v4747_v60 = vld [vmem:[%s6246_s5 + $0x6c] ss:$16 sps:$4 sm:$0xff]  }
  0x45   : > { %1090 = vmatprep.subr.bf16.mxu1 %v4726_v41  ;;  %v4742_v57 = vld [vmem:[%s6246_s5 + $0x60] ss:$16 sps:$4 sm:$0xff]   ;;  %v4750_v61 = vld [vmem:[%s6246_s5 + $0x44] ss:$16 sps:$4 sm:$0xff]   ;;  %v4753_v62 = vld [vmem:[%s6246_s5 + $0x4c] ss:$16 sps:$4 sm:$0xff]  }
  0x46   : > { %v4748_v63 = vld [vmem:[%s6246_s5 + $0x40] ss:$16 sps:$4 sm:$0xff]   ;;  %v4751_v0 = vld [vmem:[%s6246_s5 + $0x48] ss:$16 sps:$4 sm:$0xff]   ;;  %v4756_v2 = vld [vmem:[%s6246_s5 + $0x24] ss:$16 sps:$4 sm:$0xff]  }
  0x47   : > { %4354 = vmatpush3.bf16.msra.mxu0 %v4711_v7  ;;  %v4759_v3 = vld [vmem:[%s6246_s5 + $0x2c] ss:$16 sps:$4 sm:$0xff]   ;;  %v5207_v4 = vmov 0   ;;  %v4754_v5 = vld [vmem:[%s6246_s5 + $0x20] ss:$16 sps:$4 sm:$0xff]   ;;  %vm2386_vm9 = vcmask 1045504  }
  0x48   : > { %4355 = vmatprep.subr.bf16.mxu0 %v5205_v1  ;;  %1091 = vmatpush1.bf16.msra.mxu1 %v4724_v43  ;;  %v4757_v6 = vld [vmem:[%s6246_s5 + $0x28] ss:$16 sps:$4 sm:$0xff]   ;;  %v4762_v7 = vld [vmem:[%s6246_s5 + $0x4] ss:$16 sps:$4 sm:$0xff]   ;;  %v5603_v38 = vld [vmem:[#allocation3 + $0x4c] ss:$16 sps:$4 sm:$0xff]  }
  0x49   : > { %1092 = vmatprep.subr.bf16.mxu1 %v4732_v45  ;;  %1120 = vmatprep.mubr.bf16.mxu1 %v5207_v4  ;;  %v5601_v37 = vld [vmem:[#allocation3 + $0x44] ss:$16 sps:$4 sm:$0xff]   ;;  %v5619_v43 = vld [vmem:[#allocation3 + $0x20] ss:$16 sps:$4 sm:$0xff]   ;;  %vm2388_vm10 = vcmask 1046528   ;;  %vm2519_vm11 = vcmask 57344  }
  0x4a   : > { %4699 = vset.pattern.permute.xlu1 %v5207_v4  ;;  %4700 = vset.pattern.permute.xlu0 %v5207_v4  ;;  %v5613_v41 = vld [vmem:[#allocation3 + $0x24] ss:$16 sps:$4 sm:$0xff]  }
  0x4b   : > { %4356 = vmatpush3.bf16.msra.mxu0 %v4712_v8  ;;  %v4765_v8 = vld [vmem:[%s6246_s5 + $0xc] ss:$16 sps:$4 sm:$0xff]   ;;  %v5625_v45 = vld [vmem:[#allocation3 + $0x4] ss:$16 sps:$4 sm:$0xff]  }
  0x4c   : > { %4357 = vmatprep.subr.bf16.mxu0 %v5205_v1  ;;  %1093 = vmatpush1.bf16.msra.mxu1 %v4730_v47  ;;  %v5631_v47 = vld [vmem:[#allocation3] ss:$16 sps:$4 sm:$0xff]  }
  0x4d   : > { %1094 = vmatprep.subr.bf16.mxu1 %v4738_v49 }
  0x4f   : > { %4358 = vmatpush3.bf16.msra.mxu0 %v4713_v9  ;;  %v4760_v9 = vld [vmem:[%s6246_s5] ss:$16 sps:$4 sm:$0xff]  }
  0x50   : > { %4359 = vmatprep.subr.bf16.mxu0 %v5205_v1  ;;  %1095 = vmatpush1.bf16.msra.mxu1 %v4736_v51 }
  0x51   : > { %1096 = vmatprep.subr.bf16.mxu1 %v4744_v58  ;;  %v906_v58 = vld [vmem:[%s6247_s6] sm:$0xf] }
  0x53   : > { %4360 = vmatpush3.bf16.msra.mxu0 %v4714_v10  ;;  %v4763_v10 = vld [vmem:[%s6246_s5 + $0x8] ss:$16 sps:$4 sm:$0xff]  }
  0x54   : > { %4361 = vmatprep.subr.bf16.mxu0 %v5205_v1  ;;  %1097 = vmatpush1.bf16.msra.mxu1 %v4742_v57  ;;  %v910_v57 = vsub.s32 0, %v5427_v15 }
  0x55   : > { %1098 = vmatprep.subr.bf16.mxu1 %v4750_v61 }
  0x57   : > { %4362 = vmatpush3.bf16.msra.mxu0 %v4715_v11  ;;  %v5540_v11 = vld [vmem:[#allocation3 + $0xe4] ss:$16 sps:$4 sm:$0xff]  }
  0x58   : > { %4363 = vmatprep.subr.bf16.mxu0 %v5205_v1  ;;  %1099 = vmatpush1.bf16.msra.mxu1 %v4748_v63 }
  0x59   : > { %1100 = vmatprep.subr.bf16.mxu1 %v4756_v2 }
  0x5b   : > { %4364 = vmatpush3.bf16.msra.mxu0 %v4716_v12  ;;  %v5542_v12 = vld [vmem:[#allocation3 + $0xec] ss:$16 sps:$4 sm:$0xff]  }
  0x5c   : > { %4365 = vmatprep.subr.bf16.mxu0 %v5205_v1  ;;  %1101 = vmatpush1.bf16.msra.mxu1 %v4754_v5  ;;  %v922_v5 = vsub.s32 3, %v5427_v15 }
  0x5d   : > { %1102 = vmatprep.subr.bf16.mxu1 %v4762_v7 }
  0x5f   : > { %4366 = vmatpush3.bf16.msra.mxu0 %v4717_v13 }
  0x60   : > { %1129 = vmatprep.subr.bf16.mxu0 %v4723_v40  ;;  %1103 = vmatpush1.bf16.msra.mxu1 %v4760_v9  ;;  %v5609_v40 = vld [vmem:[#allocation3 + $0x48] ss:$16 sps:$4 sm:$0xff]  }
  0x61   : > { %1362 = vmatprep.subr.bf16.mxu1 %v5540_v11 }
 0x102   : > { %v716_v17 = vpop.f32.mrf.mxu1  ;;  %v645_v20 = vpop.f32.mrf.mxu0 }
 0x103   : > { %v738_v18 = vrot.slane %v716_v17, 1  ;;  %v735_v21 = vrot.slane %v645_v20, 7 }
 0x104   : > { %v4350_v19 = vpop.f32.mrf.mxu1  ;;  %v647_v22 = vpop.f32.mrf.mxu0 }
 0x105   : > { %v739_v23 = vsel %vm737_vm3, 0.0, %v738_v18  ;;  %v736_v24 = vsel %vm734_vm4, 0.0, %v735_v21  ;;  %v5547_v18 = vld [vmem:[#allocation3 + $0xe0] ss:$16 sps:$4 sm:$0xff]   ;;  %v5549_v19 = vld [vmem:[#allocation3 + $0xe8] ss:$16 sps:$4 sm:$0xff]  }
 0x106   : > { %v740_v25 = vadd.f32 %v736_v24, %v647_v22  ;;  %v5551_v21 = vld [vmem:[#allocation3 + $0xc4] ss:$16 sps:$4 sm:$0xff]   ;;  %v5553_v22 = vld [vmem:[#allocation3 + $0xcc] ss:$16 sps:$4 sm:$0xff]   ;;  %v5559_v24 = vld [vmem:[#allocation3 + $0xc8] ss:$16 sps:$4 sm:$0xff]  }
 0x108   : > { %v741_v27 = vadd.f32 %v740_v25, %v739_v23  ;;  %v5557_v23 = vld [vmem:[#allocation3 + $0xc0] ss:$16 sps:$4 sm:$0xff]   ;;  %v5563_v25 = vld [vmem:[#allocation3 + $0xa4] ss:$16 sps:$4 sm:$0xff]  }
 0x10a   : > { %v749_v28 = vadd.f32 %v4004_v26, %v741_v27  ;;  %v5565_v26 = vld [vmem:[#allocation3 + $0xac] ss:$16 sps:$4 sm:$0xff]   ;;  %v5571_v27 = vld [vmem:[#allocation3 + $0xa0] ss:$16 sps:$4 sm:$0xff]  }
 0x10c   : > { %v5433_v29 = vmax.f32 %v749_v28, 0.0  ;;  %v5573_v28 = vld [vmem:[#allocation3 + $0xa8] ss:$16 sps:$4 sm:$0xff]  }
 0x10e   : > { %v751_v30 = vpack.c.bf16 %v5433_v29, %v5433_v29 }
 0x110   : > { %4368 = vmatmul.mubr.bf16.vlgmr.msra.gmra.mxu0 %v751_v30  ;;  %v5579_v30 = vld [vmem:[#allocation3 + $0x8c] ss:$16 sps:$4 sm:$0xff]  }
 0x111   : > { %1130 = vmatpush1.bf16.msra.mxu0 %v4721_v39  ;;  %1161 = vmatprep.mubr.bf16.mxu0 %v5207_v4  ;;  %v5607_v39 = vld [vmem:[#allocation3 + $0x40] ss:$16 sps:$4 sm:$0xff]  }
 0x112   : > { %1131 = vmatprep.subr.bf16.mxu0 %v4729_v42  ;;  %v5615_v42 = vld [vmem:[#allocation3 + $0x2c] ss:$16 sps:$4 sm:$0xff]  }
 0x115   : > { %1132 = vmatpush1.bf16.msra.mxu0 %v4727_v44  ;;  %v5621_v44 = vld [vmem:[#allocation3 + $0x28] ss:$16 sps:$4 sm:$0xff]  }
 0x116   : > { %1133 = vmatprep.subr.bf16.mxu0 %v4735_v46  ;;  %v5627_v46 = vld [vmem:[#allocation3 + $0xc] ss:$16 sps:$4 sm:$0xff]  }
 0x119   : > { %1134 = vmatpush1.bf16.msra.mxu0 %v4733_v48  ;;  %v5633_v48 = vld [vmem:[#allocation3 + $0x8] ss:$16 sps:$4 sm:$0xff]  }
 0x11a   : > { %1135 = vmatprep.subr.bf16.mxu0 %v4741_v50 }
 0x11d   : > { %1136 = vmatpush1.bf16.msra.mxu0 %v4739_v52 }
 0x11e   : > { %1137 = vmatprep.subr.bf16.mxu0 %v4747_v60  ;;  %v911_v60 = vrot.slane %v906_v58, %v910_v57 }
 0x121   : > { %1138 = vmatpush1.bf16.msra.mxu0 %v4745_v59  ;;  %v914_v59 = vsub.s32 1, %v5427_v15 }
 0x122   : > { %1139 = vmatprep.subr.bf16.mxu0 %v4753_v62 }
 0x123   : > { %v915_v61 = vrot.slane %v906_v58, %v914_v59 }
 0x125   : > { %1140 = vmatpush1.bf16.msra.mxu0 %v4751_v0 }
 0x126   : > { %1141 = vmatprep.subr.bf16.mxu0 %v4759_v3 }
 0x129   : > { %1142 = vmatpush1.bf16.msra.mxu0 %v4757_v6 }
 0x12a   : > { %1143 = vmatprep.subr.bf16.mxu0 %v4765_v8 }
 0x12d   : > { %1144 = vmatpush1.bf16.msra.mxu0 %v4763_v10 }
 0x12e   : > { %1403 = vmatprep.subr.bf16.mxu0 %v5542_v12 }
 0x1d0   : > { %v857_v32 = vpop.f32.mrf.mxu0 }
 0x1d1   : > { %v858_v33 = vadd.f32 %v4005_v31, %v857_v32  ;;  %v5583_v31 = vld [vmem:[#allocation3 + $0x80] ss:$16 sps:$4 sm:$0xff]   ;;  %v5585_v32 = vld [vmem:[#allocation3 + $0x88] ss:$16 sps:$4 sm:$0xff]  }
 0x1d2   : > { %v4369_v34 = vpop.f32.mrf.mxu0 }
 0x1d3   : > { %863 = vmax.xlane.f32.xlu0 %v858_v33  ;;  %v5591_v34 = vld [vmem:[#allocation3 + $0x6c] ss:$16 sps:$4 sm:$0xff]  }
 0x1d4   : > { %v860_v35 = vpop.f32.mrf.mxu0 }
 0x1d5   : > { %v5595_v35 = vld [vmem:[#allocation3 + $0x60] ss:$16 sps:$4 sm:$0xff]  }
 0x1d6   : > { %v4370_v36 = vpop.f32.mrf.mxu0 }
 0x1d7   : > { %v5597_v36 = vld [vmem:[#allocation3 + $0x68] ss:$16 sps:$4 sm:$0xff]  }
 0x25c   : > { %v864_v53 = vpop.xlane.xlu0 %863 }
 0x25d   : > { %v865_v54 = vsub.f32 %v858_v33, %v864_v53  ;;  %v5589_v33 = vld [vmem:[#allocation3 + $0x64] ss:$16 sps:$4 sm:$0xff]  }
 0x25f   : > { %v866_v55 = vmul.f32 1.442695, %v865_v54 }
 0x261   : > { %4910 = vpow2.f32 %v866_v55 }
 0x26e   : > { %v4911_v56 = vpop.eup %4910 }
 0x26f   : > { %868 = vadd.xlane.f32.xlu0 %v4911_v56 }
 0x2f8   : > { %v869_v13 = vpop.xlane.xlu0 %868 }
 0x2f9   : > { %4912 = vrcp.f32 %v869_v13 }
 0x306   : > { %v4913_v14 = vpop.eup %4912 }
 0x307   : > { %v871_v16 = vmul.f32 %v4913_v14, %v4911_v56 }
 0x309   : > { %v872_v17 = vmul.f32 %v871_v16, %v5433_v29  ;;  %v5577_v29 = vld [vmem:[#allocation3 + $0x84] ss:$16 sps:$4 sm:$0xff]   ;;  %v923_v16 = vrot.slane %v906_v58, %v922_v5 }
 0x30b   : > { %v873_v20 = vpack.c.bf16 %v872_v17, %v872_v17 }
 0x30d   : > { %1121 = vmatmul.mubr.bf16.vlgmr.msra.gmra.mxu1 %v873_v20  ;;  %1162 = vmatmul.mubr.bf16.vlgmr.msra.gmra.mxu0 %v873_v20 }
 0x30e   : > { %1363 = vmatpush1.bf16.msra.mxu1 %v5547_v18  ;;  %1404 = vmatpush1.bf16.msra.mxu0 %v5549_v19 }
 0x30f   : > { %1364 = vmatprep.subr.bf16.mxu1 %v5551_v21  ;;  %1405 = vmatprep.subr.bf16.mxu0 %v5553_v22 }
 0x310   : > { %1394 = vmatprep.mubr.bf16.mxu1 %v5207_v4  ;;  %1435 = vmatprep.mubr.bf16.mxu0 %v5207_v4 }
 0x312   : > { %1365 = vmatpush1.bf16.msra.mxu1 %v5557_v23  ;;  %1406 = vmatpush1.bf16.msra.mxu0 %v5559_v24 }
 0x313   : > { %1366 = vmatprep.subr.bf16.mxu1 %v5563_v25  ;;  %1407 = vmatprep.subr.bf16.mxu0 %v5565_v26 }
 0x316   : > { %1367 = vmatpush1.bf16.msra.mxu1 %v5571_v27  ;;  %1408 = vmatpush1.bf16.msra.mxu0 %v5573_v28 }
 0x317   : > { %1368 = vmatprep.subr.bf16.mxu1 %v5577_v29  ;;  %1409 = vmatprep.subr.bf16.mxu0 %v5579_v30 }
 0x31a   : > { %1369 = vmatpush1.bf16.msra.mxu1 %v5583_v31  ;;  %1410 = vmatpush1.bf16.msra.mxu0 %v5585_v32 }
 0x31b   : > { %1370 = vmatprep.subr.bf16.mxu1 %v5589_v33  ;;  %1411 = vmatprep.subr.bf16.mxu0 %v5591_v34 }
 0x31e   : > { %1371 = vmatpush1.bf16.msra.mxu1 %v5595_v35  ;;  %1412 = vmatpush1.bf16.msra.mxu0 %v5597_v36 }
 0x31f   : > { %1372 = vmatprep.subr.bf16.mxu1 %v5601_v37  ;;  %1413 = vmatprep.subr.bf16.mxu0 %v5603_v38 }
 0x322   : > { %1373 = vmatpush1.bf16.msra.mxu1 %v5607_v39  ;;  %1414 = vmatpush1.bf16.msra.mxu0 %v5609_v40 }
 0x323   : > { %1374 = vmatprep.subr.bf16.mxu1 %v5613_v41  ;;  %1415 = vmatprep.subr.bf16.mxu0 %v5615_v42 }
 0x326   : > { %1375 = vmatpush1.bf16.msra.mxu1 %v5619_v43  ;;  %1416 = vmatpush1.bf16.msra.mxu0 %v5621_v44 }
 0x327   : > { %1376 = vmatprep.subr.bf16.mxu1 %v5625_v45  ;;  %1417 = vmatprep.subr.bf16.mxu0 %v5627_v46 }
 0x32a   : > { %1377 = vmatpush1.bf16.msra.mxu1 %v5631_v47  ;;  %1418 = vmatpush1.bf16.msra.mxu0 %v5633_v48 }
 0x32b   : > { %1473 = vmatprep.subr.bf16.mxu1 %v5540_v11  ;;  %1514 = vmatprep.subr.bf16.mxu0 %v5542_v12 }
 0x32d   : > { %1395 = vmatmul.mubr.bf16.vlgmr.msra.gmra.mxu1 %v5207_v4  ;;  %1436 = vmatmul.mubr.bf16.vlgmr.msra.gmra.mxu0 %v5207_v4 }
 0x32e   : > { %1474 = vmatpush1.bf16.msra.mxu1 %v5547_v18  ;;  %1515 = vmatpush1.bf16.msra.mxu0 %v5549_v19 }
 0x32f   : > { %1475 = vmatprep.subr.bf16.mxu1 %v5551_v21  ;;  %1516 = vmatprep.subr.bf16.mxu0 %v5553_v22 }
 0x330   : > { %1505 = vmatprep.mubr.bf16.mxu1 %v5207_v4  ;;  %1546 = vmatprep.mubr.bf16.mxu0 %v5207_v4 }
 0x332   : > { %1476 = vmatpush1.bf16.msra.mxu1 %v5557_v23  ;;  %1517 = vmatpush1.bf16.msra.mxu0 %v5559_v24 }
 0x333   : > { %1477 = vmatprep.subr.bf16.mxu1 %v5563_v25  ;;  %1518 = vmatprep.subr.bf16.mxu0 %v5565_v26 }
 0x336   : > { %1478 = vmatpush1.bf16.msra.mxu1 %v5571_v27  ;;  %1519 = vmatpush1.bf16.msra.mxu0 %v5573_v28 }
 0x337   : > { %1479 = vmatprep.subr.bf16.mxu1 %v5577_v29  ;;  %1520 = vmatprep.subr.bf16.mxu0 %v5579_v30 }
 0x33a   : > { %1480 = vmatpush1.bf16.msra.mxu1 %v5583_v31  ;;  %1521 = vmatpush1.bf16.msra.mxu0 %v5585_v32 }
 0x33b   : > { %1481 = vmatprep.subr.bf16.mxu1 %v5589_v33  ;;  %1522 = vmatprep.subr.bf16.mxu0 %v5591_v34 }
 0x33e   : > { %1482 = vmatpush1.bf16.msra.mxu1 %v5595_v35  ;;  %1523 = vmatpush1.bf16.msra.mxu0 %v5597_v36 }
 0x33f   : > { %1483 = vmatprep.subr.bf16.mxu1 %v5601_v37  ;;  %1524 = vmatprep.subr.bf16.mxu0 %v5603_v38 }
 0x342   : > { %1484 = vmatpush1.bf16.msra.mxu1 %v5607_v39  ;;  %1525 = vmatpush1.bf16.msra.mxu0 %v5609_v40 }
 0x343   : > { %1485 = vmatprep.subr.bf16.mxu1 %v5613_v41  ;;  %1526 = vmatprep.subr.bf16.mxu0 %v5615_v42 }
 0x346   : > { %1486 = vmatpush1.bf16.msra.mxu1 %v5619_v43  ;;  %1527 = vmatpush1.bf16.msra.mxu0 %v5621_v44 }
 0x347   : > { %1487 = vmatprep.subr.bf16.mxu1 %v5625_v45  ;;  %1528 = vmatprep.subr.bf16.mxu0 %v5627_v46 }
 0x34a   : > { %1488 = vmatpush1.bf16.msra.mxu1 %v5631_v47  ;;  %1529 = vmatpush1.bf16.msra.mxu0 %v5633_v48 }
 0x34b   : > { %1603 = vmatprep.subr.bf16.mxu1 %v5540_v11  ;;  %1644 = vmatprep.subr.bf16.mxu0 %v5542_v12 }
 0x3cd   : > { %v1122_v49 = vpop.f32.mrf.mxu1  ;;  %v1163_v50 = vpop.f32.mrf.mxu0 }
 0x3ce   : > { %v5684_v62 = vadd.f32 %v1122_v49, %v911_v60  ;;  %v918_v49 = vsub.s32 2, %v5427_v15 }
 0x3cf   : > { %v1124_v51 = vpop.f32.mrf.mxu1  ;;  %v1165_v52 = vpop.f32.mrf.mxu0 }
 0x3d0   : > { %v5686_v2 = vadd.f32 %v1124_v51, %v915_v61  ;;  %v5692_v51 = vadd.f32 %v1165_v52, %v923_v16 }
 0x3d1   : > { %v1126_v53 = vpop.f32.mrf.mxu1  ;;  %v1167_v54 = vpop.f32.mrf.mxu0 }
 0x3d2   : > { %v919_v53 = vrot.slane %v906_v58, %v918_v49 }
 0x3d3   : > { %v1127_v55 = vpop.f32.mrf.mxu1  ;;  %v1168_v56 = vpop.f32.mrf.mxu0 }
 0x3d4   : > { %v5695_v55 = vadd.f32 %v1163_v50, %v919_v53 }
 0x3ed   : > { %v1396_v63 = vpop.f32.mrf.mxu1  ;;  %v1437_v0 = vpop.f32.mrf.mxu0 }
 0x3ee   : > { %v1444_v3 = vadd.f32 %v1396_v63, %v5684_v62  ;;  %v1446_v60 = vadd.f32 %v1437_v0, %v5695_v55 }
 0x3ef   : > { %v1398_v6 = vpop.f32.mrf.mxu1  ;;  %v1439_v7 = vpop.f32.mrf.mxu0 }
 0x3f0   : > { %v4078_v8 = vmul.f32 -1.442695, %v1444_v3  ;;  %v1445_v9 = vadd.f32 %v1398_v6, %v5686_v2  ;;  %v1447_v54 = vadd.f32 %v1439_v7, %v5692_v51 }
 0x3f1   : > { %v1400_v10 = vpop.f32.mrf.mxu1  ;;  %v1441_v13 = vpop.f32.mrf.mxu0 }
 0x3f2   : > { %4914 = vpow2.f32 %v4078_v8  ;;  %v4079_v14 = vmul.f32 -1.442695, %v1445_v9  ;;  %v4080_v56 = vmul.f32 -1.442695, %v1447_v54 }
 0x3f3   : > { %v1401_v17 = vpop.f32.mrf.mxu1  ;;  %v1442_v20 = vpop.f32.mrf.mxu0 }
 0x3f4   : > { %4916 = vpow2.f32 %v4079_v14 }
 0x3f5   : > { %4918 = vpow2.f32 %v4080_v56 }
 0x3ff   : > { %v4915_v59 = vpop.eup %4914 }
 0x400   : > { %v1451_v61 = vadd.f32 1.0, %v4915_v59 }
 0x401   : > { %v4917_v63 = vpop.eup %4916 }
 0x402   : > { %4920 = vrcp.f32 %v1451_v61  ;;  %v1457_v3 = vadd.f32 1.0, %v4917_v63  ;;  %v4919_v5 = vpop.eup %4918 }
 0x403   : > { %4922 = vtanh.f32 %v1446_v60  ;;  %v1464_v58 = vadd.f32 1.0, %v4919_v5 }
 0x404   : > { %4924 = vrcp.f32 %v1457_v3 }
 0x405   : > { %4926 = vrcp.f32 %v1464_v58 }
 0x40f   : > { %v4921_v6 = vpop.eup %4920 }
 0x410   : > { %v4923_v52 = vpop.eup %4922 }
 0x411   : > { %v4925_v8 = vpop.eup %4924  ;;  %v1468_v7 = vmul.f32 %v4923_v52, %v4921_v6 }
 0x412   : > { %v1467_v9 = vmul.f32 0.0, %v4925_v8  ;;  %v4927_v0 = vpop.eup %4926 }
 0x414   : > { %v5698_v50 = vadd.f32 %v1468_v7, %v1467_v9 }
 0x416   : > { %4928 = vtanh.f32 %v5698_v50 }
 0x423   : > { %v4929_v10 = vpop.eup %4928 }
 0x424   : > { %v5701_v13 = vmul.f32 %v4929_v10, %v4927_v0 }
 0x426   : > { %v1472_v14 = vpack.c.bf16 %v5701_v13, %v5701_v13 }
 0x428   : > { %1506 = vmatmul.mubr.bf16.vlgmr.msra.gmra.mxu1 %v1472_v14  ;;  %1547 = vmatmul.mubr.bf16.vlgmr.msra.gmra.mxu0 %v1472_v14 }
 0x429   : > { %1604 = vmatpush1.bf16.msra.mxu1 %v5547_v18  ;;  %1645 = vmatpush1.bf16.msra.mxu0 %v5549_v19 }
 0x42a   : > { %1605 = vmatprep.subr.bf16.mxu1 %v5551_v21  ;;  %1646 = vmatprep.subr.bf16.mxu0 %v5553_v22 }
 0x42b   : > { %1635 = vmatprep.mubr.bf16.mxu1 %v5207_v4  ;;  %1676 = vmatprep.mubr.bf16.mxu0 %v5207_v4 }
 0x42d   : > { %1606 = vmatpush1.bf16.msra.mxu1 %v5557_v23  ;;  %1647 = vmatpush1.bf16.msra.mxu0 %v5559_v24 }
 0x42e   : > { %1607 = vmatprep.subr.bf16.mxu1 %v5563_v25  ;;  %1648 = vmatprep.subr.bf16.mxu0 %v5565_v26 }
 0x431   : > { %1608 = vmatpush1.bf16.msra.mxu1 %v5571_v27  ;;  %1649 = vmatpush1.bf16.msra.mxu0 %v5573_v28 }
 0x432   : > { %1609 = vmatprep.subr.bf16.mxu1 %v5577_v29  ;;  %1650 = vmatprep.subr.bf16.mxu0 %v5579_v30 }
 0x435   : > { %1610 = vmatpush1.bf16.msra.mxu1 %v5583_v31  ;;  %1651 = vmatpush1.bf16.msra.mxu0 %v5585_v32 }
 0x436   : > { %1611 = vmatprep.subr.bf16.mxu1 %v5589_v33  ;;  %1652 = vmatprep.subr.bf16.mxu0 %v5591_v34 }
 0x439   : > { %1612 = vmatpush1.bf16.msra.mxu1 %v5595_v35  ;;  %1653 = vmatpush1.bf16.msra.mxu0 %v5597_v36 }
 0x43a   : > { %1613 = vmatprep.subr.bf16.mxu1 %v5601_v37  ;;  %1654 = vmatprep.subr.bf16.mxu0 %v5603_v38 }
 0x43d   : > { %1614 = vmatpush1.bf16.msra.mxu1 %v5607_v39  ;;  %1655 = vmatpush1.bf16.msra.mxu0 %v5609_v40 }
 0x43e   : > { %1615 = vmatprep.subr.bf16.mxu1 %v5613_v41  ;;  %1656 = vmatprep.subr.bf16.mxu0 %v5615_v42 }
 0x441   : > { %1616 = vmatpush1.bf16.msra.mxu1 %v5619_v43  ;;  %1657 = vmatpush1.bf16.msra.mxu0 %v5621_v44 }
 0x442   : > { %1617 = vmatprep.subr.bf16.mxu1 %v5625_v45  ;;  %1658 = vmatprep.subr.bf16.mxu0 %v5627_v46 }
 0x445   : > { %1618 = vmatpush1.bf16.msra.mxu1 %v5631_v47  ;;  %1659 = vmatpush1.bf16.msra.mxu0 %v5633_v48 }
 0x446   : > { %1732 = vmatprep.subr.bf16.mxu1 %v5540_v11  ;;  %1773 = vmatprep.subr.bf16.mxu0 %v5542_v12 }
 0x4e8   : > { %v1507_v16 = vpop.f32.mrf.mxu1  ;;  %v1548_v17 = vpop.f32.mrf.mxu0 }
 0x4e9   : > { %v1559_v20 = vrot.slane %v1507_v16, 7  ;;  %v1561_v58 = vrot.slane %v1548_v17, 7 }
 0x4ea   : > { %v1509_v49 = vpop.f32.mrf.mxu1  ;;  %v1550_v53 = vpop.f32.mrf.mxu0 }
 0x4eb   : > { %v1567_v54 = vadd.f32 %v1559_v20, %v5684_v62  ;;  %v1560_v56 = vrot.slane %v1509_v49, 7  ;;  %v1562_v52 = vrot.slane %v1550_v53, 7  ;;  %v1569_v0 = vadd.f32 %v1561_v58, %v5695_v55 }
 0x4ec   : > { %v1511_v59 = vpop.f32.mrf.mxu1  ;;  %v1552_v60 = vpop.f32.mrf.mxu0 }
 0x4ed   : > { %v4081_v61 = vmul.f32 -1.442695, %v1567_v54  ;;  %v1568_v63 = vadd.f32 %v1560_v56, %v5686_v2  ;;  %v1570_v8 = vadd.f32 %v1562_v52, %v5692_v51  ;;  %v1591_v56 = vrot.slane %v5698_v50, 7 }
 0x4ee   : > { %v1512_v3 = vpop.f32.mrf.mxu1  ;;  %v1553_v5 = vpop.f32.mrf.mxu0 }
 0x4ef   : > { %4930 = vpow2.f32 %v4081_v61  ;;  %v4082_v6 = vmul.f32 -1.442695, %v1568_v63  ;;  %v4083_v9 = vmul.f32 -1.442695, %v1570_v8 }
 0x4f1   : > { %4932 = vpow2.f32 %v4082_v6 }
 0x4f2   : > { %4934 = vpow2.f32 %v4083_v9 }
 0x4fc   : > { %v4931_v7 = vpop.eup %4930 }
 0x4fd   : > { %v1574_v10 = vadd.f32 1.0, %v4931_v7 }
 0x4fe   : > { %v4933_v14 = vpop.eup %4932 }
 0x4ff   : > { %4936 = vrcp.f32 %v1574_v10  ;;  %v1580_v16 = vadd.f32 1.0, %v4933_v14  ;;  %v4935_v20 = vpop.eup %4934 }
 0x500   : > { %4938 = vtanh.f32 %v1569_v0  ;;  %v1587_v59 = vadd.f32 1.0, %v4935_v20 }
 0x501   : > { %4940 = vrcp.f32 %v1580_v16 }
 0x502   : > { %4942 = vrcp.f32 %v1587_v59 }
 0x50c   : > { %v4937_v49 = vpop.eup %4936 }
 0x50d   : > { %v4939_v54 = vpop.eup %4938 }
 0x50e   : > { %v4941_v53 = vpop.eup %4940  ;;  %v1594_v60 = vmul.f32 %v4939_v54, %v4937_v49 }
 0x50f   : > { %v1593_v17 = vmul.f32 %v4941_v53, %v1591_v56  ;;  %v4943_v63 = vpop.eup %4942 }
 0x511   : > { %v5744_v61 = vadd.f32 %v1594_v60, %v1593_v17 }
 0x513   : > { %4944 = vtanh.f32 %v5744_v61 }
 0x520   : > { %v4945_v3 = vpop.eup %4944 }
 0x521   : > { %v5747_v5 = vmul.f32 %v4945_v3, %v4943_v63 }
 0x523   : > { %v1598_v6 = vpack.c.bf16 %v5747_v5, %v5747_v5 }
 0x525   : > { %v1600_v52 = vshrl.u32 %v1598_v6, 16 }
 0x527   : > { %1636 = vmatmul.mubr.bf16.vlgmr.msra.gmra.mxu1 %v1600_v52  ;;  %1677 = vmatmul.mubr.bf16.vlgmr.msra.gmra.mxu0 %v1600_v52 }
 0x528   : > { %1733 = vmatpush1.bf16.msra.mxu1 %v5547_v18  ;;  %1774 = vmatpush1.bf16.msra.mxu0 %v5549_v19 }
 0x529   : > { %1734 = vmatprep.subr.bf16.mxu1 %v5551_v21  ;;  %1775 = vmatprep.subr.bf16.mxu0 %v5553_v22 }
 0x52a   : > { %1764 = vmatprep.mubr.bf16.mxu1 %v5207_v4  ;;  %1805 = vmatprep.mubr.bf16.mxu0 %v5207_v4 }
 0x52c   : > { %1735 = vmatpush1.bf16.msra.mxu1 %v5557_v23  ;;  %1776 = vmatpush1.bf16.msra.mxu0 %v5559_v24 }
 0x52d   : > { %1736 = vmatprep.subr.bf16.mxu1 %v5563_v25  ;;  %1777 = vmatprep.subr.bf16.mxu0 %v5565_v26 }
 0x530   : > { %1737 = vmatpush1.bf16.msra.mxu1 %v5571_v27  ;;  %1778 = vmatpush1.bf16.msra.mxu0 %v5573_v28 }
 0x531   : > { %1738 = vmatprep.subr.bf16.mxu1 %v5577_v29  ;;  %1779 = vmatprep.subr.bf16.mxu0 %v5579_v30 }
 0x534   : > { %1739 = vmatpush1.bf16.msra.mxu1 %v5583_v31  ;;  %1780 = vmatpush1.bf16.msra.mxu0 %v5585_v32 }
 0x535   : > { %1740 = vmatprep.subr.bf16.mxu1 %v5589_v33  ;;  %1781 = vmatprep.subr.bf16.mxu0 %v5591_v34 }
 0x538   : > { %1741 = vmatpush1.bf16.msra.mxu1 %v5595_v35  ;;  %1782 = vmatpush1.bf16.msra.mxu0 %v5597_v36 }
 0x539   : > { %1742 = vmatprep.subr.bf16.mxu1 %v5601_v37  ;;  %1783 = vmatprep.subr.bf16.mxu0 %v5603_v38 }
 0x53c   : > { %1743 = vmatpush1.bf16.msra.mxu1 %v5607_v39  ;;  %1784 = vmatpush1.bf16.msra.mxu0 %v5609_v40 }
 0x53d   : > { %1744 = vmatprep.subr.bf16.mxu1 %v5613_v41  ;;  %1785 = vmatprep.subr.bf16.mxu0 %v5615_v42 }
 0x540   : > { %1745 = vmatpush1.bf16.msra.mxu1 %v5619_v43  ;;  %1786 = vmatpush1.bf16.msra.mxu0 %v5621_v44 }
 0x541   : > { %1746 = vmatprep.subr.bf16.mxu1 %v5625_v45  ;;  %1787 = vmatprep.subr.bf16.mxu0 %v5627_v46 }
 0x544   : > { %1747 = vmatpush1.bf16.msra.mxu1 %v5631_v47  ;;  %1788 = vmatpush1.bf16.msra.mxu0 %v5633_v48 }
 0x545   : > { %1863 = vmatprep.subr.bf16.mxu1 %v5540_v11  ;;  %1904 = vmatprep.subr.bf16.mxu0 %v5542_v12 }
 0x5e7   : > { %v1637_v50 = vpop.f32.mrf.mxu1  ;;  %v1678_v8 = vpop.f32.mrf.mxu0 }
 0x5e8   : > { %v1689_v58 = vrot.slane %v1637_v50, 6  ;;  %v1691_v17 = vrot.slane %v1678_v8, 6 }
 0x5e9   : > { %v1639_v9 = vpop.f32.mrf.mxu1  ;;  %v1680_v7 = vpop.f32.mrf.mxu0 }
 0x5ea   : > { %v1697_v0 = vadd.f32 %v1689_v58, %v5684_v62  ;;  %v1690_v10 = vrot.slane %v1639_v9, 6  ;;  %v1692_v59 = vrot.slane %v1680_v7, 6  ;;  %v1699_v6 = vadd.f32 %v1691_v17, %v5695_v55 }
 0x5eb   : > { %v1641_v14 = vpop.f32.mrf.mxu1  ;;  %v1682_v16 = vpop.f32.mrf.mxu0 }
 0x5ec   : > { %v4084_v20 = vmul.f32 -1.442695, %v1697_v0  ;;  %v1698_v49 = vadd.f32 %v1690_v10, %v5686_v2  ;;  %v1700_v60 = vadd.f32 %v1692_v59, %v5692_v51  ;;  %v1721_v14 = vrot.slane %v5744_v61, 7 }
 0x5ed   : > { %v1642_v54 = vpop.f32.mrf.mxu1  ;;  %v1683_v56 = vpop.f32.mrf.mxu0  ;;  %v2378_v59 = vsel %vm2377_vm5, %v5701_v13, %v5747_v5 }
 0x5ee   : > { %4946 = vpow2.f32 %v4084_v20  ;;  %v4085_v53 = vmul.f32 -1.442695, %v1698_v49  ;;  %v4086_v63 = vmul.f32 -1.442695, %v1700_v60 }
 0x5f0   : > { %4948 = vpow2.f32 %v4085_v53 }
 0x5f1   : > { %4950 = vpow2.f32 %v4086_v63 }
 0x5fb   : > { %v4947_v3 = vpop.eup %4946 }
 0x5fc   : > { %v1704_v52 = vadd.f32 1.0, %v4947_v3 }
 0x5fd   : > { %v4949_v50 = vpop.eup %4948 }
 0x5fe   : > { %4952 = vrcp.f32 %v1704_v52  ;;  %v1710_v58 = vadd.f32 1.0, %v4949_v50  ;;  %v4951_v9 = vpop.eup %4950 }
 0x5ff   : > { %4954 = vtanh.f32 %v1699_v6  ;;  %v1717_v16 = vadd.f32 1.0, %v4951_v9 }
 0x600   : > { %4956 = vrcp.f32 %v1710_v58 }
 0x601   : > { %4958 = vrcp.f32 %v1717_v16 }
 0x60b   : > { %v4953_v0 = vpop.eup %4952 }
 0x60c   : > { %v4955_v10 = vpop.eup %4954 }
 0x60d   : > { %v4957_v7 = vpop.eup %4956  ;;  %v1724_v20 = vmul.f32 %v4955_v10, %v4953_v0 }
 0x60e   : > { %v1723_v8 = vmul.f32 %v4957_v7, %v1721_v14  ;;  %v4959_v54 = vpop.eup %4958 }
 0x610   : > { %v5790_v49 = vadd.f32 %v1724_v20, %v1723_v8 }
 0x612   : > { %4960 = vtanh.f32 %v5790_v49 }
 0x61f   : > { %v4961_v56 = vpop.eup %4960 }
 0x620   : > { %v5793_v53 = vmul.f32 %v4961_v56, %v4959_v54 }
 0x622   : > { %v1728_v61 = vpack.c.bf16 %v5793_v53, %v5793_v53  ;;  %v5800_v60 = vsel %vm2379_vm6, %v2378_v59, %v5793_v53 }
 0x624   : > { %v1730_v17 = vrot.slane %v1728_v61, 1 }
 0x626   : > { %1765 = vmatmul.mubr.bf16.vlgmr.msra.gmra.mxu1 %v1730_v17  ;;  %1806 = vmatmul.mubr.bf16.vlgmr.msra.gmra.mxu0 %v1730_v17 }
 0x627   : > { %1864 = vmatpush1.bf16.msra.mxu1 %v5547_v18  ;;  %1905 = vmatpush1.bf16.msra.mxu0 %v5549_v19 }
 0x628   : > { %1865 = vmatprep.subr.bf16.mxu1 %v5551_v21  ;;  %1906 = vmatprep.subr.bf16.mxu0 %v5553_v22 }
 0x629   : > { %1895 = vmatprep.mubr.bf16.mxu1 %v5207_v4  ;;  %1936 = vmatprep.mubr.bf16.mxu0 %v5207_v4 }
 0x62b   : > { %1866 = vmatpush1.bf16.msra.mxu1 %v5557_v23  ;;  %1907 = vmatpush1.bf16.msra.mxu0 %v5559_v24 }
 0x62c   : > { %1867 = vmatprep.subr.bf16.mxu1 %v5563_v25  ;;  %1908 = vmatprep.subr.bf16.mxu0 %v5565_v26 }
 0x62f   : > { %1868 = vmatpush1.bf16.msra.mxu1 %v5571_v27  ;;  %1909 = vmatpush1.bf16.msra.mxu0 %v5573_v28 }
 0x630   : > { %1869 = vmatprep.subr.bf16.mxu1 %v5577_v29  ;;  %1910 = vmatprep.subr.bf16.mxu0 %v5579_v30 }
 0x633   : > { %1870 = vmatpush1.bf16.msra.mxu1 %v5583_v31  ;;  %1911 = vmatpush1.bf16.msra.mxu0 %v5585_v32 }
 0x634   : > { %1871 = vmatprep.subr.bf16.mxu1 %v5589_v33  ;;  %1912 = vmatprep.subr.bf16.mxu0 %v5591_v34 }
 0x637   : > { %1872 = vmatpush1.bf16.msra.mxu1 %v5595_v35  ;;  %1913 = vmatpush1.bf16.msra.mxu0 %v5597_v36 }
 0x638   : > { %1873 = vmatprep.subr.bf16.mxu1 %v5601_v37  ;;  %1914 = vmatprep.subr.bf16.mxu0 %v5603_v38 }
 0x63b   : > { %1874 = vmatpush1.bf16.msra.mxu1 %v5607_v39  ;;  %1915 = vmatpush1.bf16.msra.mxu0 %v5609_v40 }
 0x63c   : > { %1875 = vmatprep.subr.bf16.mxu1 %v5613_v41  ;;  %1916 = vmatprep.subr.bf16.mxu0 %v5615_v42 }
 0x63f   : > { %1876 = vmatpush1.bf16.msra.mxu1 %v5619_v43  ;;  %1917 = vmatpush1.bf16.msra.mxu0 %v5621_v44 }
 0x640   : > { %1877 = vmatprep.subr.bf16.mxu1 %v5625_v45  ;;  %1918 = vmatprep.subr.bf16.mxu0 %v5627_v46 }
 0x643   : > { %1878 = vmatpush1.bf16.msra.mxu1 %v5631_v47  ;;  %1919 = vmatpush1.bf16.msra.mxu0 %v5633_v48 }
 0x644   : > { %1992 = vmatprep.subr.bf16.mxu1 %v5540_v11  ;;  %2033 = vmatprep.subr.bf16.mxu0 %v5542_v12 }
 0x6e6   : > { %v1766_v63 = vpop.f32.mrf.mxu1  ;;  %v1807_v3 = vpop.f32.mrf.mxu0 }
 0x6e7   : > { %v1818_v6 = vrot.slane %v1766_v63, 5  ;;  %v1820_v59 = vrot.slane %v1807_v3, 5 }
 0x6e8   : > { %v1768_v52 = vpop.f32.mrf.mxu1  ;;  %v1809_v50 = vpop.f32.mrf.mxu0 }
 0x6e9   : > { %v1826_v58 = vadd.f32 %v1818_v6, %v5684_v62  ;;  %v1819_v9 = vrot.slane %v1768_v52, 5  ;;  %v1821_v54 = vrot.slane %v1809_v50, 5  ;;  %v1828_v63 = vadd.f32 %v1820_v59, %v5695_v55 }
 0x6ea   : > { %v1770_v0 = vpop.f32.mrf.mxu1  ;;  %v1811_v10 = vpop.f32.mrf.mxu0 }
 0x6eb   : > { %v4087_v14 = vmul.f32 -1.442695, %v1826_v58  ;;  %v1827_v7 = vadd.f32 %v1819_v9, %v5686_v2  ;;  %v1829_v56 = vadd.f32 %v1821_v54, %v5692_v51 }
 0x6ec   : > { %v1771_v16 = vpop.f32.mrf.mxu1  ;;  %v1812_v20 = vpop.f32.mrf.mxu0 }
 0x6ed   : > { %4962 = vpow2.f32 %v4087_v14  ;;  %v4088_v8 = vmul.f32 -1.442695, %v1827_v7  ;;  %v4089_v61 = vmul.f32 -1.442695, %v1829_v56  ;;  %v1850_v14 = vrot.slane %v5790_v49, 7 }
 0x6ef   : > { %4964 = vpow2.f32 %v4088_v8 }
 0x6f0   : > { %4966 = vpow2.f32 %v4089_v61 }
 0x6fa   : > { %v4963_v17 = vpop.eup %4962 }
 0x6fb   : > { %v1833_v6 = vadd.f32 1.0, %v4963_v17 }
 0x6fc   : > { %v4965_v52 = vpop.eup %4964 }
 0x6fd   : > { %4968 = vrcp.f32 %v1833_v6  ;;  %v1839_v58 = vadd.f32 1.0, %v4965_v52  ;;  %v4967_v9 = vpop.eup %4966 }
 0x6fe   : > { %4970 = vtanh.f32 %v1828_v63  ;;  %v1846_v7 = vadd.f32 1.0, %v4967_v9 }
 0x6ff   : > { %4972 = vrcp.f32 %v1839_v58 }
 0x700   : > { %4974 = vrcp.f32 %v1846_v7 }
 0x70a   : > { %v4969_v0 = vpop.eup %4968 }
 0x70b   : > { %v4971_v10 = vpop.eup %4970 }
 0x70c   : > { %v4973_v50 = vpop.eup %4972  ;;  %v1853_v16 = vmul.f32 %v4971_v10, %v4969_v0 }
 0x70d   : > { %v1852_v3 = vmul.f32 %v4973_v50, %v1850_v14  ;;  %v4975_v8 = vpop.eup %4974 }
 0x70f   : > { %v5841_v20 = vadd.f32 %v1853_v16, %v1852_v3 }
 0x711   : > { %4976 = vtanh.f32 %v5841_v20 }
 0x71e   : > { %v4977_v54 = vpop.eup %4976 }
 0x71f   : > { %v5844_v56 = vmul.f32 %v4977_v54, %v4975_v8 }
 0x721   : > { %v1857_v59 = vpack.c.bf16 %v5844_v56, %v5844_v56  ;;  %v5850_v49 = vsel %vm2381_vm7, %v5800_v60, %v5844_v56 }
 0x723   : > { %v1859_v61 = vshrl.u32 %v1857_v59, 16 }
 0x725   : > { %v1861_v17 = vrot.slane %v1859_v61, 1 }
 0x727   : > { %1896 = vmatmul.mubr.bf16.vlgmr.msra.gmra.mxu1 %v1861_v17  ;;  %1937 = vmatmul.mubr.bf16.vlgmr.msra.gmra.mxu0 %v1861_v17 }
 0x728   : > { %1993 = vmatpush1.bf16.msra.mxu1 %v5547_v18  ;;  %2034 = vmatpush1.bf16.msra.mxu0 %v5549_v19 }
 0x729   : > { %1994 = vmatprep.subr.bf16.mxu1 %v5551_v21  ;;  %2035 = vmatprep.subr.bf16.mxu0 %v5553_v22 }
 0x72a   : > { %2024 = vmatprep.mubr.bf16.mxu1 %v5207_v4  ;;  %2065 = vmatprep.mubr.bf16.mxu0 %v5207_v4 }
 0x72c   : > { %1995 = vmatpush1.bf16.msra.mxu1 %v5557_v23  ;;  %2036 = vmatpush1.bf16.msra.mxu0 %v5559_v24 }
 0x72d   : > { %1996 = vmatprep.subr.bf16.mxu1 %v5563_v25  ;;  %2037 = vmatprep.subr.bf16.mxu0 %v5565_v26 }
 0x730   : > { %1997 = vmatpush1.bf16.msra.mxu1 %v5571_v27  ;;  %2038 = vmatpush1.bf16.msra.mxu0 %v5573_v28 }
 0x731   : > { %1998 = vmatprep.subr.bf16.mxu1 %v5577_v29  ;;  %2039 = vmatprep.subr.bf16.mxu0 %v5579_v30 }
 0x734   : > { %1999 = vmatpush1.bf16.msra.mxu1 %v5583_v31  ;;  %2040 = vmatpush1.bf16.msra.mxu0 %v5585_v32 }
 0x735   : > { %2000 = vmatprep.subr.bf16.mxu1 %v5589_v33  ;;  %2041 = vmatprep.subr.bf16.mxu0 %v5591_v34 }
 0x738   : > { %2001 = vmatpush1.bf16.msra.mxu1 %v5595_v35  ;;  %2042 = vmatpush1.bf16.msra.mxu0 %v5597_v36 }
 0x739   : > { %2002 = vmatprep.subr.bf16.mxu1 %v5601_v37  ;;  %2043 = vmatprep.subr.bf16.mxu0 %v5603_v38 }
 0x73c   : > { %2003 = vmatpush1.bf16.msra.mxu1 %v5607_v39  ;;  %2044 = vmatpush1.bf16.msra.mxu0 %v5609_v40 }
 0x73d   : > { %2004 = vmatprep.subr.bf16.mxu1 %v5613_v41  ;;  %2045 = vmatprep.subr.bf16.mxu0 %v5615_v42 }
 0x740   : > { %2005 = vmatpush1.bf16.msra.mxu1 %v5619_v43  ;;  %2046 = vmatpush1.bf16.msra.mxu0 %v5621_v44 }
 0x741   : > { %2006 = vmatprep.subr.bf16.mxu1 %v5625_v45  ;;  %2047 = vmatprep.subr.bf16.mxu0 %v5627_v46 }
 0x744   : > { %2007 = vmatpush1.bf16.msra.mxu1 %v5631_v47  ;;  %2048 = vmatpush1.bf16.msra.mxu0 %v5633_v48 }
 0x745   : > { %2123 = vmatprep.subr.bf16.mxu1 %v5540_v11  ;;  %2164 = vmatprep.subr.bf16.mxu0 %v5542_v12 }
 0x7e7   : > { %v1897_v60 = vpop.f32.mrf.mxu1  ;;  %v1938_v63 = vpop.f32.mrf.mxu0 }
 0x7e8   : > { %v1949_v6 = vrot.slane %v1897_v60, 4  ;;  %v1951_v54 = vrot.slane %v1938_v63, 4 }
 0x7e9   : > { %v1899_v52 = vpop.f32.mrf.mxu1  ;;  %v1940_v58 = vpop.f32.mrf.mxu0 }
 0x7ea   : > { %v1957_v9 = vadd.f32 %v1949_v6, %v5684_v62  ;;  %v1950_v0 = vrot.slane %v1899_v52, 4  ;;  %v1952_v11 = vrot.slane %v1940_v58, 4  ;;  %v1959_v17 = vadd.f32 %v1951_v54, %v5695_v55 }
 0x7eb   : > { %v1901_v10 = vpop.f32.mrf.mxu1  ;;  %v1942_v14 = vpop.f32.mrf.mxu0 }
 0x7ec   : > { %v4090_v50 = vmul.f32 -1.442695, %v1957_v9  ;;  %v1958_v7 = vadd.f32 %v1950_v0, %v5686_v2  ;;  %v1960_v12 = vadd.f32 %v1952_v11, %v5692_v51  ;;  %v1981_v14 = vrot.slane %v5841_v20, 7 }
 0x7ed   : > { %v1902_v16 = vpop.f32.mrf.mxu1  ;;  %v1943_v3 = vpop.f32.mrf.mxu0 }
 0x7ee   : > { %4978 = vpow2.f32 %v4090_v50  ;;  %v4091_v8 = vmul.f32 -1.442695, %v1958_v7  ;;  %v4092_v59 = vmul.f32 -1.442695, %v1960_v12 }
 0x7f0   : > { %4980 = vpow2.f32 %v4091_v8 }
 0x7f1   : > { %4982 = vpow2.f32 %v4092_v59 }
 0x7fb   : > { %v4979_v61 = vpop.eup %4978 }
 0x7fc   : > { %v1964_v60 = vadd.f32 1.0, %v4979_v61 }
 0x7fd   : > { %v4981_v6 = vpop.eup %4980 }
 0x7fe   : > { %4984 = vrcp.f32 %v1964_v60  ;;  %v1970_v52 = vadd.f32 1.0, %v4981_v6  ;;  %v4983_v9 = vpop.eup %4982 }
 0x7ff   : > { %4986 = vtanh.f32 %v1959_v17  ;;  %v1977_v50 = vadd.f32 1.0, %v4983_v9 }
 0x800   : > { %4988 = vrcp.f32 %v1970_v52 }
 0x801   : > { %4990 = vrcp.f32 %v1977_v50  ;;  %v5075_v50 = vld [vmem:[#allocation3 + $0xe8] ss:$16 sps:$4 sm:$0xff]  }
 0x80b   : > { %v4985_v0 = vpop.eup %4984 }
 0x80c   : > { %v4987_v10 = vpop.eup %4986 }
 0x80d   : > { %v4989_v58 = vpop.eup %4988  ;;  %v1984_v7 = vmul.f32 %v4987_v10, %v4985_v0 }
 0x80e   : > { %v1983_v63 = vmul.f32 %v4989_v58, %v1981_v14  ;;  %v4991_v3 = vpop.eup %4990  ;;  %v5074_v58 = vld [vmem:[#allocation3 + $0xe0] ss:$16 sps:$4 sm:$0xff]  }
 0x810   : > { %v5891_v16 = vadd.f32 %v1984_v7, %v1983_v63  ;;  %v5076_v7 = vld [vmem:[#allocation3 + $0xc4] ss:$16 sps:$4 sm:$0xff]   ;;  %v5077_v63 = vld [vmem:[#allocation3 + $0xcc] ss:$16 sps:$4 sm:$0xff]  }
 0x812   : > { %4992 = vtanh.f32 %v5891_v16 }
 0x81f   : > { %v4993_v8 = vpop.eup %4992 }
 0x820   : > { %v5894_v11 = vmul.f32 %v4993_v8, %v4991_v3  ;;  %v5079_v3 = vld [vmem:[#allocation3 + $0xc8] ss:$16 sps:$4 sm:$0xff]   ;;  %v5080_v8 = vld [vmem:[#allocation3 + $0xa4] ss:$16 sps:$4 sm:$0xff]  }
 0x822   : > { %v1988_v12 = vpack.c.bf16 %v5894_v11, %v5894_v11  ;;  %v5901_v20 = vsel %vm572_vm1, %v5850_v49, %v5894_v11 }
 0x824   : > { %v1990_v54 = vrot.slane %v1988_v12, 2  ;;  %v5081_v12 = vld [vmem:[#allocation3 + $0xac] ss:$16 sps:$4 sm:$0xff]  }
 0x826   : > { %2025 = vmatmul.mubr.bf16.vlgmr.msra.gmra.mxu1 %v1990_v54  ;;  %2066 = vmatmul.mubr.bf16.vlgmr.msra.gmra.mxu0 %v1990_v54  ;;  %v5083_v54 = vld [vmem:[#allocation3 + $0xa8] ss:$16 sps:$4 sm:$0xff]  }
 0x827   : > { %2124 = vmatpush1.bf16.msra.mxu1 %v5547_v18  ;;  %2165 = vmatpush1.bf16.msra.mxu0 %v5549_v19  ;;  %v5072_v18 = vld [vmem:[#allocation3 + $0xe4] ss:$16 sps:$4 sm:$0xff]   ;;  %v5073_v19 = vld [vmem:[#allocation3 + $0xec] ss:$16 sps:$4 sm:$0xff]  }
 0x828   : > { %2125 = vmatprep.subr.bf16.mxu1 %v5551_v21  ;;  %2166 = vmatprep.subr.bf16.mxu0 %v5553_v22 }
 0x829   : > { %2155 = vmatprep.mubr.bf16.mxu1 %v5207_v4  ;;  %2196 = vmatprep.mubr.bf16.mxu0 %v5207_v4 }
 0x82b   : > { %2126 = vmatpush1.bf16.msra.mxu1 %v5557_v23  ;;  %2167 = vmatpush1.bf16.msra.mxu0 %v5559_v24 }
 0x82c   : > { %2127 = vmatprep.subr.bf16.mxu1 %v5563_v25  ;;  %2168 = vmatprep.subr.bf16.mxu0 %v5565_v26 }
 0x82f   : > { %2128 = vmatpush1.bf16.msra.mxu1 %v5571_v27  ;;  %2169 = vmatpush1.bf16.msra.mxu0 %v5573_v28 }
 0x830   : > { %2129 = vmatprep.subr.bf16.mxu1 %v5577_v29  ;;  %2170 = vmatprep.subr.bf16.mxu0 %v5579_v30 }
 0x833   : > { %2130 = vmatpush1.bf16.msra.mxu1 %v5583_v31  ;;  %2171 = vmatpush1.bf16.msra.mxu0 %v5585_v32 }
 0x834   : > { %2131 = vmatprep.subr.bf16.mxu1 %v5589_v33  ;;  %2172 = vmatprep.subr.bf16.mxu0 %v5591_v34 }
 0x837   : > { %2132 = vmatpush1.bf16.msra.mxu1 %v5595_v35  ;;  %2173 = vmatpush1.bf16.msra.mxu0 %v5597_v36 }
 0x838   : > { %2133 = vmatprep.subr.bf16.mxu1 %v5601_v37  ;;  %2174 = vmatprep.subr.bf16.mxu0 %v5603_v38 }
 0x83b   : > { %2134 = vmatpush1.bf16.msra.mxu1 %v5607_v39  ;;  %2175 = vmatpush1.bf16.msra.mxu0 %v5609_v40 }
 0x83c   : > { %2135 = vmatprep.subr.bf16.mxu1 %v5613_v41  ;;  %2176 = vmatprep.subr.bf16.mxu0 %v5615_v42 }
 0x83f   : > { %2136 = vmatpush1.bf16.msra.mxu1 %v5619_v43  ;;  %2177 = vmatpush1.bf16.msra.mxu0 %v5621_v44 }
 0x840   : > { %2137 = vmatprep.subr.bf16.mxu1 %v5625_v45  ;;  %2178 = vmatprep.subr.bf16.mxu0 %v5627_v46 }
 0x843   : > { %2138 = vmatpush1.bf16.msra.mxu1 %v5631_v47  ;;  %2179 = vmatpush1.bf16.msra.mxu0 %v5633_v48  ;;  %v2110_v47 = vrot.slane %v5891_v16, 7  ;;  %v5078_v16 = vld [vmem:[#allocation3 + $0xc0] ss:$16 sps:$4 sm:$0xff]  }
 0x844   : > { %2252 = vmatprep.subr.bf16.mxu1 %v5072_v18  ;;  %2293 = vmatprep.subr.bf16.mxu0 %v5073_v19  ;;  %v5084_v18 = vld [vmem:[#allocation3 + $0x84] ss:$16 sps:$4 sm:$0xff]   ;;  %v5085_v19 = vld [vmem:[#allocation3 + $0x8c] ss:$16 sps:$4 sm:$0xff]  }
 0x8e6   : > { %v2026_v21 = vpop.f32.mrf.mxu1  ;;  %v2067_v22 = vpop.f32.mrf.mxu0 }
 0x8e7   : > { %v2078_v23 = vrot.slane %v2026_v21, 3  ;;  %v2080_v37 = vrot.slane %v2067_v22, 3  ;;  %v5086_v21 = vld [vmem:[#allocation3 + $0x80] ss:$16 sps:$4 sm:$0xff]   ;;  %v5087_v22 = vld [vmem:[#allocation3 + $0x88] ss:$16 sps:$4 sm:$0xff]  }
 0x8e8   : > { %v2028_v24 = vpop.f32.mrf.mxu1  ;;  %v2069_v25 = vpop.f32.mrf.mxu0 }
 0x8e9   : > { %v2086_v26 = vadd.f32 %v2078_v23, %v5684_v62  ;;  %v2079_v27 = vrot.slane %v2028_v24, 3  ;;  %v2081_v35 = vrot.slane %v2069_v25, 3  ;;  %v2088_v40 = vadd.f32 %v2080_v37, %v5695_v55  ;;  %v5089_v23 = vld [vmem:[#allocation3 + $0x6c] ss:$16 sps:$4 sm:$0xff]   ;;  %v5090_v24 = vld [vmem:[#allocation3 + $0x60] ss:$16 sps:$4 sm:$0xff]  }
 0x8ea   : > { %v2030_v28 = vpop.f32.mrf.mxu1  ;;  %v2071_v29 = vpop.f32.mrf.mxu0  ;;  %v5091_v25 = vld [vmem:[#allocation3 + $0x68] ss:$16 sps:$4 sm:$0xff]  }
 0x8eb   : > { %v4093_v30 = vmul.f32 -1.442695, %v2086_v26  ;;  %v2087_v31 = vadd.f32 %v2079_v27, %v5686_v2  ;;  %v2089_v36 = vadd.f32 %v2081_v35, %v5692_v51  ;;  %v5092_v26 = vld [vmem:[#allocation3 + $0x44] ss:$16 sps:$4 sm:$0xff]   ;;  %v5093_v27 = vld [vmem:[#allocation3 + $0x4c] ss:$16 sps:$4 sm:$0xff]  }
 0x8ec   : > { %v2031_v32 = vpop.f32.mrf.mxu1  ;;  %v2072_v33 = vpop.f32.mrf.mxu0  ;;  %v5094_v28 = vld [vmem:[#allocation3 + $0x40] ss:$16 sps:$4 sm:$0xff]   ;;  %v5095_v29 = vld [vmem:[#allocation3 + $0x48] ss:$16 sps:$4 sm:$0xff]   ;;  %v5101_v35 = vld [vmem:[#allocation3 + $0xc] ss:$16 sps:$4 sm:$0xff]  }
 0x8ed   : > { %4994 = vpow2.f32 %v4093_v30  ;;  %v4094_v34 = vmul.f32 -1.442695, %v2087_v31  ;;  %v4095_v38 = vmul.f32 -1.442695, %v2089_v36  ;;  %v5096_v30 = vld [vmem:[#allocation3 + $0x24] ss:$16 sps:$4 sm:$0xff]  }
 0x8ee   : > { %v5097_v31 = vld [vmem:[#allocation3 + $0x2c] ss:$16 sps:$4 sm:$0xff]   ;;  %v5098_v32 = vld [vmem:[#allocation3 + $0x20] ss:$16 sps:$4 sm:$0xff]   ;;  %v5099_v33 = vld [vmem:[#allocation3 + $0x28] ss:$16 sps:$4 sm:$0xff]  }
 0x8ef   : > { %4996 = vpow2.f32 %v4094_v34  ;;  %v5100_v34 = vld [vmem:[#allocation3 + $0x4] ss:$16 sps:$4 sm:$0xff]   ;;  %v5102_v36 = vld [vmem:[#allocation3] ss:$16 sps:$4 sm:$0xff]   ;;  %v5103_v37 = vld [vmem:[#allocation3 + $0x8] ss:$16 sps:$4 sm:$0xff]  }
 0x8f0   : > { %4998 = vpow2.f32 %v4095_v38 }
 0x8fa   : > { %v4995_v39 = vpop.eup %4994 }
 0x8fb   : > { %v2093_v41 = vadd.f32 1.0, %v4995_v39 }
 0x8fc   : > { %v4997_v42 = vpop.eup %4996 }
 0x8fd   : > { %5000 = vrcp.f32 %v2093_v41  ;;  %v2099_v43 = vadd.f32 1.0, %v4997_v42  ;;  %v4999_v44 = vpop.eup %4998 }
 0x8fe   : > { %5002 = vtanh.f32 %v2088_v40  ;;  %v2106_v49 = vadd.f32 1.0, %v4999_v44 }
 0x8ff   : > { %5004 = vrcp.f32 %v2099_v43 }
 0x900   : > { %5006 = vrcp.f32 %v2106_v49 }
 0x90a   : > { %v5001_v45 = vpop.eup %5000 }
 0x90b   : > { %v5003_v46 = vpop.eup %5002 }
 0x90c   : > { %v5005_v48 = vpop.eup %5004  ;;  %v2113_v59 = vmul.f32 %v5003_v46, %v5001_v45 }
 0x90d   : > { %v2112_v61 = vmul.f32 %v5005_v48, %v2110_v47  ;;  %v5007_v60 = vpop.eup %5006 }
 0x90f   : > { %v5940_v17 = vadd.f32 %v2113_v59, %v2112_v61 }
 0x911   : > { %5008 = vtanh.f32 %v5940_v17 }
 0x91e   : > { %v5009_v6 = vpop.eup %5008 }
 0x91f   : > { %v5943_v52 = vmul.f32 %v5009_v6, %v5007_v60 }
 0x921   : > { %v2117_v9 = vpack.c.bf16 %v5943_v52, %v5943_v52  ;;  %v5949_v0 = vsel %vm2384_vm8, %v5901_v20, %v5943_v52  ;;  %v5082_v20 = vld [vmem:[#allocation3 + $0xa0] ss:$16 sps:$4 sm:$0xff]  }
 0x923   : > { %v2119_v10 = vshrl.u32 %v2117_v9, 16 }
 0x925   : > { %v2121_v14 = vrot.slane %v2119_v10, 2 }
 0x927   : > { %2156 = vmatmul.mubr.bf16.vlgmr.msra.gmra.mxu1 %v2121_v14  ;;  %2197 = vmatmul.mubr.bf16.vlgmr.msra.gmra.mxu0 %v2121_v14 }
 0x928   : > { %2253 = vmatpush1.bf16.msra.mxu1 %v5074_v58  ;;  %2294 = vmatpush1.bf16.msra.mxu0 %v5075_v50 }
 0x929   : > { %2254 = vmatprep.subr.bf16.mxu1 %v5076_v7  ;;  %2295 = vmatprep.subr.bf16.mxu0 %v5077_v63 }
 0x92a   : > { %2284 = vmatprep.mubr.bf16.mxu1 %v5207_v4  ;;  %2325 = vmatprep.mubr.bf16.mxu0 %v5207_v4  ;;  %v5088_v4 = vld [vmem:[#allocation3 + $0x64] ss:$16 sps:$4 sm:$0xff]  }
 0x92c   : > { %2255 = vmatpush1.bf16.msra.mxu1 %v5078_v16  ;;  %2296 = vmatpush1.bf16.msra.mxu0 %v5079_v3 }
 0x92d   : > { %2256 = vmatprep.subr.bf16.mxu1 %v5080_v8  ;;  %2297 = vmatprep.subr.bf16.mxu0 %v5081_v12  ;;  %v2241_v12 = vrot.slane %v5940_v17, 7 }
 0x930   : > { %2257 = vmatpush1.bf16.msra.mxu1 %v5082_v20  ;;  %2298 = vmatpush1.bf16.msra.mxu0 %v5083_v54 }
 0x931   : > { %2258 = vmatprep.subr.bf16.mxu1 %v5084_v18  ;;  %2299 = vmatprep.subr.bf16.mxu0 %v5085_v19 }
 0x934   : > { %2259 = vmatpush1.bf16.msra.mxu1 %v5086_v21  ;;  %2300 = vmatpush1.bf16.msra.mxu0 %v5087_v22 }
 0x935   : > { %2260 = vmatprep.subr.bf16.mxu1 %v5088_v4  ;;  %2301 = vmatprep.subr.bf16.mxu0 %v5089_v23 }
 0x938   : > { %2261 = vmatpush1.bf16.msra.mxu1 %v5090_v24  ;;  %2302 = vmatpush1.bf16.msra.mxu0 %v5091_v25 }
 0x939   : > { %2262 = vmatprep.subr.bf16.mxu1 %v5092_v26  ;;  %2303 = vmatprep.subr.bf16.mxu0 %v5093_v27  ;;  %v2405_v26 = vld [vmem:[%s6249_s8 + $0x78] sm:$0xff]  ;;  %v2403_v27 = vld [vmem:[%s6249_s8 + $0x68] sm:$0xff] }
 0x93c   : > { %2263 = vmatpush1.bf16.msra.mxu1 %v5094_v28  ;;  %2304 = vmatpush1.bf16.msra.mxu0 %v5095_v29  ;;  %v2402_v28 = vld [vmem:[%s6249_s8 + $0x60] sm:$0xff]  ;;  %v2401_v29 = vld [vmem:[%s6249_s8 + $0x58] sm:$0xff] }
 0x93d   : > { %2264 = vmatprep.subr.bf16.mxu1 %v5096_v30  ;;  %2305 = vmatprep.subr.bf16.mxu0 %v5097_v31  ;;  %v2400_v30 = vld [vmem:[%s6249_s8 + $0x50] sm:$0xff]  ;;  %v2399_v31 = vld [vmem:[%s6249_s8 + $0x48] sm:$0xff] }
 0x940   : > { %2265 = vmatpush1.bf16.msra.mxu1 %v5098_v32  ;;  %2306 = vmatpush1.bf16.msra.mxu0 %v5099_v33  ;;  %v2398_v32 = vld [vmem:[%s6249_s8 + $0x40] sm:$0xff]  ;;  %v2397_v33 = vld [vmem:[%s6249_s8 + $0x38] sm:$0xff] }
 0x941   : > { %2266 = vmatprep.subr.bf16.mxu1 %v5100_v34  ;;  %2307 = vmatprep.subr.bf16.mxu0 %v5101_v35  ;;  %v2396_v34 = vld [vmem:[%s6249_s8 + $0x30] sm:$0xff]  ;;  %v2395_v35 = vld [vmem:[%s6249_s8 + $0x28] sm:$0xff] }
 0x944   : > { %2267 = vmatpush1.bf16.msra.mxu1 %v5102_v36  ;;  %2308 = vmatpush1.bf16.msra.mxu0 %v5103_v37  ;;  %v2394_v36 = vld [vmem:[%s6249_s8 + $0x20] sm:$0xff]  ;;  %v2393_v37 = vld [vmem:[%s6249_s8 + $0x18] sm:$0xff] }
 0x945   : > { %4371 = vmatprep.subr.mxu1 %v5205_v1  ;;  %4406 = vmatprep.subr.bf16.mxu0 %v5205_v1 }
 0x9e7   : > { %v2157_v38 = vpop.f32.mrf.mxu1  ;;  %v2198_v39 = vpop.f32.mrf.mxu0 }
 0x9e8   : > { %v2209_v40 = vrot.slane %v2157_v38, 2  ;;  %v2211_v9 = vrot.slane %v2198_v39, 2  ;;  %v2392_v38 = vld [vmem:[%s6249_s8 + $0x10] sm:$0xff]  ;;  %v2391_v39 = vld [vmem:[%s6249_s8 + $0x8] sm:$0xff] }
 0x9e9   : > { %v2159_v41 = vpop.f32.mrf.mxu1  ;;  %v2200_v42 = vpop.f32.mrf.mxu0 }
 0x9ea   : > { %v2217_v43 = vadd.f32 %v2209_v40, %v5684_v62  ;;  %v2210_v44 = vrot.slane %v2159_v41, 2  ;;  %v2212_v60 = vrot.slane %v2200_v42, 2  ;;  %v2219_v58 = vadd.f32 %v2211_v9, %v5695_v55  ;;  %v2390_v40 = vld [vmem:[%s6249_s8] sm:$0xff] }
 0x9eb   : > { %v2161_v45 = vpop.f32.mrf.mxu1  ;;  %v2202_v46 = vpop.f32.mrf.mxu0  ;;  %v2508_v41 = vld [vmem:[#allocation2] sm:$0x1] }
 0x9ec   : > { %v4096_v47 = vmul.f32 -1.442695, %v2217_v43  ;;  %v2218_v48 = vadd.f32 %v2210_v44, %v5686_v2  ;;  %v2220_v6 = vadd.f32 %v2212_v60, %v5692_v51  ;;  %2511 = vperm.xlu1 %4699, %v2508_v41   ;;  %v4817_v41 = vld [vmem:[#allocation5 + $0x20] sm:$0xff]  }
 0x9ed   : > { %v2162_v49 = vpop.f32.mrf.mxu1  ;;  %v2203_v59 = vpop.f32.mrf.mxu0 }
 0x9ee   : > { %5010 = vpow2.f32 %v4096_v47  ;;  %v4097_v61 = vmul.f32 -1.442695, %v2218_v48  ;;  %v4098_v10 = vmul.f32 -1.442695, %v2220_v6 }
 0x9f0   : > { %5012 = vpow2.f32 %v4097_v61 }
 0x9f1   : > { %5014 = vpow2.f32 %v4098_v10 }
 0x9fb   : > { %v5011_v14 = vpop.eup %5010 }
 0x9fc   : > { %v2224_v50 = vadd.f32 1.0, %v5011_v14 }
 0x9fd   : > { %v5013_v7 = vpop.eup %5012 }
 0x9fe   : > { %5016 = vrcp.f32 %v2224_v50  ;;  %v2230_v63 = vadd.f32 1.0, %v5013_v7  ;;  %v5015_v16 = vpop.eup %5014 }
 0x9ff   : > { %5018 = vtanh.f32 %v2219_v58  ;;  %v2237_v54 = vadd.f32 1.0, %v5015_v16 }
 0xa00   : > { %5020 = vrcp.f32 %v2230_v63 }
 0xa01   : > { %5022 = vrcp.f32 %v2237_v54 }
 0xa0b   : > { %v5017_v3 = vpop.eup %5016 }
 0xa0c   : > { %v5019_v8 = vpop.eup %5018 }
 0xa0d   : > { %v5021_v20 = vpop.eup %5020  ;;  %v2244_v18 = vmul.f32 %v5019_v8, %v5017_v3 }
 0xa0e   : > { %v2243_v19 = vmul.f32 %v5021_v20, %v2241_v12  ;;  %v5023_v22 = vpop.eup %5022 }
 0xa10   : > { %v5960_v21 = vadd.f32 %v2244_v18, %v2243_v19 }
 0xa12   : > { %5024 = vtanh.f32 %v5960_v21  ;;  %v2370_v54 = vrot.slane %v5960_v21, 7 }
 0xa1f   : > { %v5025_v4 = vpop.eup %5024 }
 0xa20   : > { %v5963_v23 = vmul.f32 %v5025_v4, %v5023_v22 }
 0xa22   : > { %v2248_v24 = vpack.c.bf16 %v5963_v23, %v5963_v23  ;;  %v5969_v17 = vsel %vm2386_vm9, %v5949_v0, %v5963_v23  ;;  %v2404_v0 = vld [vmem:[%s6249_s8 + $0x70] sm:$0xff] }
 0xa24   : > { %v2250_v25 = vrot.slane %v2248_v24, 3 }
 0xa26   : > { %2285 = vmatmul.mubr.bf16.vlgmr.msra.gmra.mxu1 %v2250_v25  ;;  %2326 = vmatmul.mubr.bf16.vlgmr.msra.gmra.mxu0 %v2250_v25 }
 0xa27   : > { %4403 = vmatprep.mubr.msk.f32.mxu1 %vm5206_vm0, %v5205_v1  ;;  %4422 = vmatprep.mubr.msk.bf16.mxu0 %vm5206_vm0, %v5205_v1 }
 0xa28   : > { %4372 = vmatpush3.msra.mxu1 %v2405_v26 }
 0xa29   : > { %4373 = vmatprep.subr.mxu1 %v5205_v1 }
 0xa2a   : > { %4374 = vmatpush3.msra.mxu1 %v2404_v0 }
 0xa2b   : > { %4375 = vmatprep.subr.mxu1 %v5205_v1 }
 0xa2c   : > { %4376 = vmatpush3.msra.mxu1 %v2403_v27 }
 0xa2d   : > { %4377 = vmatprep.subr.mxu1 %v5205_v1 }
 0xa2e   : > { %4378 = vmatpush3.msra.mxu1 %v2402_v28 }
 0xa2f   : > { %4379 = vmatprep.subr.mxu1 %v5205_v1 }
 0xa30   : > { %4380 = vmatpush3.msra.mxu1 %v2401_v29 }
 0xa31   : > { %4381 = vmatprep.subr.mxu1 %v5205_v1 }
 0xa32   : > { %4382 = vmatpush3.msra.mxu1 %v2400_v30 }
 0xa33   : > { %4383 = vmatprep.subr.mxu1 %v5205_v1 }
 0xa34   : > { %4384 = vmatpush3.msra.mxu1 %v2399_v31 }
 0xa35   : > { %4385 = vmatprep.subr.mxu1 %v5205_v1 }
 0xa36   : > { %4386 = vmatpush3.msra.mxu1 %v2398_v32 }
 0xa37   : > { %4387 = vmatprep.subr.mxu1 %v5205_v1 }
 0xa38   : > { %4388 = vmatpush3.msra.mxu1 %v2397_v33 }
 0xa39   : > { %4389 = vmatprep.subr.mxu1 %v5205_v1 }
 0xa3a   : > { %4390 = vmatpush3.msra.mxu1 %v2396_v34 }
 0xa3b   : > { %4391 = vmatprep.subr.mxu1 %v5205_v1 }
 0xa3c   : > { %4392 = vmatpush3.msra.mxu1 %v2395_v35 }
 0xa3d   : > { %4393 = vmatprep.subr.mxu1 %v5205_v1 }
 0xa3e   : > { %4394 = vmatpush3.msra.mxu1 %v2394_v36  ;;  %v5208_v36 = vmov 1  }
 0xa3f   : > { %4395 = vmatprep.subr.mxu1 %v5205_v1 }
 0xa40   : > { %4396 = vmatpush3.msra.mxu1 %v2393_v37  ;;  %v4814_v37 = vld [vmem:[#allocation5 + $0x38] sm:$0xff]  }
 0xa41   : > { %4397 = vmatprep.subr.mxu1 %v5205_v1  ;;  %4407 = vmatpush3.bf16.msra.mxu0 %v4814_v37 }
 0xa42   : > { %4398 = vmatpush3.msra.mxu1 %v2392_v38  ;;  %v4815_v38 = vld [vmem:[#allocation5 + $0x30] sm:$0xff]   ;;  %4408 = vmatprep.subr.bf16.mxu0 %v5205_v1 }
 0xa43   : > { %4399 = vmatprep.subr.mxu1 %v5205_v1 }
 0xa44   : > { %4400 = vmatpush3.msra.mxu1 %v2391_v39  ;;  %v4816_v39 = vld [vmem:[#allocation5 + $0x28] sm:$0xff]  }
 0xa45   : > { %4401 = vmatprep.subr.mxu1 %v5205_v1  ;;  %4409 = vmatpush3.bf16.msra.mxu0 %v4815_v38 }
 0xa46   : > { %4402 = vmatpush3.msra.mxu1 %v2390_v40  ;;  %4410 = vmatprep.subr.bf16.mxu0 %v5205_v1 }
 0xa47   : > { %4426 = vmatprep.subr.bf16.mxu1 %v5205_v1 }
 0xa49   : > { %4411 = vmatpush3.bf16.msra.mxu0 %v4816_v39  ;;  %v4833_v39 = vld [vmem:[#allocation7 + $0x60] sm:$0xff]  }
 0xa4a   : > { %4412 = vmatprep.subr.bf16.mxu0 %v5205_v1 }
 0xa4d   : > { %4413 = vmatpush3.bf16.msra.mxu0 %v4817_v41  ;;  %v4835_v41 = vld [vmem:[#allocation7 + $0x50] sm:$0xff]  }
 0xa4e   : > { %4414 = vmatprep.subr.bf16.mxu0 %v5205_v1 }
 0xa67   : > { %v2512_v27 = vpop.permute.xlu1 %2511 }
 0xa68   : > { %v2517_v28 = vrot.slane %v2512_v27, %v910_v57 }
 0xae6   : > { %v2286_v42 = vpop.f32.mrf.mxu1  ;;  %v2327_v43 = vpop.f32.mrf.mxu0 }
 0xae7   : > { %v2338_v44 = vrot.slane %v2286_v42, 1  ;;  %v2340_v50 = vrot.slane %v2327_v43, 1  ;;  %v5209_v42 = vmov 4   ;;  %v5210_v43 = vmov 2  }
 0xae8   : > { %v2288_v45 = vpop.f32.mrf.mxu1  ;;  %v2329_v46 = vpop.f32.mrf.mxu0 }
 0xae9   : > { %v2346_v47 = vadd.f32 %v2338_v44, %v5684_v62  ;;  %v2339_v48 = vrot.slane %v2288_v45, 1  ;;  %v2341_v14 = vrot.slane %v2329_v46, 1  ;;  %v2348_v16 = vadd.f32 %v2340_v50, %v5695_v55  ;;  %v4818_v44 = vld [vmem:[#allocation5 + $0x18] sm:$0xff]   ;;  %v4819_v45 = vld [vmem:[#allocation5 + $0x10] sm:$0xff]  }
 0xaea   : > { %v2290_v49 = vpop.f32.mrf.mxu1  ;;  %v2331_v59 = vpop.f32.mrf.mxu0  ;;  %4415 = vmatpush3.bf16.msra.mxu0 %v4818_v44  ;;  %v5211_v46 = vmov 6   ;;  %v4838_v44 = vld [vmem:[#allocation7 + $0xb8] sm:$0xff]  }
 0xaeb   : > { %v4099_v61 = vmul.f32 -1.442695, %v2346_v47  ;;  %v2347_v60 = vadd.f32 %v2339_v48, %v5686_v2  ;;  %v2349_v58 = vadd.f32 %v2341_v14, %v5692_v51  ;;  %4416 = vmatprep.subr.bf16.mxu0 %v5205_v1  ;;  %v5212_v47 = vmov 3   ;;  %v4820_v48 = vld [vmem:[#allocation5 + $0x8] sm:$0xff]  }
 0xaec   : > { %v2291_v6 = vpop.f32.mrf.mxu1  ;;  %v2332_v9 = vpop.f32.mrf.mxu0  ;;  %v5213_v49 = vmov 7   ;;  %v5214_v59 = vmov 5  }
 0xaed   : > { %5026 = vpow2.f32 %v4099_v61  ;;  %v4100_v10 = vmul.f32 -1.442695, %v2347_v60  ;;  %v4101_v7 = vmul.f32 -1.442695, %v2349_v58  ;;  %v4821_v61 = vld [vmem:[#allocation5] sm:$0xff]   ;;  %v4822_v60 = vld [vmem:[#allocation7 + $0x38] sm:$0xff]  }
 0xaee   : > { %4417 = vmatpush3.bf16.msra.mxu0 %v4819_v45  ;;  %v4823_v6 = vld [vmem:[#allocation7 + $0x30] sm:$0xff]   ;;  %v4824_v9 = vld [vmem:[#allocation7 + $0x28] sm:$0xff]  }
 0xaef   : > { %5028 = vpow2.f32 %v4100_v10  ;;  %4418 = vmatprep.subr.bf16.mxu0 %v5205_v1  ;;  %v2543_v10 = vrot.slane %v5747_v5, 1  ;;  %v4839_v45 = vld [vmem:[#allocation7 + $0xb0] sm:$0xff]  }
 0xaf0   : > { %5030 = vpow2.f32 %v4101_v7 }
 0xaf2   : > { %4419 = vmatpush3.bf16.msra.mxu0 %v4820_v48 }
 0xaf3   : > { %4420 = vmatprep.subr.bf16.mxu0 %v5205_v1 }
 0xaf6   : > { %4421 = vmatpush3.bf16.msra.mxu0 %v4821_v61 }
 0xaf7   : > { %4446 = vmatprep.subr.bf16.mxu0 %v5205_v1 }
 0xafa   : > { %v5027_v63 = vpop.eup %5026 }
 0xafb   : > { %v2353_v62 = vadd.f32 1.0, %v5027_v63  ;;  %v2552_v63 = vrot.slane %v5793_v53, 2  ;;  %v2588_v53 = vrot.slane %v5963_v23, 6  ;;  %v4827_v23 = vld [vmem:[#allocation7 + $0x10] sm:$0xff]  }
 0xafc   : > { %v5029_v3 = vpop.eup %5028 }
 0xafd   : > { %5032 = vrcp.f32 %v2353_v62  ;;  %v2359_v8 = vadd.f32 1.0, %v5029_v3  ;;  %v5031_v2 = vpop.eup %5030 }
 0xafe   : > { %5034 = vtanh.f32 %v2348_v16  ;;  %v2366_v19 = vadd.f32 1.0, %v5031_v2 }
 0xaff   : > { %5036 = vrcp.f32 %v2359_v8 }
 0xb00   : > { %5038 = vrcp.f32 %v2366_v19 }
 0xb0a   : > { %v5033_v12 = vpop.eup %5032 }
 0xb0b   : > { %v5035_v20 = vpop.eup %5034 }
 0xb0c   : > { %v5037_v18 = vpop.eup %5036  ;;  %v2373_v51 = vmul.f32 %v5035_v20, %v5033_v12  ;;  %v2561_v12 = vrot.slane %v5844_v56, 3 }
 0xb0d   : > { %v2372_v22 = vmul.f32 %v5037_v18, %v2370_v54  ;;  %v5039_v55 = vpop.eup %5038  ;;  %v2570_v54 = vrot.slane %v5894_v11, 4 }
 0xb0f   : > { %v2374_v4 = vadd.f32 %v2373_v51, %v2372_v22  ;;  %v2579_v22 = vrot.slane %v5943_v52, 5  ;;  %v4826_v52 = vld [vmem:[#allocation7 + $0x18] sm:$0xff]  }
 0xb11   : > { %5040 = vtanh.f32 %v2374_v4 }
 0xb1e   : > { %v5041_v24 = vpop.eup %5040 }
 0xb1f   : > { %v6044_v25 = vmul.f32 %v5041_v24, %v5039_v55 }
 0xb21   : > { %v2389_v26 = vsel %vm2388_vm10, %v5969_v17, %v6044_v25 }
 0xb22   : > { %4404 = vmatmul.mubr.f32.vlgmr.msra.gmra.mxu1 %v2389_v26 }
 0xb23   : > { %4442 = vmatprep.mubr.msk.bf16.mxu1 %vm5206_vm0, %v5205_v1  ;;  %4427 = vmatpush3.bf16.msra.mxu1 %v4822_v60 }
 0xb24   : > { %4428 = vmatprep.subr.bf16.mxu1 %v5205_v1 }
 0xb27   : > { %4429 = vmatpush3.bf16.msra.mxu1 %v4823_v6 }
 0xb28   : > { %4430 = vmatprep.subr.bf16.mxu1 %v5205_v1 }
 0xb2b   : > { %4431 = vmatpush3.bf16.msra.mxu1 %v4824_v9 }
 0xb2c   : > { %4432 = vmatprep.subr.bf16.mxu1 %v5205_v1 }
 0xbe2   : > { %v2472_v21 = vpop.f32.mrf.mxu1 }
 0xbe3   : > { %2476 = vxpose.xlu1.b32.start.end [1/1] (short) (narrow) %v2472_v21, 8  ;;  %v2597_v21 = vrot.slane %v6044_v25, 7  ;;  %v4828_v25 = vld [vmem:[#allocation7 + $0x8] sm:$0xff]  }
 0xbe4   : > { %v4405_v0 = vpop.f32.mrf.mxu1 }
 0xc01   : > { %4701 = vset.pattern.permute.xlu1 %v5208_v36 }
 0xc5f   : > { %v2492_v29 = vpop.trf.xlu1 }
 0xc60   : > { %v2518_v30 = vadd.f32 %v2517_v28, %v2492_v29  ;;  %v4825_v29 = vld [vmem:[#allocation7 + $0x20] sm:$0xff]  }
 0xc61   : > { %4433 = vmatpush3.bf16.msra.mxu1 %v4825_v29 }
 0xc62   : > { %v2520_v31 = vsel %vm2519_vm11, %v2518_v30, -inf  ;;  %4434 = vmatprep.subr.bf16.mxu1 %v5205_v1 }
 0xc63   : > { %2521 = vmax.xlane.f32.xlu0 %v2520_v31  ;;  %v4830_v31 = vld [vmem:[#allocation7 + $0x78] sm:$0xff]  }
 0xc65   : > { %4435 = vmatpush3.bf16.msra.mxu1 %v4826_v52  ;;  %v4857_v52 = vld [vmem:[#allocation7 + $0x120] sm:$0xff]  }
 0xc66   : > { %4436 = vmatprep.subr.bf16.mxu1 %v5205_v1 }
 0xc69   : > { %4437 = vmatpush3.bf16.msra.mxu1 %v4827_v23  ;;  %v4858_v23 = vld [vmem:[#allocation7 + $0x118] sm:$0xff]  }
 0xc6a   : > { %4438 = vmatprep.subr.bf16.mxu1 %v5205_v1 }
 0xc6d   : > { %4439 = vmatpush3.bf16.msra.mxu1 %v4828_v25  ;;  %v4859_v25 = vld [vmem:[#allocation7 + $0x110] sm:$0xff]  }
 0xc6e   : > { %4440 = vmatprep.subr.bf16.mxu1 %v5205_v1 }
 0xcec   : > { %v2522_v32 = vpop.xlane.xlu0 %2521 }
 0xced   : > { %v2523_v33 = vsub.f32 %v2518_v30, %v2522_v32  ;;  %v4829_v30 = vld [vmem:[#allocation7] sm:$0xff]   ;;  %v4831_v32 = vld [vmem:[#allocation7 + $0x70] sm:$0xff]  }
 0xcee   : > { %4441 = vmatpush3.bf16.msra.mxu1 %v4829_v30  ;;  %v4860_v30 = vld [vmem:[#allocation7 + $0x108] sm:$0xff]  }
 0xcef   : > { %v2524_v34 = vmul.f32 1.442695, %v2523_v33  ;;  %4466 = vmatprep.subr.bf16.mxu1 %v5205_v1  ;;  %v4832_v33 = vld [vmem:[#allocation7 + $0x68] sm:$0xff]  }
 0xcf1   : > { %5042 = vpow2.f32 %v2524_v34  ;;  %v2618_v34 = vld [vmem:[%s6252_s11] sm:$0x1] }
 0xcfe   : > { %v5043_v17 = vpop.eup %5042 }
 0xcff   : > { %v2526_v35 = vsel %vm2519_vm11, %v5043_v17, 0.0 }
 0xd00   : > { %2527 = vadd.xlane.f32.xlu0 %v2526_v35 }
 0xd89   : > { %v2528_v15 = vpop.xlane.xlu0 %2527 }
 0xd8a   : > { %5044 = vrcp.f32 %v2528_v15 }
 0xd97   : > { %v5045_v57 = vpop.eup %5044 }
 0xd98   : > { %v2530_v40 = vmul.f32 %v5045_v57, %v5043_v17 }
 0xd9a   : > { %2539 = vperm.xlu1 %4701, %v2530_v40   ;;  %2533 = vperm.xlu0 %4700, %v2530_v40  }
 0xd9e   : > { %4704 = vset.pattern.permute.xlu1 %v5209_v42  ;;  %4702 = vset.pattern.permute.xlu0 %v5210_v43  ;;  %v4836_v42 = vld [vmem:[#allocation7 + $0x48] sm:$0xff]   ;;  %v4837_v43 = vld [vmem:[#allocation7 + $0x40] sm:$0xff]  }
 0xd9f   : > { %2566 = vperm.xlu1 %4704, %v2530_v40   ;;  %2548 = vperm.xlu0 %4702, %v2530_v40  }
 0xda3   : > { %4706 = vset.pattern.permute.xlu1 %v5211_v46  ;;  %4703 = vset.pattern.permute.xlu0 %v5212_v47  ;;  %v4840_v46 = vld [vmem:[#allocation7 + $0xa8] sm:$0xff]   ;;  %v2725_v47 = vld [vmem:[%s6254_s13] sm:$0x1] }
 0xda4   : > { %2584 = vperm.xlu1 %4706, %v2530_v40   ;;  %2557 = vperm.xlu0 %4703, %v2530_v40  }
 0xda8   : > { %4707 = vset.pattern.permute.xlu1 %v5213_v49  ;;  %4705 = vset.pattern.permute.xlu0 %v5214_v59 }
 0xda9   : > { %2593 = vperm.xlu1 %4707, %v2530_v40   ;;  %2575 = vperm.xlu0 %4705, %v2530_v40   ;;  %v4834_v40 = vld [vmem:[#allocation7 + $0x58] sm:$0xff]  }
 0xdad   : > { %4708 = vset.pattern.permute.xlu0 %v5213_v49 }
 0xe15   : > { %v2540_v14 = vpop.permute.xlu1 %2539  ;;  %v2534_v58 = vpop.permute.xlu0 %2533 }
 0xe16   : > { %v2545_v50 = vmul.f32 %v2543_v10, %v2540_v14  ;;  %v2536_v7 = vmul.f32 %v2534_v58, %v5701_v13  ;;  %v4841_v10 = vld [vmem:[#allocation7 + $0xa0] sm:$0xff]   ;;  %v4842_v14 = vld [vmem:[#allocation7 + $0x98] sm:$0xff]   ;;  %v4843_v58 = vld [vmem:[#allocation7 + $0x90] sm:$0xff]  }
 0xe18   : > { %v2546_v3 = vadd.f32 %v2545_v50, %v2536_v7  ;;  %v4844_v50 = vld [vmem:[#allocation7 + $0x88] sm:$0xff]   ;;  %v4845_v7 = vld [vmem:[#allocation7 + $0x80] sm:$0xff]  }
 0xe1a   : > { %v2567_v16 = vpop.permute.xlu1 %2566  ;;  %v2549_v62 = vpop.permute.xlu0 %2548 }
 0xe1b   : > { %v2554_v8 = vmul.f32 %v2552_v63, %v2549_v62  ;;  %v2572_v5 = vmul.f32 %v2570_v54, %v2567_v16  ;;  %v4846_v63 = vld [vmem:[#allocation7 + $0xf8] sm:$0xff]   ;;  %v4847_v16 = vld [vmem:[#allocation7 + $0xf0] sm:$0xff]   ;;  %v4848_v62 = vld [vmem:[#allocation7 + $0xe8] sm:$0xff]  }
 0xe1d   : > { %v2555_v2 = vadd.f32 %v2554_v8, %v2546_v3  ;;  %v4118_v3 = vld [vmem:[%s6254_s13 + $0x1] sm:$0x1] }
 0xe1f   : > { %v2558_v20 = vpop.permute.xlu0 %2557  ;;  %v2585_v18 = vpop.permute.xlu1 %2584 }
 0xe20   : > { %v2563_v19 = vmul.f32 %v2561_v12, %v2558_v20  ;;  %v2590_v26 = vmul.f32 %v2588_v53, %v2585_v18  ;;  %v4854_v53 = vld [vmem:[#allocation7 + $0x138] sm:$0xff]  }
 0xe22   : > { %v2564_v51 = vadd.f32 %v2563_v19, %v2555_v2 }
 0xe24   : > { %v2573_v4 = vadd.f32 %v2572_v5, %v2564_v51  ;;  %v2576_v13 = vpop.permute.xlu0 %2575  ;;  %v2594_v24 = vpop.permute.xlu1 %2593  ;;  %v4849_v5 = vld [vmem:[#allocation7 + $0xe0] sm:$0xff]   ;;  %v4850_v51 = vld [vmem:[#allocation7 + $0xd8] sm:$0xff]  }
 0xe25   : > { %v2581_v55 = vmul.f32 %v2579_v22, %v2576_v13  ;;  %v2599_v56 = vmul.f32 %v2597_v21, %v2594_v24  ;;  %v4851_v22 = vld [vmem:[#allocation7 + $0xd0] sm:$0xff]   ;;  %v4853_v13 = vld [vmem:[#allocation7 + $0xc0] sm:$0xff]   ;;  %v4856_v24 = vld [vmem:[#allocation7 + $0x128] sm:$0xff]  }
 0xe27   : > { %v2582_v0 = vadd.f32 %v2581_v55, %v2573_v4  ;;  %v4852_v4 = vld [vmem:[#allocation7 + $0xc8] sm:$0xff]   ;;  %v4855_v55 = vld [vmem:[#allocation7 + $0x130] sm:$0xff]  }
 0xe29   : > { %v2591_v27 = vadd.f32 %v2590_v26, %v2582_v0  ;;  %v4127_v26 = vld [vmem:[%s6254_s13 + $0x2] sm:$0x1] }
 0xe2b   : > { %v2600_v28 = vadd.f32 %v2599_v56, %v2591_v27 }
 0xe2d   : > { %v2601_v11 = vpack.c.bf16 %v2600_v28, %v2600_v28 }
 0xe2f   : > { %4423 = vmatmul.mubr.bf16.vlgmr.msra.gmra.mxu0 %v2601_v11 }
 0xe30   : > { %4462 = vmatprep.mubr.msk.bf16.mxu0 %vm5206_vm0, %v5205_v1  ;;  %4447 = vmatpush3.bf16.msra.mxu0 %v4830_v31  ;;  %v4861_v31 = vld [vmem:[#allocation7 + $0x100] sm:$0xff]  }
 0xe31   : > { %4448 = vmatprep.subr.bf16.mxu0 %v5205_v1 }
 0xe34   : > { %4449 = vmatpush3.bf16.msra.mxu0 %v4831_v32  ;;  %v4862_v32 = vld [vmem:[#allocation7 + $0x178] sm:$0xff]  }
 0xe35   : > { %4450 = vmatprep.subr.bf16.mxu0 %v5205_v1 }
 0xe38   : > { %4451 = vmatpush3.bf16.msra.mxu0 %v4832_v33  ;;  %v4863_v33 = vld [vmem:[#allocation7 + $0x170] sm:$0xff]  }
 0xe39   : > { %4452 = vmatprep.subr.bf16.mxu0 %v5205_v1 }
 0xe3c   : > { %4453 = vmatpush3.bf16.msra.mxu0 %v4833_v39 }
 0xe3d   : > { %4454 = vmatprep.subr.bf16.mxu0 %v5205_v1 }
 0xe40   : > { %4455 = vmatpush3.bf16.msra.mxu0 %v4834_v40  ;;  %v4865_v40 = vld [vmem:[#allocation7 + $0x160] sm:$0xff]  }
 0xe41   : > { %4456 = vmatprep.subr.bf16.mxu0 %v5205_v1 }
 0xe44   : > { %4457 = vmatpush3.bf16.msra.mxu0 %v4835_v41  ;;  %v4866_v41 = vld [vmem:[#allocation7 + $0x158] sm:$0xff]  }
 0xe45   : > { %4458 = vmatprep.subr.bf16.mxu0 %v5205_v1 }
 0xe48   : > { %4459 = vmatpush3.bf16.msra.mxu0 %v4836_v42  ;;  %v4867_v42 = vld [vmem:[#allocation7 + $0x150] sm:$0xff]  }
 0xe49   : > { %4460 = vmatprep.subr.bf16.mxu0 %v5205_v1 }
 0xe4c   : > { %4461 = vmatpush3.bf16.msra.mxu0 %v4837_v43  ;;  %v4868_v43 = vld [vmem:[#allocation7 + $0x148] sm:$0xff]  }
 0xe4d   : > { %4486 = vmatprep.subr.bf16.mxu0 %v5205_v1 }
 0xeef   : > { %v2701_v17 = vpop.f32.mrf.mxu0 }
 0xef0   : > { %v2702_v35 = vadd.f32 %v2701_v17, %v2618_v34  ;;  %v4864_v34 = vld [vmem:[#allocation7 + $0x168] sm:$0xff]   ;;  %v4136_v17 = vld [vmem:[%s6254_s13 + $0x3] sm:$0x1] }
 0xef1   : > { %v4424_v36 = vpop.f32.mrf.mxu0 }
 0xef2   : > { %5046 = vtanh.f32 %v2702_v35 }
 0xef3   : > { %v2704_v37 = vpop.f32.mrf.mxu0 }
 0xef5   : > { %v4425_v38 = vpop.f32.mrf.mxu0 }
 0xeff   : > { %v5047_v15 = vpop.eup %5046 }
 0xf00   : > { %v2708_v57 = vpack.c.bf16 %v5047_v15, %v5047_v15 }
 0xf02   : > { %4443 = vmatmul.mubr.bf16.vlgmr.msra.gmra.mxu1 %v2708_v57 }
 0xf03   : > { %4482 = vmatprep.mubr.msk.bf16.mxu1 %vm5206_vm0, %v5205_v1  ;;  %4467 = vmatpush3.bf16.msra.mxu1 %v4838_v44  ;;  %v4869_v44 = vld [vmem:[#allocation7 + $0x140] sm:$0xff]  }
 0xf04   : > { %4468 = vmatprep.subr.bf16.mxu1 %v5205_v1 }
 0xf07   : > { %4469 = vmatpush3.bf16.msra.mxu1 %v4839_v45  ;;  %v4870_v45 = vld [vmem:[#allocation7 + $0x1b8] sm:$0xff]  }
 0xf08   : > { %4470 = vmatprep.subr.bf16.mxu1 %v5205_v1 }
 0xf0b   : > { %4471 = vmatpush3.bf16.msra.mxu1 %v4840_v46  ;;  %v4871_v46 = vld [vmem:[#allocation7 + $0x1b0] sm:$0xff]  }
 0xf0c   : > { %4472 = vmatprep.subr.bf16.mxu1 %v5205_v1 }
 0xf0f   : > { %4473 = vmatpush3.bf16.msra.mxu1 %v4841_v10 }
 0xf10   : > { %4474 = vmatprep.subr.bf16.mxu1 %v5205_v1 }
 0xf13   : > { %4475 = vmatpush3.bf16.msra.mxu1 %v4842_v14  ;;  %v4873_v14 = vld [vmem:[#allocation7 + $0x1a0] sm:$0xff]  }
 0xf14   : > { %4476 = vmatprep.subr.bf16.mxu1 %v5205_v1 }
 0xf17   : > { %4477 = vmatpush3.bf16.msra.mxu1 %v4843_v58  ;;  %v4874_v58 = vld [vmem:[#allocation7 + $0x198] sm:$0xff]  }
 0xf18   : > { %4478 = vmatprep.subr.bf16.mxu1 %v5205_v1 }
 0xf1b   : > { %4479 = vmatpush3.bf16.msra.mxu1 %v4844_v50  ;;  %v4875_v50 = vld [vmem:[#allocation7 + $0x190] sm:$0xff]  }
 0xf1c   : > { %4480 = vmatprep.subr.bf16.mxu1 %v5205_v1 }
 0xf1f   : > { %4481 = vmatpush3.bf16.msra.mxu1 %v4845_v7  ;;  %v4876_v7 = vld [vmem:[#allocation7 + $0x188] sm:$0xff]  }
 0xf20   : > { %4506 = vmatprep.subr.bf16.mxu1 %v5205_v1 }
 0xfc2   : > { %v2808_v48 = vpop.f32.mrf.mxu1 }
 0xfc3   : > { %v2809_v49 = vadd.f32 %v2808_v48, %v2725_v47  ;;  %v4872_v47 = vld [vmem:[#allocation7 + $0x1a8] sm:$0xff]   ;;  %v4145_v48 = vld [vmem:[%s6254_s13 + $0x4] sm:$0x1] }
 0xfc4   : > { %v4444_v59 = vpop.f32.mrf.mxu1 }
 0xfc5   : > { %5048 = vtanh.f32 %v2809_v49 }
 0xfc6   : > { %v2811_v61 = vpop.f32.mrf.mxu1 }
 0xfc8   : > { %v4445_v60 = vpop.f32.mrf.mxu1 }
 0xfd2   : > { %v5049_v6 = vpop.eup %5048 }
 0xfd3   : > { %v2815_v9 = vpack.c.bf16 %v5049_v6, %v5049_v6 }
 0xfd5   : > { %4463 = vmatmul.mubr.bf16.vlgmr.msra.gmra.mxu0 %v2815_v9 }
 0xfd6   : > { %4502 = vmatprep.mubr.msk.bf16.mxu0 %vm5206_vm0, %v5205_v1  ;;  %4487 = vmatpush3.bf16.msra.mxu0 %v4846_v63  ;;  %v4877_v63 = vld [vmem:[#allocation7 + $0x180] sm:$0xff]  }
 0xfd7   : > { %4488 = vmatprep.subr.bf16.mxu0 %v5205_v1 }
 0xfda   : > { %4489 = vmatpush3.bf16.msra.mxu0 %v4847_v16  ;;  %v4878_v16 = vld [vmem:[#allocation7 + $0x1f8] sm:$0xff]  }
 0xfdb   : > { %4490 = vmatprep.subr.bf16.mxu0 %v5205_v1 }
 0xfde   : > { %4491 = vmatpush3.bf16.msra.mxu0 %v4848_v62  ;;  %v4879_v62 = vld [vmem:[#allocation7 + $0x1f0] sm:$0xff]  }
 0xfdf   : > { %4492 = vmatprep.subr.bf16.mxu0 %v5205_v1 }
 0xfe2   : > { %4493 = vmatpush3.bf16.msra.mxu0 %v4849_v5 }
 0xfe3   : > { %4494 = vmatprep.subr.bf16.mxu0 %v5205_v1 }
 0xfe6   : > { %4495 = vmatpush3.bf16.msra.mxu0 %v4850_v51  ;;  %v4881_v51 = vld [vmem:[#allocation7 + $0x1e0] sm:$0xff]  }
 0xfe7   : > { %4496 = vmatprep.subr.bf16.mxu0 %v5205_v1 }
 0xfea   : > { %4497 = vmatpush3.bf16.msra.mxu0 %v4851_v22  ;;  %v4882_v22 = vld [vmem:[#allocation7 + $0x1d8] sm:$0xff]  }
 0xfeb   : > { %4498 = vmatprep.subr.bf16.mxu0 %v5205_v1 }
 0xfee   : > { %4499 = vmatpush3.bf16.msra.mxu0 %v4852_v4  ;;  %v4883_v4 = vld [vmem:[#allocation7 + $0x1d0] sm:$0xff]  }
 0xfef   : > { %4500 = vmatprep.subr.bf16.mxu0 %v5205_v1 }
 0xff2   : > { %4501 = vmatpush3.bf16.msra.mxu0 %v4853_v13  ;;  %v4884_v13 = vld [vmem:[#allocation7 + $0x1c8] sm:$0xff]  }
 0xff3   : > { %4526 = vmatprep.subr.bf16.mxu0 %v5205_v1 }
0x1095   : > { %v2917_v8 = vpop.f32.mrf.mxu0 }
0x1096   : > { %v2918_v2 = vadd.f32 %v4118_v3, %v2917_v8  ;;  %v4880_v3 = vld [vmem:[#allocation7 + $0x1e8] sm:$0xff]   ;;  %v4154_v8 = vld [vmem:[%s6254_s13 + $0x5] sm:$0x1] }
0x1097   : > { %v4464_v12 = vpop.f32.mrf.mxu0 }
0x1098   : > { %5050 = vtanh.f32 %v2918_v2 }
0x1099   : > { %v2920_v20 = vpop.f32.mrf.mxu0 }
0x109b   : > { %v4465_v54 = vpop.f32.mrf.mxu0 }
0x10a5   : > { %v5051_v18 = vpop.eup %5050 }
0x10a6   : > { %v2924_v19 = vpack.c.bf16 %v5051_v18, %v5051_v18 }
0x10a8   : > { %4483 = vmatmul.mubr.bf16.vlgmr.msra.gmra.mxu1 %v2924_v19 }
0x10a9   : > { %4522 = vmatprep.mubr.msk.bf16.mxu1 %vm5206_vm0, %v5205_v1  ;;  %4507 = vmatpush3.bf16.msra.mxu1 %v4854_v53  ;;  %v4885_v53 = vld [vmem:[#allocation7 + $0x1c0] sm:$0xff]  }
0x10aa   : > { %4508 = vmatprep.subr.bf16.mxu1 %v5205_v1 }
0x10ad   : > { %4509 = vmatpush3.bf16.msra.mxu1 %v4855_v55  ;;  %v4886_v55 = vld [vmem:[#allocation7 + $0x238] sm:$0xff]  }
0x10ae   : > { %4510 = vmatprep.subr.bf16.mxu1 %v5205_v1 }
0x10b1   : > { %4511 = vmatpush3.bf16.msra.mxu1 %v4856_v24  ;;  %v4887_v24 = vld [vmem:[#allocation7 + $0x230] sm:$0xff]  }
0x10b2   : > { %4512 = vmatprep.subr.bf16.mxu1 %v5205_v1 }
0x10b5   : > { %4513 = vmatpush3.bf16.msra.mxu1 %v4857_v52 }
0x10b6   : > { %4514 = vmatprep.subr.bf16.mxu1 %v5205_v1 }
0x10b9   : > { %4515 = vmatpush3.bf16.msra.mxu1 %v4858_v23  ;;  %v4889_v23 = vld [vmem:[#allocation7 + $0x220] sm:$0xff]  }
0x10ba   : > { %4516 = vmatprep.subr.bf16.mxu1 %v5205_v1 }
0x10bd   : > { %4517 = vmatpush3.bf16.msra.mxu1 %v4859_v25  ;;  %v4890_v25 = vld [vmem:[#allocation7 + $0x218] sm:$0xff]  }
0x10be   : > { %4518 = vmatprep.subr.bf16.mxu1 %v5205_v1 }
0x10c1   : > { %4519 = vmatpush3.bf16.msra.mxu1 %v4860_v30  ;;  %v4891_v30 = vld [vmem:[#allocation7 + $0x210] sm:$0xff]  }
0x10c2   : > { %4520 = vmatprep.subr.bf16.mxu1 %v5205_v1 }
0x10c5   : > { %4521 = vmatpush3.bf16.msra.mxu1 %v4861_v31  ;;  %v4892_v31 = vld [vmem:[#allocation7 + $0x208] sm:$0xff]  }
0x10c6   : > { %4546 = vmatprep.subr.bf16.mxu1 %v5205_v1 }
0x1168   : > { %v3026_v21 = vpop.f32.mrf.mxu1 }
0x1169   : > { %v3027_v0 = vadd.f32 %v4127_v26, %v3026_v21  ;;  %v4888_v26 = vld [vmem:[#allocation7 + $0x228] sm:$0xff]   ;;  %v4163_v21 = vld [vmem:[%s6254_s13 + $0x6] sm:$0x1] }
0x116a   : > { %v4484_v56 = vpop.f32.mrf.mxu1 }
0x116b   : > { %5052 = vtanh.f32 %v3027_v0 }
0x116c   : > { %v3029_v27 = vpop.f32.mrf.mxu1 }
0x116e   : > { %v4485_v28 = vpop.f32.mrf.mxu1 }
0x1178   : > { %v5053_v11 = vpop.eup %5052 }
0x1179   : > { %v3033_v29 = vpack.c.bf16 %v5053_v11, %v5053_v11 }
0x117b   : > { %4503 = vmatmul.mubr.bf16.vlgmr.msra.gmra.mxu0 %v3033_v29 }
0x117c   : > { %4542 = vmatprep.mubr.msk.bf16.mxu0 %vm5206_vm0, %v5205_v1  ;;  %4527 = vmatpush3.bf16.msra.mxu0 %v4862_v32  ;;  %v4893_v32 = vld [vmem:[#allocation7 + $0x200] sm:$0xff]  }
0x117d   : > { %4528 = vmatprep.subr.bf16.mxu0 %v5205_v1 }
0x1180   : > { %4529 = vmatpush3.bf16.msra.mxu0 %v4863_v33  ;;  %v4894_v33 = vld [vmem:[#allocation7 + $0x278] sm:$0xff]  }
0x1181   : > { %4530 = vmatprep.subr.bf16.mxu0 %v5205_v1 }
0x1184   : > { %4531 = vmatpush3.bf16.msra.mxu0 %v4864_v34  ;;  %v4895_v34 = vld [vmem:[#allocation7 + $0x270] sm:$0xff]  }
0x1185   : > { %4532 = vmatprep.subr.bf16.mxu0 %v5205_v1 }
0x1188   : > { %4533 = vmatpush3.bf16.msra.mxu0 %v4865_v40 }
0x1189   : > { %4534 = vmatprep.subr.bf16.mxu0 %v5205_v1 }
0x118c   : > { %4535 = vmatpush3.bf16.msra.mxu0 %v4866_v41  ;;  %v4897_v41 = vld [vmem:[#allocation7 + $0x260] sm:$0xff]  }
0x118d   : > { %4536 = vmatprep.subr.bf16.mxu0 %v5205_v1 }
0x1190   : > { %4537 = vmatpush3.bf16.msra.mxu0 %v4867_v42  ;;  %v4898_v42 = vld [vmem:[#allocation7 + $0x258] sm:$0xff]  }
0x1191   : > { %4538 = vmatprep.subr.bf16.mxu0 %v5205_v1 }
0x1194   : > { %4539 = vmatpush3.bf16.msra.mxu0 %v4868_v43  ;;  %v4899_v43 = vld [vmem:[#allocation7 + $0x250] sm:$0xff]  }
0x1195   : > { %4540 = vmatprep.subr.bf16.mxu0 %v5205_v1 }
0x1198   : > { %4541 = vmatpush3.bf16.msra.mxu0 %v4869_v44  ;;  %v4900_v44 = vld [vmem:[#allocation7 + $0x248] sm:$0xff]  }
0x1199   : > { %4566 = vmatprep.subr.bf16.mxu0 %v5205_v1 }
0x123b   : > { %v3135_v35 = vpop.f32.mrf.mxu0 }
0x123c   : > { %v3136_v36 = vadd.f32 %v4136_v17, %v3135_v35  ;;  %v4896_v17 = vld [vmem:[#allocation7 + $0x268] sm:$0xff]   ;;  %v4172_v35 = vld [vmem:[%s6254_s13 + $0x7] sm:$0x1] }
0x123d   : > { %v4504_v37 = vpop.f32.mrf.mxu0 }
0x123e   : > { %5054 = vtanh.f32 %v3136_v36 }
0x123f   : > { %v3138_v38 = vpop.f32.mrf.mxu0 }
0x1241   : > { %v4505_v15 = vpop.f32.mrf.mxu0 }
0x124b   : > { %v5055_v57 = vpop.eup %5054 }
0x124c   : > { %v3142_v39 = vpack.c.bf16 %v5055_v57, %v5055_v57 }
0x124e   : > { %4523 = vmatmul.mubr.bf16.vlgmr.msra.gmra.mxu1 %v3142_v39 }
0x124f   : > { %4562 = vmatprep.mubr.msk.bf16.mxu1 %vm5206_vm0, %v5205_v1  ;;  %4547 = vmatpush3.bf16.msra.mxu1 %v4870_v45  ;;  %v4901_v45 = vld [vmem:[#allocation7 + $0x240] sm:$0xff]  }
0x1250   : > { %4548 = vmatprep.subr.bf16.mxu1 %v5205_v1 }
0x1253   : > { %4549 = vmatpush3.bf16.msra.mxu1 %v4871_v46  ;;  %v4902_v46 = vld [vmem:[%s6255_s14 + $0x38] sm:$0xff]  }
0x1254   : > { %4550 = vmatprep.subr.bf16.mxu1 %v5205_v1 }
0x1257   : > { %4551 = vmatpush3.bf16.msra.mxu1 %v4872_v47  ;;  %v4903_v47 = vld [vmem:[%s6255_s14 + $0x30] sm:$0xff]  }
0x1258   : > { %4552 = vmatprep.subr.bf16.mxu1 %v5205_v1 }
0x125b   : > { %4553 = vmatpush3.bf16.msra.mxu1 %v4873_v14 }
0x125c   : > { %4554 = vmatprep.subr.bf16.mxu1 %v5205_v1 }
0x125f   : > { %4555 = vmatpush3.bf16.msra.mxu1 %v4874_v58  ;;  %v4905_v58 = vld [vmem:[%s6255_s14 + $0x20] sm:$0xff]  }
0x1260   : > { %4556 = vmatprep.subr.bf16.mxu1 %v5205_v1 }
0x1263   : > { %4557 = vmatpush3.bf16.msra.mxu1 %v4875_v50  ;;  %v4906_v50 = vld [vmem:[%s6255_s14 + $0x18] sm:$0xff]  }
0x1264   : > { %4558 = vmatprep.subr.bf16.mxu1 %v5205_v1 }
0x1267   : > { %4559 = vmatpush3.bf16.msra.mxu1 %v4876_v7  ;;  %v4907_v7 = vld [vmem:[%s6255_s14 + $0x10] sm:$0xff]  }
0x1268   : > { %4560 = vmatprep.subr.bf16.mxu1 %v5205_v1 }
0x126b   : > { %4561 = vmatpush3.bf16.msra.mxu1 %v4877_v63  ;;  %v4908_v63 = vld [vmem:[%s6255_s14 + $0x8] sm:$0xff]  }
0x126c   : > { %4586 = vmatprep.subr.bf16.mxu1 %v5205_v1 }
0x130e   : > { %v3244_v49 = vpop.f32.mrf.mxu1 }
0x130f   : > { %v3245_v59 = vadd.f32 %v4145_v48, %v3244_v49  ;;  %v4904_v48 = vld [vmem:[%s6255_s14 + $0x28] sm:$0xff]  }
0x1310   : > { %v4524_v61 = vpop.f32.mrf.mxu1  ;;  %v4181_v49 = vld [vmem:[%s6254_s13 + $0x8] sm:$0x1] }
0x1311   : > { %5056 = vtanh.f32 %v3245_v59 }
0x1312   : > { %v3247_v60 = vpop.f32.mrf.mxu1 }
0x1314   : > { %v4525_v6 = vpop.f32.mrf.mxu1 }
0x131e   : > { %v5057_v9 = vpop.eup %5056 }
0x131f   : > { %v3251_v10 = vpack.c.bf16 %v5057_v9, %v5057_v9 }
0x1321   : > { %4543 = vmatmul.mubr.bf16.vlgmr.msra.gmra.mxu0 %v3251_v10 }
0x1322   : > { %4582 = vmatprep.mubr.msk.bf16.mxu0 %vm5206_vm0, %v5205_v1  ;;  %4567 = vmatpush3.bf16.msra.mxu0 %v4878_v16  ;;  %v4909_v16 = vld [vmem:[%s6255_s14] sm:$0xff]  }
0x1323   : > { %4568 = vmatprep.subr.bf16.mxu0 %v5205_v1 }
0x1326   : > { %4569 = vmatpush3.bf16.msra.mxu0 %v4879_v62  ;;  %v4190_v62 = vld [vmem:[%s6254_s13 + $0x9] sm:$0x1] }
0x1327   : > { %4570 = vmatprep.subr.bf16.mxu0 %v5205_v1 }
0x132a   : > { %4571 = vmatpush3.bf16.msra.mxu0 %v4880_v3 }
0x132b   : > { %4572 = vmatprep.subr.bf16.mxu0 %v5205_v1 }
0x132e   : > { %4573 = vmatpush3.bf16.msra.mxu0 %v4881_v51 }
0x132f   : > { %4574 = vmatprep.subr.bf16.mxu0 %v5205_v1 }
0x1332   : > { %4575 = vmatpush3.bf16.msra.mxu0 %v4882_v22 }
0x1333   : > { %4576 = vmatprep.subr.bf16.mxu0 %v5205_v1 }
0x1336   : > { %4577 = vmatpush3.bf16.msra.mxu0 %v4883_v4 }
0x1337   : > { %4578 = vmatprep.subr.bf16.mxu0 %v5205_v1 }
0x133a   : > { %4579 = vmatpush3.bf16.msra.mxu0 %v4884_v13 }
0x133b   : > { %4580 = vmatprep.subr.bf16.mxu0 %v5205_v1 }
0x133e   : > { %4581 = vmatpush3.bf16.msra.mxu0 %v4885_v53 }
0x133f   : > { %4606 = vmatprep.subr.bf16.mxu0 %v5205_v1 }
0x13e1   : > { %v3353_v2 = vpop.f32.mrf.mxu0 }
0x13e2   : > { %v3354_v12 = vadd.f32 %v4154_v8, %v3353_v2 }
0x13e3   : > { %v4544_v20 = vpop.f32.mrf.mxu0 }
0x13e4   : > { %5058 = vtanh.f32 %v3354_v12 }
0x13e5   : > { %v3356_v54 = vpop.f32.mrf.mxu0 }
0x13e7   : > { %v4545_v18 = vpop.f32.mrf.mxu0 }
0x13f1   : > { %v5059_v19 = vpop.eup %5058 }
0x13f2   : > { %v3360_v5 = vpack.c.bf16 %v5059_v19, %v5059_v19 }
0x13f4   : > { %4563 = vmatmul.mubr.bf16.vlgmr.msra.gmra.mxu1 %v3360_v5 }
0x13f5   : > { %4602 = vmatprep.mubr.msk.bf16.mxu1 %vm5206_vm0, %v5205_v1  ;;  %4587 = vmatpush3.bf16.msra.mxu1 %v4886_v55 }
0x13f6   : > { %4588 = vmatprep.subr.bf16.mxu1 %v5205_v1 }
0x13f9   : > { %4589 = vmatpush3.bf16.msra.mxu1 %v4887_v24 }
0x13fa   : > { %4590 = vmatprep.subr.bf16.mxu1 %v5205_v1 }
0x13fd   : > { %4591 = vmatpush3.bf16.msra.mxu1 %v4888_v26 }
0x13fe   : > { %4592 = vmatprep.subr.bf16.mxu1 %v5205_v1 }
0x1401   : > { %4593 = vmatpush3.bf16.msra.mxu1 %v4889_v23 }
0x1402   : > { %4594 = vmatprep.subr.bf16.mxu1 %v5205_v1 }
0x1405   : > { %4595 = vmatpush3.bf16.msra.mxu1 %v4890_v25 }
0x1406   : > { %4596 = vmatprep.subr.bf16.mxu1 %v5205_v1 }
0x1409   : > { %4597 = vmatpush3.bf16.msra.mxu1 %v4891_v30 }
0x140a   : > { %4598 = vmatprep.subr.bf16.mxu1 %v5205_v1 }
0x140d   : > { %4599 = vmatpush3.bf16.msra.mxu1 %v4892_v31 }
0x140e   : > { %4600 = vmatprep.subr.bf16.mxu1 %v5205_v1 }
0x1411   : > { %4601 = vmatpush3.bf16.msra.mxu1 %v4893_v32 }
0x1412   : > { %4626 = vmatprep.subr.bf16.mxu1 %v5205_v1 }
0x14b4   : > { %v3462_v0 = vpop.f32.mrf.mxu1 }
0x14b5   : > { %v3463_v56 = vadd.f32 %v4163_v21, %v3462_v0 }
0x14b6   : > { %v4564_v27 = vpop.f32.mrf.mxu1 }
0x14b7   : > { %5060 = vtanh.f32 %v3463_v56 }
0x14b8   : > { %v3465_v28 = vpop.f32.mrf.mxu1 }
0x14ba   : > { %v4565_v11 = vpop.f32.mrf.mxu1 }
0x14c4   : > { %v5061_v29 = vpop.eup %5060 }
0x14c5   : > { %v3469_v52 = vpack.c.bf16 %v5061_v29, %v5061_v29 }
0x14c7   : > { %4583 = vmatmul.mubr.bf16.vlgmr.msra.gmra.mxu0 %v3469_v52 }
0x14c8   : > { %4622 = vmatprep.mubr.msk.bf16.mxu0 %vm5206_vm0, %v5205_v1  ;;  %4607 = vmatpush3.bf16.msra.mxu0 %v4894_v33 }
0x14c9   : > { %4608 = vmatprep.subr.bf16.mxu0 %v5205_v1 }
0x14cc   : > { %4609 = vmatpush3.bf16.msra.mxu0 %v4895_v34 }
0x14cd   : > { %4610 = vmatprep.subr.bf16.mxu0 %v5205_v1 }
0x14d0   : > { %4611 = vmatpush3.bf16.msra.mxu0 %v4896_v17 }
0x14d1   : > { %4612 = vmatprep.subr.bf16.mxu0 %v5205_v1 }
0x14d4   : > { %4613 = vmatpush3.bf16.msra.mxu0 %v4897_v41 }
0x14d5   : > { %4614 = vmatprep.subr.bf16.mxu0 %v5205_v1 }
0x14d8   : > { %4615 = vmatpush3.bf16.msra.mxu0 %v4898_v42 }
0x14d9   : > { %4616 = vmatprep.subr.bf16.mxu0 %v5205_v1 }
0x14dc   : > { %4617 = vmatpush3.bf16.msra.mxu0 %v4899_v43 }
0x14dd   : > { %4618 = vmatprep.subr.bf16.mxu0 %v5205_v1 }
0x14e0   : > { %4619 = vmatpush3.bf16.msra.mxu0 %v4900_v44 }
0x14e1   : > { %4620 = vmatprep.subr.bf16.mxu0 %v5205_v1 }
0x14e4   : > { %4621 = vmatpush3.bf16.msra.mxu0 %v4901_v45 }
0x1587   : > { %v3571_v36 = vpop.f32.mrf.mxu0 }
0x1588   : > { %v3572_v37 = vadd.f32 %v4172_v35, %v3571_v36 }
0x1589   : > { %v4584_v38 = vpop.f32.mrf.mxu0 }
0x158a   : > { %5062 = vtanh.f32 %v3572_v37 }
0x158b   : > { %v3574_v15 = vpop.f32.mrf.mxu0 }
0x158d   : > { %v4585_v57 = vpop.f32.mrf.mxu0 }
0x1597   : > { %v5063_v39 = vpop.eup %5062 }
0x1598   : > { %v3578_v40 = vpack.c.bf16 %v5063_v39, %v5063_v39 }
0x159a   : > { %4603 = vmatmul.mubr.bf16.vlgmr.msra.gmra.mxu1 %v3578_v40 }
0x159b   : > { %4642 = vmatprep.mubr.msk.bf16.mxu1 %vm5206_vm0, %v5205_v1  ;;  %4627 = vmatpush3.bf16.msra.mxu1 %v4902_v46 }
0x159c   : > { %4628 = vmatprep.subr.bf16.mxu1 %v5205_v1 }
0x159f   : > { %4629 = vmatpush3.bf16.msra.mxu1 %v4903_v47 }
0x15a0   : > { %4630 = vmatprep.subr.bf16.mxu1 %v5205_v1 }
0x15a3   : > { %4631 = vmatpush3.bf16.msra.mxu1 %v4904_v48 }
0x15a4   : > { %4632 = vmatprep.subr.bf16.mxu1 %v5205_v1 }
0x15a7   : > { %4633 = vmatpush3.bf16.msra.mxu1 %v4905_v58 }
0x15a8   : > { %4634 = vmatprep.subr.bf16.mxu1 %v5205_v1 }
0x15ab   : > { %4635 = vmatpush3.bf16.msra.mxu1 %v4906_v50 }
0x15ac   : > { %4636 = vmatprep.subr.bf16.mxu1 %v5205_v1 }
0x15af   : > { %4637 = vmatpush3.bf16.msra.mxu1 %v4907_v7 }
0x15b0   : > { %4638 = vmatprep.subr.bf16.mxu1 %v5205_v1 }
0x15b3   : > { %4639 = vmatpush3.bf16.msra.mxu1 %v4908_v63 }
0x15b4   : > { %4640 = vmatprep.subr.bf16.mxu1 %v5205_v1  ;;  %v3813_v1 = vld [vmem:[%s6256_s15] sm:$0x1] }
0x15b7   : > { %4641 = vmatpush3.bf16.msra.mxu1 %v4909_v16 }
0x165a   : > { %v3680_v59 = vpop.f32.mrf.mxu1 }
0x165b   : > { %v3681_v61 = vadd.f32 %v4181_v49, %v3680_v59 }
0x165c   : > { %v4604_v60 = vpop.f32.mrf.mxu1 }
0x165d   : > { %5064 = vtanh.f32 %v3681_v61 }
0x165e   : > { %v3683_v6 = vpop.f32.mrf.mxu1 }
0x1660   : > { %v4605_v9 = vpop.f32.mrf.mxu1 }
0x166a   : > { %v5065_v10 = vpop.eup %5064 }
0x166b   : > { %v3687_v14 = vpack.c.bf16 %v5065_v10, %v5065_v10 }
0x166d   : > { %4623 = vmatmul.mubr.bf16.vlgmr.msra.gmra.mxu0 %v3687_v14 }
0x172d   : > { %v3789_v3 = vpop.f32.mrf.mxu0 }
0x172e   : > { %v3790_v8 = vadd.f32 %v4190_v62, %v3789_v3 }
0x172f   : > { %v4624_v2 = vpop.f32.mrf.mxu0 }
0x1730   : > { %5066 = vtanh.f32 %v3790_v8 }
0x1731   : > { %v3792_v12 = vpop.f32.mrf.mxu0 }
0x1733   : > { %v4625_v20 = vpop.f32.mrf.mxu0 }
0x173d   : > { %v5067_v54 = vpop.eup %5066 }
0x173e   : > { %v3796_v18 = vpack.c.bf16 %v5067_v54, %v5067_v54 }
0x1740   : > { %4643 = vmatmul.mubr.bf16.vlgmr.msra.gmra.mxu1 %v3796_v18 }
0x1800   : > { %v3896_v19 = vpop.f32.mrf.mxu1 }
0x1801   : > { %v3897_v5 = vadd.f32 %v3896_v19, %v3813_v1 }
0x1802   : > { %v4644_v51 = vpop.f32.mrf.mxu1 }
0x1803   : > { %v4207_v22 = vmul.f32 -1.442695, %v3897_v5 }
0x1804   : > { %v3899_v4 = vpop.f32.mrf.mxu1 }
0x1805   : > { %5068 = vpow2.f32 %v4207_v22 }
0x1806   : > { %v4645_v13 = vpop.f32.mrf.mxu1 }
0x1812   : > { %v5069_v53 = vpop.eup %5068 }
0x1813   : > { %v3905_v55 = vadd.f32 1.0, %v5069_v53 }
0x1815   : > { %5070 = vrcp.f32 %v3905_v55 }
0x1822   : > { %v5071_v24 = vpop.eup %5070 }
0x1823   : > { %3908 = vst [vmem:[%s560_s28] sm:$0x1] %v5071_v24 }
0x1824 PF: > { %s30_s23 = sadd.s32 1, %s5196_s23  }
0x1825   : > { %p27_p2 = scmp.ge.s32.totalorder %s30_s23, 4  }
0x1827   :  { %29 = sbr.rel (!%p27_p2) target bundleno = 5 (0x5), region = 145 }
0x182c   :  { %3926 = vsyncpa [#allocation4], 1 }
0x182d   :  { %3928 = vsyncpa [#allocation4 + $0x1], 1 }
0x182e   :  { %3929 = vsyncpa [#allocation6], 1 }

</bundles_post_ra>
